<compile_context>
chip_gen: v5e
topology: v5e:2x2
jax: 0.10.0
libtpu: 0.0.40
codegen_flags: <defaults>
</compile_context>

<pallas_src>
import jax
import jax.numpy as jnp
from jax import lax
from jax.experimental import pallas as pl
from jax.experimental.pallas import tpu as pltpu

EPS = 1e-5
LANES = 128
TAPS = tuple((dy, dx) for dy in range(3) for dx in range(3))   # TAPS[4] == (1, 1) center


def _round_up(x, m):
    return ((x + m - 1) // m) * m


def _vmem_limit_bytes():
    # Re-derive the scoped-VMEM request per TPU generation: leave ~1/4 headroom,
    # cap at 96 MiB (v5e/v6e: 128 MiB physical; v7x: 64 MiB per TensorCore).
    try:
        cap = int(pltpu.get_tpu_info().vmem_capacity_bytes)
    except Exception:
        return None                      # fall back to the compiler default
    return int(min(cap - cap // 4, 96 * 1024 * 1024))


def _fill_padded(pad_ref, xb, H, W):
    """Write xb (bf16) into the interior of a (H+2, W+2, C) VMEM scratch and
    zero the 1-element border.  Border zeroing is tiny and done every step so
    correctness does not depend on which core sees grid step 0."""
    C = xb.shape[-1]
    zrow = jnp.zeros((1, W + 2, C), xb.dtype)
    zcol = jnp.zeros((H, 1, C), xb.dtype)
    pad_ref[pl.ds(0, 1), :, :] = zrow                       # top border (incl. corners)
    pad_ref[pl.ds(H + 1, 1), :, :] = zrow                   # bottom border
    pad_ref[pl.ds(1, H), pl.ds(0, 1), :] = zcol             # left border
    pad_ref[pl.ds(1, H), pl.ds(W + 1, 1), :] = zcol         # right border
    pad_ref[pl.ds(1, H), pl.ds(1, W), :] = xb               # interior


def _stats8(y_f32):
    """Per-channel BN partials packed into an (8, C) tile: row0=sum, row1=sumsq."""
    C = y_f32.shape[-1]
    s = jnp.sum(y_f32, axis=0, keepdims=True)
    sq = jnp.sum(y_f32 * y_f32, axis=0, keepdims=True)
    return jnp.concatenate([s, sq, jnp.zeros((6, C), jnp.float32)], axis=0)


def _conv3x3_acc(pad_ref, w_ref, H, W, Cin_p, Cout_p, skip_center=False):
    """3x3 conv as 9 accumulated per-tap MXU dots on the padded bf16 scratch
    (no materialized im2col buffer).  f32 accumulation."""
    acc = jnp.zeros((H * W, Cout_p), jnp.float32)
    for t, (dy, dx) in enumerate(TAPS):
        if skip_center and t == 4:
            continue
        win = pad_ref[pl.ds(dy, H), pl.ds(dx, W), :].reshape(H * W, Cin_p)
        acc = acc + jnp.dot(win, w_ref[t], preferred_element_type=jnp.float32)
    return acc


def _stage1_kernel(H, W, Cpi, Cpo, has_proj):
    def kernel(*refs):
        if has_proj:
            x_ref, w1_ref, wc_ref, y1_ref, s_ref, st1_ref, sts_ref, pad_ref = refs
        else:
            x_ref, w1_ref, y1_ref, st1_ref, pad_ref = refs

        xb = x_ref[0].astype(jnp.bfloat16)          # cast BEFORE padding / windowing
        _fill_padded(pad_ref, xb, H, W)

        acc = _conv3x3_acc(pad_ref, w1_ref, H, W, Cpi, Cpo, skip_center=has_proj)
        if has_proj:
            # Fused center tap: (HW, Cpi) @ (Cpi, 2*Cpo) -> [conv1 center || 1x1 proj]
            center = pad_ref[pl.ds(1, H), pl.ds(1, W), :].reshape(H * W, Cpi)
            fused = jnp.dot(center, wc_ref[...], preferred_element_type=jnp.float32)
            acc = acc + fused[:, :Cpo]
            s = fused[:, Cpo:]
            s_ref[0] = s.reshape(H, W, Cpo).astype(jnp.bfloat16)
            sts_ref[0] = _stats8(s)

        y1_ref[0] = acc.reshape(H, W, Cpo).astype(jnp.bfloat16)
        st1_ref[0] = _stats8(acc)

    return kernel


def _stage2_kernel(H, W, Cpo):
    def kernel(y1_ref, sc1_ref, sh1_ref, w2_ref, y2_ref, st2_ref, pad_ref):
        # fused BN1 (batch scale/shift, f32) + relu, then bf16 before windowing
        a1 = jnp.maximum(y1_ref[0].astype(jnp.float32) * sc1_ref[...] + sh1_ref[...], 0.0)
        _fill_padded(pad_ref, a1.astype(jnp.bfloat16), H, W)
        acc = _conv3x3_acc(pad_ref, w2_ref, H, W, Cpo, Cpo)
        y2_ref[0] = acc.reshape(H, W, Cpo).astype(jnp.bfloat16)
        st2_ref[0] = _stats8(acc)

    return kernel


def _stage3_kernel(has_proj):
    def kernel(*refs):
        if has_proj:
            y2_ref, sc2_ref, sh2_ref, s_ref, scs_ref, shs_ref, out_ref = refs
            shortcut = s_ref[0].astype(jnp.float32) * scs_ref[...] + shs_ref[...]
        else:
            y2_ref, sc2_ref, sh2_ref, x_ref, out_ref = refs
            shortcut = x_ref[0]
        y2n = y2_ref[0].astype(jnp.float32) * sc2_ref[...] + sh2_ref[...]
        out_ref[0] = jnp.maximum(y2n + shortcut, 0.0)

    return kernel


def basic_block_forward(x_nchw, params, stride=1):
    """Pallas forward of BasicBlock.  x_nchw: (N, Cin, H, W) float32."""
    # TODO(synk): stride != 1 (strided 3x3 + strided 1x1 projection) not implemented.
    assert stride == 1
    N, Cin, H, W = x_nchw.shape
    Cout = params["w1"].shape[0]
    has_proj = "ws" in params
    Cpi = _round_up(Cin, LANES)
    Cpo = _round_up(Cout, LANES)
    if not has_proj:
        # identity shortcut adds x directly -> padded widths must match
        assert Cin == Cout and Cpi == Cpo
    count = float(N * H * W)

    # ---- layout glue: NCHW -> padded NHWC (kept f32 so the identity shortcut is exact).
    # For chained blocks, keep activations in padded NHWC and do this only at network edges.
    x = jnp.transpose(x_nchw, (0, 2, 3, 1)).astype(jnp.float32)
    x = jnp.pad(x, ((0, 0), (0, 0), (0, 0), (0, Cpi - Cin)))

    def tap3x3(w, Cip):  # OIHW (Co,Ci,3,3) -> (9, Cip, Cpo) f32, channel padded per tap
        Co, Ci = w.shape[0], w.shape[1]
        wt = jnp.transpose(w, (2, 3, 1, 0)).astype(jnp.float32)        # (3,3,Ci,Co)
        wt = jnp.pad(wt, ((0, 0), (0, 0), (0, Cip - Ci), (0, Cpo - Co)))
        return wt.reshape(9, Cip, Cpo)

    def vec(p):          # (C,) -> (1, Cpo) f32, zero padded
        return jnp.pad(p.astype(jnp.float32), (0, Cpo - p.shape[0])).reshape(1, Cpo)

    # TODO(synk): for tiny Cin (first layer), pack the whole 9*Cin contraction into one
    # 128-wide K block instead of 9 per-tap dots of K=Cpi.
    w1_f32 = tap3x3(params["w1"], Cpi)
    w1 = w1_f32.astype(jnp.bfloat16)
    w2 = tap3x3(params["w2"], Cpo).astype(jnp.bfloat16)
    g1, b1 = vec(params["g1"]), vec(params["b1"])
    g2, b2 = vec(params["g2"]), vec(params["b2"])

    cparams = pltpu.CompilerParams(
        dimension_semantics=("parallel",),             # batch axis: megacore friendly
        vmem_limit_bytes=_vmem_limit_bytes(),          # per-generation budget
    )

    img_i = lambda i: (i, 0, 0, 0)
    st_i = lambda i: (i, 0, 0)
    full2 = lambda i: (0, 0)
    full3 = lambda i: (0, 0, 0)

    def img_spec(C):
        return pl.BlockSpec((1, H, W, C), img_i)

    st_spec = pl.BlockSpec((1, 8, Cpo), st_i)
    vec_spec = pl.BlockSpec((1, Cpo), full2)
    w_spec = lambda Cip: pl.BlockSpec((9, Cip, Cpo), full3)
    pad_scratch = lambda C: pltpu.VMEM((H + 2, W + 2, C), jnp.bfloat16)

    act_bf16 = jax.ShapeDtypeStruct((N, H, W, Cpo), jnp.bfloat16)   # bf16 inter-stage HBM
    stats_f32 = jax.ShapeDtypeStruct((N, 8, Cpo), jnp.float32)

    # ---------- stage 1: conv1 (+ fused 1x1 projection) + BN partial stats ----------
    s1_inputs = [x, w1]
    s1_in_specs = [img_spec(Cpi), w_spec(Cpi)]
    if has_proj:
        ws = jnp.transpose(params["ws"][:, :, 0, 0], (1, 0)).astype(jnp.float32)  # (Cin, Cout)
        ws = jnp.pad(ws, ((0, Cpi - Cin), (0, Cpo - Cout)))
        wc = jnp.concatenate([w1_f32[4], ws], axis=1).astype(jnp.bfloat16)        # (Cpi, 2*Cpo)
        gs, bs = vec(params["gs"]), vec(params["bs"])
        s1_inputs.append(wc)
        s1_in_specs.append(pl.BlockSpec((Cpi, 2 * Cpo), full2))
        s1_out_shape = [act_bf16, act_bf16, stats_f32, stats_f32]
        s1_out_specs = [img_spec(Cpo), img_spec(Cpo), st_spec, st_spec]
    else:
        s1_out_shape = [act_bf16, stats_f32]
        s1_out_specs = [img_spec(Cpo), st_spec]

    s1_outs = pl.pallas_call(
        _stage1_kernel(H, W, Cpi, Cpo, has_proj),
        grid=(N,),
        in_specs=s1_in_specs,
        out_specs=s1_out_specs,
        out_shape=s1_out_shape,
        scratch_shapes=[pad_scratch(Cpi)],
        compiler_params=cparams,
    )(*s1_inputs)
    if has_proj:
        y1, s_pre, st1, sts = s1_outs
    else:
        y1, st1 = s1_outs

    # tiny per-channel cross-tile finalize (two-phase BN): mean/var -> scale/shift
    def bn_scale_shift(st, gamma, beta):
        ssum = jnp.sum(st[:, 0, :], axis=0)
        ssq = jnp.sum(st[:, 1, :], axis=0)
        mean = ssum / count
        var = jnp.maximum(ssq / count - mean * mean, 0.0)
        scale = gamma.reshape(-1) * lax.rsqrt(var + EPS)
        shift = beta.reshape(-1) - mean * scale
        return scale.reshape(1, Cpo), shift.reshape(1, Cpo)

    sc1, sh1 = bn_scale_shift(st1, g1, b1)

    # ---------- stage 2: BN1+relu fused into conv2, + BN2 partial stats ----------
    y2, st2 = pl.pallas_call(
        _stage2_kernel(H, W, Cpo),
        grid=(N,),
        in_specs=[img_spec(Cpo), vec_spec, vec_spec, w_spec(Cpo)],
        out_specs=[img_spec(Cpo), st_spec],
        out_shape=[act_bf16, stats_f32],
        scratch_shapes=[pad_scratch(Cpo)],
        compiler_params=cparams,
    )(y1, sc1, sh1, w2)

    sc2, sh2 = bn_scale_shift(st2, g2, b2)

    # ---------- stage 3: BN2 + shortcut (+ its BN) + relu ----------
    if has_proj:
        scs, shs = bn_scale_shift(sts, gs, bs)
        s3_inputs = [y2, sc2, sh2, s_pre, scs, shs]
        s3_in_specs = [img_spec(Cpo), vec_spec, vec_spec,
                       img_spec(Cpo), vec_spec, vec_spec]
    else:
        s3_inputs = [y2, sc2, sh2, x]
        s3_in_specs = [img_spec(Cpo), vec_spec, vec_spec, img_spec(Cpi)]

    out = pl.pallas_call(
        _stage3_kernel(has_proj),
        grid=(N,),
        in_specs=s3_in_specs,
        out_specs=img_spec(Cpo),
        out_shape=jax.ShapeDtypeStruct((N, H, W, Cpo), jnp.float32),
        compiler_params=cparams,
    )(*s3_inputs)

    out = out[:, :, :, :Cout]                  # strip channel padding
    return jnp.transpose(out, (0, 3, 1, 2))    # back to NCHW


# ---------------- pure-JAX reference (for correctness check only) -------------
def ref_basic_block(x, params, stride=1):
    def conv(x, w, s, pad):
        return lax.conv_general_dilated(
            x, w, (s, s), [(pad, pad), (pad, pad)],
            dimension_numbers=("NCHW", "OIHW", "NCHW"))

    def bn(x, g, b):
        mean = jnp.mean(x, axis=(0, 2, 3), keepdims=True)
        var = jnp.mean((x - mean) ** 2, axis=(0, 2, 3), keepdims=True)
        return (x - mean) * lax.rsqrt(var + EPS) * g.reshape(1, -1, 1, 1) + b.reshape(1, -1, 1, 1)

    out = jax.nn.relu(bn(conv(x, params["w1"], stride, 1), params["g1"], params["b1"]))
    out = bn(conv(out, params["w2"], 1, 1), params["g2"], params["b2"])
    if "ws" in params:
        sc = bn(conv(x, params["ws"], stride, 0), params["gs"], params["bs"])
    else:
        sc = x
    return jax.nn.relu(out + sc)


if __name__ == "__main__":
    key = jax.random.PRNGKey(0)
    N, Cin, planes, H, W = 2, 4, 8, 16, 16   # in_planes != planes -> projection shortcut
    keys = jax.random.split(key, 17)

    # ---- case 1: projection shortcut (1x1 conv + BN) ----
    x = jax.random.normal(keys[0], (N, Cin, H, W), jnp.float32)
    params = {
        "w1": 0.1 * jax.random.normal(keys[1], (planes, Cin, 3, 3), jnp.float32),
        "g1": 1.0 + 0.1 * jax.random.normal(keys[2], (planes,), jnp.float32),
        "b1": 0.1 * jax.random.normal(keys[3], (planes,), jnp.float32),
        "w2": 0.1 * jax.random.normal(keys[4], (planes, planes, 3, 3), jnp.float32),
        "g2": 1.0 + 0.1 * jax.random.normal(keys[5], (planes,), jnp.float32),
        "b2": 0.1 * jax.random.normal(keys[6], (planes,), jnp.float32),
        "ws": 0.1 * jax.random.normal(keys[7], (planes, Cin, 1, 1), jnp.float32),
        "gs": 1.0 + 0.1 * jax.random.normal(keys[8], (planes,), jnp.float32),
        "bs": 0.1 * jax.random.normal(keys[9], (planes,), jnp.float32),
    }
    out = jax.block_until_ready(basic_block_forward(x, params, stride=1))
    ref = ref_basic_block(x, params, stride=1)
    assert out.shape == ref.shape == (N, planes, H, W)
    err = float(jnp.max(jnp.abs(out - ref)))
    # bf16 MXU operands + bf16 inter-stage activations (f32 accumulation / BN stats)
    assert err < 5e-2, f"projection-shortcut mismatch, max abs err = {err}"

    # ---- case 2: identity shortcut (in_planes == planes) ----
    x2 = jax.random.normal(keys[10], (N, planes, H, W), jnp.float32)
    params_id = {
        "w1": 0.1 * jax.random.normal(keys[11], (planes, planes, 3, 3), jnp.float32),
        "g1": 1.0 + 0.1 * jax.random.normal(keys[12], (planes,), jnp.float32),
        "b1": 0.1 * jax.random.normal(keys[13], (planes,), jnp.float32),
        "w2": 0.1 * jax.random.normal(keys[14], (planes, planes, 3, 3), jnp.float32),
        "g2": 1.0 + 0.1 * jax.random.normal(keys[15], (planes,), jnp.float32),
        "b2": 0.1 * jax.random.normal(keys[16], (planes,), jnp.float32),
    }
    out2 = jax.block_until_ready(basic_block_forward(x2, params_id, stride=1))
    ref2 = ref_basic_block(x2, params_id, stride=1)
    err2 = float(jnp.max(jnp.abs(out2 - ref2)))
    assert err2 < 5e-2, f"identity-shortcut mismatch, max abs err = {err2}"

    print("KERNEL_OK")
</pallas_src>

<mosaic_0001>
module attributes {stable_mosaic.version = 11 : i64} {
  func.func @kernel(%arg0: i32, %arg1: memref<1x16x16x128xf32, #tpu.memory_space<vmem>>, %arg2: memref<9x128x128xbf16, #tpu.memory_space<vmem>>, %arg3: memref<128x256xbf16, #tpu.memory_space<vmem>>, %arg4: memref<1x16x16x128xbf16, #tpu.memory_space<vmem>>, %arg5: memref<1x16x16x128xbf16, #tpu.memory_space<vmem>>, %arg6: memref<1x8x128xf32, #tpu.memory_space<vmem>>, %arg7: memref<1x8x128xf32, #tpu.memory_space<vmem>>, %arg8: memref<18x18x128xbf16, #tpu.memory_space<vmem>>) attributes {dimension_semantics = [#tpu.dimension_semantics<parallel>], iteration_bounds = array<i64: 2>, scalar_prefetch = 0 : i64, scratch_operands = 1 : i64, tpu.core_type = #tpu.core_type<tc>, window_params = [{transform_indices = @transform_0, window_bounds = array<i64: 1, 16, 16, 128>}, {pipeline_mode = #tpu.pipeline_mode<synchronous>, transform_indices = @transform_1, window_bounds = array<i64: 9, 128, 128>}, {pipeline_mode = #tpu.pipeline_mode<synchronous>, transform_indices = @transform_2, window_bounds = array<i64: 128, 256>}, {transform_indices = @transform_3, window_bounds = array<i64: 1, 16, 16, 128>}, {transform_indices = @transform_4, window_bounds = array<i64: 1, 16, 16, 128>}, {transform_indices = @transform_5, window_bounds = array<i64: 1, 8, 128>}, {transform_indices = @transform_6, window_bounds = array<i64: 1, 8, 128>}]} {
    %c0 = arith.constant 0 : index
    %c0_0 = arith.constant 0 : index
    %c0_1 = arith.constant 0 : index
    %c0_2 = arith.constant 0 : index
    %0 = vector.load %arg1[%c0, %c0_0, %c0_1, %c0_2] : memref<1x16x16x128xf32, #tpu.memory_space<vmem>>, vector<1x16x16x128xf32>
    %1 = vector.shape_cast %0 : vector<1x16x16x128xf32> to vector<16x16x128xf32>
    %2 = arith.truncf %1 : vector<16x16x128xf32> to vector<16x16x128xbf16>
    %cst = arith.constant 0.000000e+00 : bf16
    %3 = vector.broadcast %cst : bf16 to vector<1x18x128xbf16>
    %cst_3 = arith.constant 0.000000e+00 : bf16
    %4 = vector.broadcast %cst_3 : bf16 to vector<16x1x128xbf16>
    %c0_4 = arith.constant 0 : index
    %c0_5 = arith.constant 0 : index
    %c0_6 = arith.constant 0 : index
    %5 = vector.load %arg8[%c0_4, %c0_5, %c0_6] : memref<18x18x128xbf16, #tpu.memory_space<vmem>>, vector<1x18x128xbf16>
    tpu.vector_store %arg8[%c0_4, %c0_5, %c0_6], %3 {strides = array<i32>} : memref<18x18x128xbf16, #tpu.memory_space<vmem>>, vector<1x18x128xbf16>,
    %c17 = arith.constant 17 : index
    %c0_7 = arith.constant 0 : index
    %c0_8 = arith.constant 0 : index
    %6 = vector.load %arg8[%c17, %c0_7, %c0_8] : memref<18x18x128xbf16, #tpu.memory_space<vmem>>, vector<1x18x128xbf16>
    tpu.vector_store %arg8[%c17, %c0_7, %c0_8], %3 {strides = array<i32>} : memref<18x18x128xbf16, #tpu.memory_space<vmem>>, vector<1x18x128xbf16>,
    %c1 = arith.constant 1 : index
    %c0_9 = arith.constant 0 : index
    %c0_10 = arith.constant 0 : index
    %7 = vector.load %arg8[%c1, %c0_9, %c0_10] : memref<18x18x128xbf16, #tpu.memory_space<vmem>>, vector<16x1x128xbf16>
    tpu.vector_store %arg8[%c1, %c0_9, %c0_10], %4 {strides = array<i32>} : memref<18x18x128xbf16, #tpu.memory_space<vmem>>, vector<16x1x128xbf16>,
    %c1_11 = arith.constant 1 : index
    %c17_12 = arith.constant 17 : index
    %c0_13 = arith.constant 0 : index
    %8 = vector.load %arg8[%c1_11, %c17_12, %c0_13] : memref<18x18x128xbf16, #tpu.memory_space<vmem>>, vector<16x1x128xbf16>
    tpu.vector_store %arg8[%c1_11, %c17_12, %c0_13], %4 {strides = array<i32>} : memref<18x18x128xbf16, #tpu.memory_space<vmem>>, vector<16x1x128xbf16>,
    %c1_14 = arith.constant 1 : index
    %c1_15 = arith.constant 1 : index
    %c0_16 = arith.constant 0 : index
    %9 = vector.load %arg8[%c1_14, %c1_15, %c0_16] : memref<18x18x128xbf16, #tpu.memory_space<vmem>>, vector<16x16x128xbf16>
    tpu.vector_store %arg8[%c1_14, %c1_15, %c0_16], %2 {strides = array<i32>} : memref<18x18x128xbf16, #tpu.memory_space<vmem>>, vector<16x16x128xbf16>,
    %cst_17 = arith.constant 0.000000e+00 : f32
    %10 = vector.broadcast %cst_17 : f32 to vector<256x128xf32>
    %c0_18 = arith.constant 0 : index
    %c0_19 = arith.constant 0 : index
    %c0_20 = arith.constant 0 : index
    %11 = vector.load %arg8[%c0_18, %c0_19, %c0_20] : memref<18x18x128xbf16, #tpu.memory_space<vmem>>, vector<16x16x128xbf16>
    %12 = vector.shape_cast %11 : vector<16x16x128xbf16> to vector<256x128xbf16>
    %c0_21 = arith.constant 0 : index
    %c0_22 = arith.constant 0 : index
    %c0_23 = arith.constant 0 : index
    %13 = vector.load %arg2[%c0_21, %c0_22, %c0_23] : memref<9x128x128xbf16, #tpu.memory_space<vmem>>, vector<1x128x128xbf16>
    %14 = vector.shape_cast %13 : vector<1x128x128xbf16> to vector<128x128xbf16>
    %cst_24 = arith.constant dense<0.000000e+00> : vector<256x128xf32>
    %15 = tpu.matmul %12, %14, %cst_24 {dimension_numbers = #tpu.dot_dimension_numbers<[1], [0], [0], [1], [0, 0, 1, 1], [], []>} : vector<256x128xbf16>, vector<128x128xbf16>, vector<256x128xf32> -> vector<256x128xf32>
    %16 = arith.addf %10, %15 : vector<256x128xf32>
    %c0_25 = arith.constant 0 : index
    %c1_26 = arith.constant 1 : index
    %c0_27 = arith.constant 0 : index
    %17 = vector.load %arg8[%c0_25, %c1_26, %c0_27] : memref<18x18x128xbf16, #tpu.memory_space<vmem>>, vector<16x16x128xbf16>
    %18 = vector.shape_cast %17 : vector<16x16x128xbf16> to vector<256x128xbf16>
    %c1_28 = arith.constant 1 : index
    %c0_29 = arith.constant 0 : index
    %c0_30 = arith.constant 0 : index
    %19 = vector.load %arg2[%c1_28, %c0_29, %c0_30] : memref<9x128x128xbf16, #tpu.memory_space<vmem>>, vector<1x128x128xbf16>
    %20 = vector.shape_cast %19 : vector<1x128x128xbf16> to vector<128x128xbf16>
    %cst_31 = arith.constant dense<0.000000e+00> : vector<256x128xf32>
    %21 = tpu.matmul %18, %20, %cst_31 {dimension_numbers = #tpu.dot_dimension_numbers<[1], [0], [0], [1], [0, 0, 1, 1], [], []>} : vector<256x128xbf16>, vector<128x128xbf16>, vector<256x128xf32> -> vector<256x128xf32>
    %22 = arith.addf %16, %21 : vector<256x128xf32>
    %c0_32 = arith.constant 0 : index
    %c2 = arith.constant 2 : index
    %c0_33 = arith.constant 0 : index
    %23 = vector.load %arg8[%c0_32, %c2, %c0_33] : memref<18x18x128xbf16, #tpu.memory_space<vmem>>, vector<16x16x128xbf16>
    %24 = vector.shape_cast %23 : vector<16x16x128xbf16> to vector<256x128xbf16>
    %c2_34 = arith.constant 2 : index
    %c0_35 = arith.constant 0 : index
    %c0_36 = arith.constant 0 : index
    %25 = vector.load %arg2[%c2_34, %c0_35, %c0_36] : memref<9x128x128xbf16, #tpu.memory_space<vmem>>, vector<1x128x128xbf16>
    %26 = vector.shape_cast %25 : vector<1x128x128xbf16> to vector<128x128xbf16>
    %cst_37 = arith.constant dense<0.000000e+00> : vector<256x128xf32>
    %27 = tpu.matmul %24, %26, %cst_37 {dimension_numbers = #tpu.dot_dimension_numbers<[1], [0], [0], [1], [0, 0, 1, 1], [], []>} : vector<256x128xbf16>, vector<128x128xbf16>, vector<256x128xf32> -> vector<256x128xf32>
    %28 = arith.addf %22, %27 : vector<256x128xf32>
    %c1_38 = arith.constant 1 : index
    %c0_39 = arith.constant 0 : index
    %c0_40 = arith.constant 0 : index
    %29 = vector.load %arg8[%c1_38, %c0_39, %c0_40] : memref<18x18x128xbf16, #tpu.memory_space<vmem>>, vector<16x16x128xbf16>
    %30 = vector.shape_cast %29 : vector<16x16x128xbf16> to vector<256x128xbf16>
    %c3 = arith.constant 3 : index
    %c0_41 = arith.constant 0 : index
    %c0_42 = arith.constant 0 : index
    %31 = vector.load %arg2[%c3, %c0_41, %c0_42] : memref<9x128x128xbf16, #tpu.memory_space<vmem>>, vector<1x128x128xbf16>
    %32 = vector.shape_cast %31 : vector<1x128x128xbf16> to vector<128x128xbf16>
    %cst_43 = arith.constant dense<0.000000e+00> : vector<256x128xf32>
    %33 = tpu.matmul %30, %32, %cst_43 {dimension_numbers = #tpu.dot_dimension_numbers<[1], [0], [0], [1], [0, 0, 1, 1], [], []>} : vector<256x128xbf16>, vector<128x128xbf16>, vector<256x128xf32> -> vector<256x128xf32>
    %34 = arith.addf %28, %33 : vector<256x128xf32>
    %c1_44 = arith.constant 1 : index
    %c2_45 = arith.constant 2 : index
    %c0_46 = arith.constant 0 : index
    %35 = vector.load %arg8[%c1_44, %c2_45, %c0_46] : memref<18x18x128xbf16, #tpu.memory_space<vmem>>, vector<16x16x128xbf16>
    %36 = vector.shape_cast %35 : vector<16x16x128xbf16> to vector<256x128xbf16>
    %c5 = arith.constant 5 : index
    %c0_47 = arith.constant 0 : index
    %c0_48 = arith.constant 0 : index
    %37 = vector.load %arg2[%c5, %c0_47, %c0_48] : memref<9x128x128xbf16, #tpu.memory_space<vmem>>, vector<1x128x128xbf16>
    %38 = vector.shape_cast %37 : vector<1x128x128xbf16> to vector<128x128xbf16>
    %cst_49 = arith.constant dense<0.000000e+00> : vector<256x128xf32>
    %39 = tpu.matmul %36, %38, %cst_49 {dimension_numbers = #tpu.dot_dimension_numbers<[1], [0], [0], [1], [0, 0, 1, 1], [], []>} : vector<256x128xbf16>, vector<128x128xbf16>, vector<256x128xf32> -> vector<256x128xf32>
    %40 = arith.addf %34, %39 : vector<256x128xf32>
    %c2_50 = arith.constant 2 : index
    %c0_51 = arith.constant 0 : index
    %c0_52 = arith.constant 0 : index
    %41 = vector.load %arg8[%c2_50, %c0_51, %c0_52] : memref<18x18x128xbf16, #tpu.memory_space<vmem>>, vector<16x16x128xbf16>
    %42 = vector.shape_cast %41 : vector<16x16x128xbf16> to vector<256x128xbf16>
    %c6 = arith.constant 6 : index
    %c0_53 = arith.constant 0 : index
    %c0_54 = arith.constant 0 : index
    %43 = vector.load %arg2[%c6, %c0_53, %c0_54] : memref<9x128x128xbf16, #tpu.memory_space<vmem>>, vector<1x128x128xbf16>
    %44 = vector.shape_cast %43 : vector<1x128x128xbf16> to vector<128x128xbf16>
    %cst_55 = arith.constant dense<0.000000e+00> : vector<256x128xf32>
    %45 = tpu.matmul %42, %44, %cst_55 {dimension_numbers = #tpu.dot_dimension_numbers<[1], [0], [0], [1], [0, 0, 1, 1], [], []>} : vector<256x128xbf16>, vector<128x128xbf16>, vector<256x128xf32> -> vector<256x128xf32>
    %46 = arith.addf %40, %45 : vector<256x128xf32>
    %c2_56 = arith.constant 2 : index
    %c1_57 = arith.constant 1 : index
    %c0_58 = arith.constant 0 : index
    %47 = vector.load %arg8[%c2_56, %c1_57, %c0_58] : memref<18x18x128xbf16, #tpu.memory_space<vmem>>, vector<16x16x128xbf16>
    %48 = vector.shape_cast %47 : vector<16x16x128xbf16> to vector<256x128xbf16>
    %c7 = arith.constant 7 : index
    %c0_59 = arith.constant 0 : index
    %c0_60 = arith.constant 0 : index
    %49 = vector.load %arg2[%c7, %c0_59, %c0_60] : memref<9x128x128xbf16, #tpu.memory_space<vmem>>, vector<1x128x128xbf16>
    %50 = vector.shape_cast %49 : vector<1x128x128xbf16> to vector<128x128xbf16>
    %cst_61 = arith.constant dense<0.000000e+00> : vector<256x128xf32>
    %51 = tpu.matmul %48, %50, %cst_61 {dimension_numbers = #tpu.dot_dimension_numbers<[1], [0], [0], [1], [0, 0, 1, 1], [], []>} : vector<256x128xbf16>, vector<128x128xbf16>, vector<256x128xf32> -> vector<256x128xf32>
    %52 = arith.addf %46, %51 : vector<256x128xf32>
    %c2_62 = arith.constant 2 : index
    %c2_63 = arith.constant 2 : index
    %c0_64 = arith.constant 0 : index
    %53 = vector.load %arg8[%c2_62, %c2_63, %c0_64] : memref<18x18x128xbf16, #tpu.memory_space<vmem>>, vector<16x16x128xbf16>
    %54 = vector.shape_cast %53 : vector<16x16x128xbf16> to vector<256x128xbf16>
    %c8 = arith.constant 8 : index
    %c0_65 = arith.constant 0 : index
    %c0_66 = arith.constant 0 : index
    %55 = vector.load %arg2[%c8, %c0_65, %c0_66] : memref<9x128x128xbf16, #tpu.memory_space<vmem>>, vector<1x128x128xbf16>
    %56 = vector.shape_cast %55 : vector<1x128x128xbf16> to vector<128x128xbf16>
    %cst_67 = arith.constant dense<0.000000e+00> : vector<256x128xf32>
    %57 = tpu.matmul %54, %56, %cst_67 {dimension_numbers = #tpu.dot_dimension_numbers<[1], [0], [0], [1], [0, 0, 1, 1], [], []>} : vector<256x128xbf16>, vector<128x128xbf16>, vector<256x128xf32> -> vector<256x128xf32>
    %58 = arith.addf %52, %57 : vector<256x128xf32>
    %c1_68 = arith.constant 1 : index
    %c1_69 = arith.constant 1 : index
    %c0_70 = arith.constant 0 : index
    %59 = vector.load %arg8[%c1_68, %c1_69, %c0_70] : memref<18x18x128xbf16, #tpu.memory_space<vmem>>, vector<16x16x128xbf16>
    %60 = vector.shape_cast %59 : vector<16x16x128xbf16> to vector<256x128xbf16>
    %c0_71 = arith.constant 0 : index
    %c0_72 = arith.constant 0 : index
    %61 = vector.load %arg3[%c0_71, %c0_72] : memref<128x256xbf16, #tpu.memory_space<vmem>>, vector<128x256xbf16>
    %cst_73 = arith.constant dense<0.000000e+00> : vector<256x256xf32>
    %62 = tpu.matmul %60, %61, %cst_73 {dimension_numbers = #tpu.dot_dimension_numbers<[1], [0], [0], [1], [0, 0, 1, 1], [], []>} : vector<256x128xbf16>, vector<128x256xbf16>, vector<256x256xf32> -> vector<256x256xf32>
    %63 = vector.extract_strided_slice %62 {offsets = [0, 0], sizes = [256, 128], strides = [1, 1]} : vector<256x256xf32> to vector<256x128xf32>
    %64 = arith.addf %58, %63 : vector<256x128xf32>
    %65 = vector.extract_strided_slice %62 {offsets = [0, 128], sizes = [256, 128], strides = [1, 1]} : vector<256x256xf32> to vector<256x128xf32>
    %66 = vector.shape_cast %65 : vector<256x128xf32> to vector<16x16x128xf32>
    %67 = arith.truncf %66 : vector<16x16x128xf32> to vector<16x16x128xbf16>
    %c0_74 = arith.constant 0 : index
    %c0_75 = arith.constant 0 : index
    %c0_76 = arith.constant 0 : index
    %c0_77 = arith.constant 0 : index
    %68 = vector.load %arg5[%c0_74, %c0_75, %c0_76, %c0_77] : memref<1x16x16x128xbf16, #tpu.memory_space<vmem>>, vector<1x16x16x128xbf16>
    %69 = vector.shape_cast %68 : vector<1x16x16x128xbf16> to vector<16x16x128xbf16>
    %70 = vector.shape_cast %67 : vector<16x16x128xbf16> to vector<1x16x16x128xbf16>
    tpu.vector_store %arg5[%c0_74, %c0_75, %c0_76, %c0_77], %70 {strides = array<i32>} : memref<1x16x16x128xbf16, #tpu.memory_space<vmem>>, vector<1x16x16x128xbf16>,
    %cst_78 = arith.constant dense<0.000000e+00> : vector<128xf32>
    %71 = vector.multi_reduction <add>, %65, %cst_78 [0] : vector<256x128xf32> to vector<128xf32>
    %72 = vector.shape_cast %71 : vector<128xf32> to vector<1x128xf32>
    %73 = arith.mulf %65, %65 : vector<256x128xf32>
    %cst_79 = arith.constant dense<0.000000e+00> : vector<128xf32>
    %74 = vector.multi_reduction <add>, %73, %cst_79 [0] : vector<256x128xf32> to vector<128xf32>
    %75 = vector.shape_cast %74 : vector<128xf32> to vector<1x128xf32>
    %cst_80 = arith.constant 0.000000e+00 : f32
    %76 = vector.broadcast %cst_80 : f32 to vector<6x128xf32>
    %77 = tpu.concatenate %72, %75, %76 in 0 : vector<1x128xf32>, vector<1x128xf32>, vector<6x128xf32> -> vector<8x128xf32>
    %c0_81 = arith.constant 0 : index
    %c0_82 = arith.constant 0 : index
    %c0_83 = arith.constant 0 : index
    %78 = vector.load %arg7[%c0_81, %c0_82, %c0_83] : memref<1x8x128xf32, #tpu.memory_space<vmem>>, vector<1x8x128xf32>
    %79 = vector.shape_cast %78 : vector<1x8x128xf32> to vector<8x128xf32>
    %80 = vector.shape_cast %77 : vector<8x128xf32> to vector<1x8x128xf32>
    tpu.vector_store %arg7[%c0_81, %c0_82, %c0_83], %80 {strides = array<i32>} : memref<1x8x128xf32, #tpu.memory_space<vmem>>, vector<1x8x128xf32>,
    %81 = vector.shape_cast %64 : vector<256x128xf32> to vector<16x16x128xf32>
    %82 = arith.truncf %81 : vector<16x16x128xf32> to vector<16x16x128xbf16>
    %c0_84 = arith.constant 0 : index
    %c0_85 = arith.constant 0 : index
    %c0_86 = arith.constant 0 : index
    %c0_87 = arith.constant 0 : index
    %83 = vector.load %arg4[%c0_84, %c0_85, %c0_86, %c0_87] : memref<1x16x16x128xbf16, #tpu.memory_space<vmem>>, vector<1x16x16x128xbf16>
    %84 = vector.shape_cast %83 : vector<1x16x16x128xbf16> to vector<16x16x128xbf16>
    %85 = vector.shape_cast %82 : vector<16x16x128xbf16> to vector<1x16x16x128xbf16>
    tpu.vector_store %arg4[%c0_84, %c0_85, %c0_86, %c0_87], %85 {strides = array<i32>} : memref<1x16x16x128xbf16, #tpu.memory_space<vmem>>, vector<1x16x16x128xbf16>,
    %cst_88 = arith.constant dense<0.000000e+00> : vector<128xf32>
    %86 = vector.multi_reduction <add>, %64, %cst_88 [0] : vector<256x128xf32> to vector<128xf32>
    %87 = vector.shape_cast %86 : vector<128xf32> to vector<1x128xf32>
    %88 = arith.mulf %64, %64 : vector<256x128xf32>
    %cst_89 = arith.constant dense<0.000000e+00> : vector<128xf32>
    %89 = vector.multi_reduction <add>, %88, %cst_89 [0] : vector<256x128xf32> to vector<128xf32>
    %90 = vector.shape_cast %89 : vector<128xf32> to vector<1x128xf32>
    %cst_90 = arith.constant 0.000000e+00 : f32
    %91 = vector.broadcast %cst_90 : f32 to vector<6x128xf32>
    %92 = tpu.concatenate %87, %90, %91 in 0 : vector<1x128xf32>, vector<1x128xf32>, vector<6x128xf32> -> vector<8x128xf32>
    %c0_91 = arith.constant 0 : index
    %c0_92 = arith.constant 0 : index
    %c0_93 = arith.constant 0 : index
    %93 = vector.load %arg6[%c0_91, %c0_92, %c0_93] : memref<1x8x128xf32, #tpu.memory_space<vmem>>, vector<1x8x128xf32>
    %94 = vector.shape_cast %93 : vector<1x8x128xf32> to vector<8x128xf32>
    %95 = vector.shape_cast %92 : vector<8x128xf32> to vector<1x8x128xf32>
    tpu.vector_store %arg6[%c0_91, %c0_92, %c0_93], %95 {strides = array<i32>} : memref<1x8x128xf32, #tpu.memory_space<vmem>>, vector<1x8x128xf32>,
    return
  }
  func.func @transform_0(%arg0: i32) -> (i32, i32, i32, i32) {
    %c0_i32 = arith.constant 0 : i32
    %c0_i32_0 = arith.constant 0 : i32
    %c0_i32_1 = arith.constant 0 : i32
    %c0_i32_2 = arith.constant 0 : i32
    return %arg0, %c0_i32, %c0_i32_0, %c0_i32_1 : i32, i32, i32, i32
  }
  func.func @transform_1(%arg0: i32) -> (i32, i32, i32) {
    %c0_i32 = arith.constant 0 : i32
    %c0_i32_0 = arith.constant 0 : i32
    %c0_i32_1 = arith.constant 0 : i32
    %c0_i32_2 = arith.constant 0 : i32
    return %c0_i32, %c0_i32_0, %c0_i32_1 : i32, i32, i32
  }
  func.func @transform_2(%arg0: i32) -> (i32, i32) {
    %c0_i32 = arith.constant 0 : i32
    %c0_i32_0 = arith.constant 0 : i32
    %c0_i32_1 = arith.constant 0 : i32
    return %c0_i32, %c0_i32_0 : i32, i32
  }
  func.func @transform_3(%arg0: i32) -> (i32, i32, i32, i32) {
    %c0_i32 = arith.constant 0 : i32
    %c0_i32_0 = arith.constant 0 : i32
    %c0_i32_1 = arith.constant 0 : i32
    %c0_i32_2 = arith.constant 0 : i32
    return %arg0, %c0_i32, %c0_i32_0, %c0_i32_1 : i32, i32, i32, i32
  }
  func.func @transform_4(%arg0: i32) -> (i32, i32, i32, i32) {
    %c0_i32 = arith.constant 0 : i32
    %c0_i32_0 = arith.constant 0 : i32
    %c0_i32_1 = arith.constant 0 : i32
    %c0_i32_2 = arith.constant 0 : i32
    return %arg0, %c0_i32, %c0_i32_0, %c0_i32_1 : i32, i32, i32, i32
  }
  func.func @transform_5(%arg0: i32) -> (i32, i32, i32) {
    %c0_i32 = arith.constant 0 : i32
    %c0_i32_0 = arith.constant 0 : i32
    %c0_i32_1 = arith.constant 0 : i32
    return %arg0, %c0_i32, %c0_i32_0 : i32, i32, i32
  }
  func.func @transform_6(%arg0: i32) -> (i32, i32, i32) {
    %c0_i32 = arith.constant 0 : i32
    %c0_i32_0 = arith.constant 0 : i32
    %c0_i32_1 = arith.constant 0 : i32
    return %arg0, %c0_i32, %c0_i32_0 : i32, i32, i32
  }
}

</mosaic_0001>

<bundles_post_ra>
// kernel: tpu_custom_call.1
= control target key start
LH: loop header
LB: loop body
LE: loop exit
PB: predicated region body
PF: predicated region fallthrough
CT: control target
= control target key end

     0   :  { %s8924_s0 = inlined_call_operand.hbm [shape: f32[2,16,16,128], index: 0, kind: input, shape index: {}]   ;;  %s8925_s1 = inlined_call_operand.hbm [shape: bf16[9,128,128], index: 1, kind: input, shape index: {}]   ;;  %s8926_s2 = inlined_call_operand.hbm [shape: bf16[128,256], index: 2, kind: input, shape index: {}]   ;;  %s8927_s3 = inlined_call_operand.hbm [shape: bf16[2,16,16,128], index: 3, kind: output, shape index: {0}]   ;;  %s8928_s4 = inlined_call_operand.hbm [shape: bf16[2,16,16,128], index: 4, kind: output, shape index: {1}]   ;;  %s8929_s5 = inlined_call_operand.hbm [shape: f32[2,8,128], index: 5, kind: output, shape index: {2}]   ;;  %s8930_s6 = inlined_call_operand.hbm [shape: f32[2,8,128], index: 6, kind: output, shape index: {3}]  }
   0x1   :  { %8938 = sst [smem:[#allocation34_spill]] %s8924_s0 }
   0x2   :  { %8939 = sst [smem:[#allocation35_spill]] %s8925_s1 }
   0x3   :  { %12 = vsyncpa [#allocation4], 0 }
   0x4   :  { %14 = vsyncpa [#allocation4 + $0x1], 0 }
   0x5   :  { %15 = vsyncpa [#allocation7], 0 }
   0x6   :  { %16 = vsyncpa [#allocation5], 0 }
   0x7   :  { %18 = vsyncpa [#allocation5 + $0x1], 0 }
   0x8   :  { %19 = vsyncpa [#allocation11], 0 }
   0x9   :  { %21 = vsyncpa [#allocation11 + $0x1], 0 }
   0xa   :  { %22 = vsyncpa [#allocation14], 0 }
   0xb   :  { %24 = vsyncpa [#allocation14 + $0x1], 0  ;;  %s7203_s21 = smov 0   ;;  %s7205_s22 = smov 0  }
   0xc   :  { %s7207_s23 = smov 0   ;;  %s7209_s24 = smov 0  }
   0xd LB: > { %s7224_s25 = sadd.s32 4294967295, %s7157_s24   ;;  %s8931_s26 = sadd.s32 4294967294, %s7157_s24   ;;  %s7157_s24 = sphi %s7209_s24, %s9002_s24   ;;  %s7153_s23 = sphi %s7207_s23, %s9001_s23   ;;  %s7149_s22 = sphi %s7205_s22, %s9000_s22   ;;  %s7145_s21 = sphi %s7203_s21, %s8999_s21  }
   0xe   : > { %p50_p0 = scmp.ne.s32.totalorder %s7149_s22, %s7145_s21  ;;  %p51_p1 = scmp.eq.s32.totalorder %s7224_s25, 0 }
   0xf   : > { %p116_p2 = scmp.eq.s32.totalorder %s7224_s25, 1  ;;  %p122_p3 = scmp.eq.s32.totalorder %s8931_s26, 1 }
  0x10   : > { %p7235_p4 = por %p51_p1, %p50_p0  ;;  %p5836_p5 = scmp.ge.s32.totalorder %s7157_s24, 1 }
  0x11   : > { %p7240_p6 = por %p122_p3, %p50_p0  ;;  %p207_p7 = scmp.lt.s32.totalorder %s7157_s24, 3 }
  0x12   : > { %s8942_s1 = sld [smem:[#allocation35_spill]]  ;;  %s7159_s9 = smov [#allocation6]  }
  0x13   : > { %p7248_p8 = pnand %p5836_p5, %p207_p7  ;;  %s220_s10 = sshll.u32 %s7159_s9, 4  ;;  %s221_s10 = int_to_ptr.vmem [resolvable:$true] %s220_s10 }
  0x14   : > { %s232_s13 = sshll.u32 %s8926_s2, 4  ;;  %s7160_s14 = smov 64   ;;  %s233_s13 = int_to_ptr.hbm [resolvable:$true] %s232_s13 }
  0x15   : > { %p6778_p9 = pneg %p7248_p8  ;;  %s7161_s15 = smov 4  }
  0x16   : > { %s7162_s16 = smov [#allocation8]   ;;  %s8932_s18 = smov 128  }
  0x17   : > { %p6779_p10 = pnand %p6778_p9, %p51_p1  ;;  %s234_s17 = sshll.u32 %s7162_s16, 4  ;;  %s235_s17 = int_to_ptr.vmem [resolvable:$true] %s234_s17 }
  0x18   : > { %s218_s7 = sshll.u32 %s8942_s1, 4  ;;  %s8933_s19 = smov 8   ;;  %s219_s7 = int_to_ptr.hbm [resolvable:$true] %s218_s7 }
  0x19   : > { %6781 = dma.hbm_to_vmem [thread:$0]  (!%p6779_p10), %s219_s7, 9216, %s221_s10, [#allocation7], %s7160_s14, %s7160_s14, %s7161_s15  }
  0x1a   : > { %6784 = dma.hbm_to_vmem [thread:$0]  (!%p6779_p10), %s233_s13, 2048, %s235_s17, [#allocation7], %s8932_s18, %s8932_s18, %s8933_s19  }
  0x1b   : > { %s7264_s20 = sadd.s32 1, %s7157_s24   ;;  %s37_s30 = sadd.s32 1, %s7153_s23 }
  0x1c   : > { %s34_s29 = ssub.s32 %s7157_s24, %s7264_s20  ;;  %p44_p13 = scmp.ne.s32.totalorder %s7153_s23, %s7149_s22 }
  0x1d   : > { %p35_p12 = scmp.eq.s32.totalorder %s34_s29, 0  ;;  %p45_p0 = scmp.eq.s32.totalorder %s7157_s24, 0 }
  0x1e   : > { %p7277_p5 = por %p116_p2, %p44_p13  ;;  %p6804_p7 = scmp.lt.s32.totalorder %s7157_s24, 2 }
  0x1f   : > { %s7273_s7 = scalar_select %p35_p12, %s7153_s23, %s37_s30  }
  0x20   : > { %p46_p3 = por %p45_p0, %p44_p13  ;;  %s248_s10 = sand.u32 1, %s7153_s23  }
  0x21   : > { %s5840_s11 = sshll.u32 %s248_s10, 8  ;;  %s6423_s12 = sshll.u32 %s7157_s24, 8 }
  0x22   : > { %s8945_s0 = sld [smem:[#allocation34_spill]]  ;;  %s252_s16 = scalar_lea.vmem [#allocation3], %s5840_s11 }
  0x23   : > { %s260_s17 = sshll.u32 %s252_s16, 4  ;;  %p7287_p9 = pnand %p6804_p7, %p46_p3  ;;  %s261_s17 = int_to_ptr.vmem [resolvable:$true] %s260_s17 }
  0x24   : > { %s249_s26 = scalar_lea.sflag [#allocation4], %s248_s10 }
  0x25   : > { %p6969_p10 = pneg %p7287_p9 }
  0x28   : > { %s257_s15 = scalar_lea.hbm %s8945_s0, %s6423_s12  ;;  %s6972_s13 = scalar_lea.hbm %s8945_s0, 512 }
  0x29   : > { %s258_s29 = sshll.u32 %s257_s15, 4  ;;  %s259_s29 = int_to_ptr.hbm [resolvable:$true] %s258_s29 }
  0x2a   : > { %s6965_s18 = sshra.s32 %s259_s29, 4  ;;  %s6966_s18 = int_to_ptr.hbm [resolvable:$true] %s6965_s18 }
  0x2b   : > { %s6967_s19 = scalar_lea.hbm %s6966_s18, 256  ;;  %p6973_p0 = scmp.lt.s32.totalorder %s6966_s18, %s8945_s0 }
  0x2c   : > { %p6968_p2 = scmp.ne.s32.totalorder %s6966_s18, %s6967_s19  ;;  %p6974_p3 = scmp.lt.s32.totalorder %s6972_s13, %s6967_s19 }
  0x2e   : > { %p6970_p12 = pnand %p6969_p10, %p6968_p2  ;;  %p6975_p7 = por %p6974_p3, %p6973_p0 }
  0x30   : > { %p6971_p13 = pneg %p6970_p12 }
  0x32   : > { %p6976_p11 = pnand %p6975_p7, %p6971_p13 }
  0x34   : > { %6979 = shalt.err (!%p6976_p11)
}
  0x35   : > { %s8947_s10 = smov 8   ;;  %s8948_s16 = smov 128  }
  0x36   : > { %6788 = dma.hbm_to_vmem [thread:$0]  (!%p7287_p9), %s259_s29, 4096, %s261_s17, %s249_s26, %s8948_s16, %s8948_s16, %s8947_s10  }
  0x37   : > { %272 = sbr.rel (%p7248_p8) target bundleno = 919 (0x397), region = 32 }
  0x3c   : > { %s7307_s12 = sand.u32 1, %s7149_s22  }
  0x3d   : > { %s5844_s18 = sshll.u32 %s7307_s12, 8  ;;  %s275_s19 = scalar_lea.sflag [#allocation4], %s7307_s12 }
  0x3e   : > { %s7311_s11 = scalar_lea.vmem [#allocation3], %s5844_s18 }
  0x3f   : > { %7124 = dma.done.wait (%p7235_p4), %s275_s19, 4096  }
  0x40   : > { %7126 = vsyncadd (%p7235_p4), %s275_s19, 4294963200 }
  0x41   : > { %7128 = dma.done.wait (%p51_p1), [#allocation7], 11264  }
  0x42   : > { %7130 = vsyncadd (%p51_p1), [#allocation7], 4294956032  ;;  %v7165_v0 = vmov 0   ;;  %vm406_vm0 = vcmask 1040384   ;;  %v6455_v1 = vld [vmem:[#allocation6 + $0x78] sm:$0xff]  ;;  %v6454_v3 = vld [vmem:[#allocation6 + $0x70] sm:$0xff] }
  0x43   : > { %398 = vst [vmem:[#allocation2] sm:$0xf] %v7165_v0  ;;  %v6447_v2 = vld [vmem:[#allocation6 + $0x38] sm:$0xff]  ;;  %vm407_vm1 = vsmask.f32 256  ;;  %6744 = vmatpush.bf16.msra.mxu2 %v6455_v1  ;;  %v6446_v4 = vld [vmem:[#allocation6 + $0x30] sm:$0xff]  ;;  %1523 = vmatpush.bf16.msra.mxu0 %v6455_v1 }
  0x44   : > { %399 = vst [vmem:[#allocation2 + $0x4] sm:$0xf] %v7165_v0  ;;  %vm457_vm2 = vsmask.f32 7938  ;;  %1756 = vmatpush.bf16.msra.mxu1 %v6447_v2  ;;  %6752 = vmatpush.bf16.msra.mxu3 %v6447_v2  ;;  %vm7323_vm3 = vmand %vm406_vm0, %vm407_vm1  ;;  %v6453_v7 = vld [vmem:[#allocation6 + $0x68] sm:$0xff]  ;;  %v348_v8 = vld [vmem:[%s7311_s11 + $0x70] sm:$0xff] }
  0x45   : > { %400 = vst [vmem:[#allocation2 + $0x8] sm:$0x1] %v7165_v0  ;;  %vm7329_vm4 = vmand %vm406_vm0, %vm457_vm2  ;;  %v349_v9 = vld [vmem:[%s7311_s11 + $0x78] sm:$0xff]  ;;  %vm507_vm5 = vsmask.f32 4368  ;;  %v6445_v10 = vld [vmem:[#allocation6 + $0x28] sm:$0xff]  ;;  %v380_v11 = vpack.c.bf16 %v348_v8, %v348_v8 }
  0x46   : > { %402 = vst [vmem:[#allocation2 + $0xcc] sm:$0xf] %v7165_v0  ;;  %v381_v12 = vpack.c.bf16 %v349_v9, %v349_v9  ;;  %v430_v13 = vld [vmem:[#allocation2 + $0x60] sm:$0x1]  ;;  %v480_v14 = vld [vmem:[#allocation2 + $0x68] sm:$0x1]  ;;  %vm7341_vm9 = vmor %vm407_vm1, %vm507_vm5 }
  0x47   : > { %403 = vst [vmem:[#allocation2 + $0xd0] sm:$0xf] %v7165_v0  ;;  %6745 = vmatpush.bf16.msra.mxu2 %v6454_v3  ;;  %vm829_vm6 = vcmask 1043456   ;;  %1524 = vmatpush.bf16.msra.mxu0 %v6454_v3  ;;  %v431_v15 = vsel %vm7323_vm3, 0, %v430_v13  ;;  %v481_v16 = vsel %vm7329_vm4, 0, %v480_v14  ;;  %v629_v18 = vshrl.u32 %v380_v11, 16 }
  0x48   : > { %404 = vst [vmem:[#allocation2 + $0xd4] sm:$0x1] %v7165_v0  ;;  %1757 = vmatpush.bf16.msra.mxu1 %v6446_v4  ;;  %6753 = vmatpush.bf16.msra.mxu3 %v6446_v4  ;;  %vm1007_vm7 = vsmask.f32 3328  ;;  %vm1008_vm8 = vsmask.f32 7440  ;;  %vm7349_vm10 = vmand %vm829_vm6, %vm457_vm2 }
  0x49   : > { %432 = vst [vmem:[#allocation2 + $0x60] sm:$0x1] %v431_v15  ;;  %v632_v19 = vshll.u32 %v380_v11, 16  ;;  %v637_v20 = vshrl.u32 %v381_v12, 16  ;;  %v640_v21 = vshll.u32 %v381_v12, 16  ;;  %v6452_v24 = vld [vmem:[#allocation6 + $0x60] sm:$0xff]  ;;  %vm7367_vm11 = vmor %vm1007_vm7, %vm1008_vm8 }
  0x4a   : > { %v943_v17 = vld [vmem:[#allocation2] sm:$0xf]  ;;  %482 = vst [vmem:[#allocation2 + $0x68] sm:$0x1] %v481_v16  ;;  %v6444_v25 = vld [vmem:[#allocation6 + $0x20] sm:$0xff]  ;;  %v631_v26 = vrot.slane %v629_v18, 7 }
  0x4b   : > { %v944_v22 = vld [vmem:[#allocation2 + $0x4] sm:$0xf]  ;;  %6746 = vmatpush.bf16.msra.mxu2 %v6453_v7  ;;  %v639_v27 = vrot.slane %v637_v20, 7  ;;  %v1011_v28 = vshrl.u32 %v943_v17, 16  ;;  %v1014_v29 = vshll.u32 %v943_v17, 16  ;;  %1525 = vmatpush.bf16.msra.mxu0 %v6453_v7  ;;  %v350_v34 = vld [vmem:[%s7311_s11 + $0x80] sm:$0xff] }
  0x4c   : > { %v991_v23 = vld [vmem:[#allocation2 + $0x8] sm:$0x1]  ;;  %1758 = vmatpush.bf16.msra.mxu1 %v6445_v10  ;;  %6754 = vmatpush.bf16.msra.mxu3 %v6445_v10  ;;  %v1020_v31 = vshll.u32 %v944_v22, 16  ;;  %v1024_v32 = vshrl.u32 %v944_v22, 16  ;;  %v351_v35 = vld [vmem:[%s7311_s11 + $0x88] sm:$0xff]  ;;  %v634_v36 = vor.u32 %v632_v19, %v631_v26  ;;  %v635_v37 = vrot.slane %v631_v26, 4 }
  0x4d   : > { %v1030_v33 = vshll.u32 %v991_v23, 16  ;;  %v642_v38 = vor.u32 %v640_v21, %v639_v27  ;;  %v644_v39 = vrot.slane %v639_v27, 4  ;;  %v433_v40 = vld [vmem:[#allocation2 + $0x6c] sm:$0x1]  ;;  %v483_v41 = vld [vmem:[#allocation2 + $0x74] sm:$0x1]  ;;  %v382_v52 = vpack.c.bf16 %v350_v34, %v350_v34 }
  0x4e   : > { %v6451_v42 = vld [vmem:[#allocation6 + $0x58] sm:$0xff]  ;;  %v1013_v44 = vrot.slane %v1011_v28, 4  ;;  %v1016_v45 = vrot.slane %v1014_v29, 5  ;;  %v1022_v46 = vrot.slane %v1020_v31, 5  ;;  %v1026_v47 = vrot.slane %v1024_v32, 4  ;;  %v334_v48 = vld [vmem:[%s7311_s11] sm:$0xff] }
  0x4f   : > { %6747 = vmatpush.bf16.msra.mxu2 %v6452_v24  ;;  %v6443_v49 = vld [vmem:[#allocation6 + $0x18] sm:$0xff]  ;;  %v643_v50 = vsel %vm7341_vm9, %v635_v37, %v642_v38  ;;  %v1032_v51 = vrot.slane %v1030_v33, 5  ;;  %v383_v53 = vpack.c.bf16 %v351_v35, %v351_v35  ;;  %v335_v54 = vld [vmem:[%s7311_s11 + $0x8] sm:$0xff]  ;;  %v409_v55 = vld [vmem:[#allocation2 + $0xc] sm:$0x1]  ;;  %1526 = vmatpush.bf16.msra.mxu0 %v6452_v24  ;;  %v434_v59 = vsel %vm7323_vm3, 0, %v433_v40 }
  0x50   : > { %1759 = vmatpush.bf16.msra.mxu1 %v6444_v25  ;;  %6755 = vmatpush.bf16.msra.mxu3 %v6444_v25  ;;  %v880_v56 = vld [vmem:[#allocation2 + $0x60] sm:$0xf]  ;;  %883 = vst [vmem:[#allocation2 + $0x64] sm:$0xf] %v643_v50  ;;  %v1017_v57 = vor.u32 %v1016_v45, %v1013_v44  ;;  %v1027_v58 = vor.u32 %v1026_v47, %v1022_v46  ;;  %v484_v60 = vsel %vm7329_vm4, 0, %v483_v41  ;;  %v646_v63 = vshrl.u32 %v382_v52, 16 }
  0x51   : > { %v881_v61 = vsel %vm7349_vm10, %v634_v36, %v880_v56  ;;  %v884_v62 = vld [vmem:[#allocation2 + $0x68] sm:$0x1]  ;;  %435 = vst [vmem:[#allocation2 + $0x6c] sm:$0x1] %v434_v59  ;;  %v649_v0 = vshll.u32 %v382_v52, 16  ;;  %v366_v1 = vpack.c.bf16 %v334_v48, %v334_v48  ;;  %v654_v8 = vshrl.u32 %v383_v53, 16 }
  0x52   : > { %v6450_v2 = vld [vmem:[#allocation6 + $0x50] sm:$0xff]  ;;  %882 = vst [vmem:[#allocation2 + $0x60] sm:$0xf] %v881_v61  ;;  %v885_v3 = vsel %vm7323_vm3, %v644_v39, %v884_v62  ;;  %v1018_v4 = vrot.slane %v1017_v57, 4  ;;  %v1028_v7 = vrot.slane %v1027_v58, 4  ;;  %v648_v11 = vrot.slane %v646_v63, 7 }
  0x53   : > { %6748 = vmatpush.bf16.msra.mxu2 %v6451_v42  ;;  %v6442_v9 = vld [vmem:[#allocation6 + $0x10] sm:$0xff]  ;;  %886 = vst [vmem:[#allocation2 + $0x68] sm:$0x1] %v885_v3  ;;  %v657_v12 = vshll.u32 %v383_v53, 16  ;;  %v7371_v13 = vpack.c.bf16 %v335_v54, %v335_v54  ;;  %v410_v14 = vsel %vm7323_vm3, 0, %v409_v55  ;;  %1527 = vmatpush.bf16.msra.mxu0 %v6451_v42  ;;  %v7379_v17 = vrot.slane %v654_v8, 7 }
  0x54   : > { %1760 = vmatpush.bf16.msra.mxu1 %v6443_v49  ;;  %6756 = vmatpush.bf16.msra.mxu3 %v6443_v49  ;;  %v1023_v15 = vsel %vm7367_vm11, %v1018_v4, %v1022_v46  ;;  %v1033_v16 = vsel %vm7367_vm11, %v1028_v7, %v1032_v51  ;;  %485 = vst [vmem:[#allocation2 + $0x74] sm:$0x1] %v484_v60  ;;  %v510_v18 = vshrl.u32 %v366_v1, 16  ;;  %v459_v19 = vld [vmem:[#allocation2 + $0x14] sm:$0x1]  ;;  %v6449_v20 = vld [vmem:[#allocation6 + $0x48] sm:$0xff] }
  0x55   : > { %v6441_v21 = vld [vmem:[#allocation6 + $0x8] sm:$0xff]  ;;  %v7381_v22 = vunpack.c.l.b16 %v1023_v15  ;;  %v7383_v23 = vunpack.c.l.b16 %v1033_v16  ;;  %v651_v24 = vor.u32 %v649_v0, %v648_v11  ;;  %v652_v25 = vrot.slane %v648_v11, 4  ;;  %411 = vst [vmem:[#allocation2 + $0xc] sm:$0x1] %v410_v14  ;;  %v352_v31 = vld [vmem:[%s7311_s11 + $0x90] sm:$0xff]  ;;  %v353_v32 = vld [vmem:[%s7311_s11 + $0x98] sm:$0xff] }
  0x56   : > { %v659_v26 = vor.u32 %v657_v12, %v7379_v17  ;;  %v661_v27 = vrot.slane %v7379_v17, 4  ;;  %v7387_v28 = vrot.slane %v510_v18, 7  ;;  %v513_v29 = vshll.u32 %v366_v1, 16  ;;  %v336_v33 = vld [vmem:[%s7311_s11 + $0x10] sm:$0xff]  ;;  %v337_v39 = vld [vmem:[%s7311_s11 + $0x18] sm:$0xff]  ;;  %v6448_v46 = vld [vmem:[#allocation6 + $0x40] sm:$0xff] }
  0x57   : > { %6749 = vmatpush.bf16.msra.mxu2 %v6450_v2  ;;  %v960_v34 = vld [vmem:[#allocation2 + $0x64] sm:$0xf]  ;;  %v1443_v35 = vpack.c.b16 %v7383_v23, %v7381_v22  ;;  %v518_v36 = vshrl.u32 %v7371_v13, 16  ;;  %v521_v37 = vshll.u32 %v7371_v13, 16  ;;  %v460_v38 = vsel %vm7329_vm4, 0, %v459_v19  ;;  %1528 = vmatpush.bf16.msra.mxu0 %v6450_v2  ;;  %v6440_v47 = vld [vmem:[#allocation6] sm:$0xff] }
  0x58   : > { %1761 = vmatpush.bf16.msra.mxu1 %v6442_v9  ;;  %6757 = vmatpush.bf16.msra.mxu3 %v6442_v9  ;;  %v1212_v40 = vshll.u32 %v960_v34, 16  ;;  %v1216_v41 = vshrl.u32 %v960_v34, 16  ;;  %v660_v42 = vsel %vm7341_vm9, %v652_v25, %v659_v26  ;;  %v887_v44 = vld [vmem:[#allocation2 + $0x6c] sm:$0xf]  ;;  %v515_v45 = vor.u32 %v513_v29, %v7387_v28  ;;  %461 = vst [vmem:[#allocation2 + $0x14] sm:$0x1] %v460_v38 }
  0x59   : > { %v959_v48 = vld [vmem:[#allocation2 + $0x60] sm:$0xf]  ;;  %v888_v49 = vsel %vm7349_vm10, %v651_v24, %v887_v44  ;;  %890 = vst [vmem:[#allocation2 + $0x70] sm:$0xf] %v660_v42  ;;  %v516_v50 = vrot.slane %v7387_v28, 4  ;;  %v7405_v51 = vpack.c.bf16 %v352_v31, %v352_v31  ;;  %v7407_v52 = vpack.c.bf16 %v353_v32, %v353_v32  ;;  %v6463_v61 = vld [vmem:[#allocation6 + $0xb8] sm:$0xff] }
  0x5a   : > { %v436_v53 = vld [vmem:[#allocation2 + $0x78] sm:$0x1]  ;;  %v7409_v54 = vld [vmem:[#allocation2 + $0x80] sm:$0x1]  ;;  %v999_v55 = vld [vmem:[#allocation2 + $0x68] sm:$0x1]  ;;  %v7413_v0 = vpack.c.bf16 %v336_v33, %v336_v33  ;;  %v7415_v1 = vpack.c.bf16 %v337_v39, %v337_v39 }
  0x5b   : > { %v1203_v56 = vshrl.u32 %v959_v48, 16  ;;  %v1206_v57 = vshll.u32 %v959_v48, 16  ;;  %v7411_v58 = vrot.slane %v1212_v40, 5  ;;  %v1218_v59 = vrot.slane %v1216_v41, 4  ;;  %6750 = vmatpush.bf16.msra.mxu2 %v6449_v20  ;;  %889 = vst [vmem:[#allocation2 + $0x6c] sm:$0xf] %v888_v49  ;;  %1529 = vmatpush.bf16.msra.mxu0 %v6449_v20 }
  0x5c   : > { %1762 = vmatpush.bf16.msra.mxu1 %v6441_v21  ;;  %v1222_v60 = vshll.u32 %v999_v55, 16  ;;  %v891_v62 = vld [vmem:[#allocation2 + $0x74] sm:$0x1]  ;;  %v520_v63 = vrot.slane %v518_v36, 7  ;;  %6758 = vmatpush.bf16.msra.mxu3 %v6441_v21  ;;  %v6424_v7 = vld [vmem:[#allocation2] sm:$0xff]  ;;  %v354_v18 = vld [vmem:[%s7311_s11 + $0xa0] sm:$0xff] }
  0x5d   : > { %v1205_v2 = vrot.slane %v1203_v56, 4  ;;  %v1208_v3 = vrot.slane %v1206_v57, 5  ;;  %v1219_v4 = vor.u32 %v1218_v59, %v7411_v58  ;;  %v6487_v8 = vld [vmem:[#allocation6 + $0xf8] sm:$0xff]  ;;  %v892_v11 = vsel %vm7323_vm3, %v661_v27, %v891_v62  ;;  %v831_v12 = vld [vmem:[#allocation2 + $0xc] sm:$0xf]  ;;  %v6432_v14 = vld [vmem:[#allocation2 + $0x60] sm:$0xff] }
  0x5e   : > { %v6495_v9 = vld [vmem:[#allocation6 + $0x178] sm:$0xff]  ;;  %v1224_v13 = vrot.slane %v1222_v60, 5  ;;  %893 = vst [vmem:[#allocation2 + $0x74] sm:$0x1] %v892_v11  ;;  %v523_v15 = vor.u32 %v521_v37, %v520_v63  ;;  %v525_v16 = vrot.slane %v520_v63, 4  ;;  %v832_v17 = vsel %vm7349_vm10, %v515_v45, %v831_v12  ;;  %v355_v26 = vld [vmem:[%s7311_s11 + $0xa8] sm:$0xff] }
  0x5f   : > { %v1209_v19 = vor.u32 %v1208_v3, %v1205_v2  ;;  %v1220_v20 = vrot.slane %v1219_v4, 4  ;;  %v6519_v21 = vld [vmem:[#allocation6 + $0x1b8] sm:$0xff]  ;;  %833 = vst [vmem:[#allocation2 + $0xc] sm:$0xf] %v832_v17  ;;  %v437_v24 = vsel %vm7323_vm3, 0, %v436_v53  ;;  %v487_v25 = vsel %vm7329_vm4, 0, %v7409_v54  ;;  %6751 = vmatpush.bf16.msra.mxu2 %v6448_v46  ;;  %1530 = vmatpush.bf16.msra.mxu0 %v6448_v46 }
  0x60   : > { %1763 = vmatpush.bf16.msra.mxu1 %v6440_v47  ;;  %v524_v27 = vsel %vm7341_vm9, %v516_v50, %v523_v15  ;;  %v6462_v28 = vld [vmem:[#allocation6 + $0xb0] sm:$0xff]  ;;  %v835_v29 = vld [vmem:[#allocation2 + $0x14] sm:$0x1]  ;;  %438 = vst [vmem:[#allocation2 + $0x78] sm:$0x1] %v437_v24  ;;  %v663_v31 = vshrl.u32 %v7405_v51, 16  ;;  %v7433_v33 = vpack.c.bf16 %v354_v18, %v354_v18  ;;  %6759 = vmatpush.bf16.msra.mxu3 %v6440_v47 }
  0x61   : > { %v666_v32 = vshll.u32 %v7405_v51, 16  ;;  %v1210_v34 = vrot.slane %v1209_v19, 4  ;;  %v1225_v36 = vsel %vm7367_vm11, %v1220_v20, %v1224_v13  ;;  %v962_v37 = vld [vmem:[#allocation2 + $0x70] sm:$0xf]  ;;  %834 = vst [vmem:[#allocation2 + $0x10] sm:$0xf] %v524_v27  ;;  %v836_v38 = vsel %vm7323_vm3, %v525_v16, %v835_v29 }
  0x62   : > { %v671_v39 = vshrl.u32 %v7407_v52, 16  ;;  %v1428_v40 = vunpack.c.l.b16 %v1225_v36  ;;  %v1236_v41 = vshll.u32 %v962_v37, 16  ;;  %v1240_v42 = vshrl.u32 %v962_v37, 16  ;;  %837 = vst [vmem:[#allocation2 + $0x14] sm:$0x1] %v836_v38  ;;  %v6486_v44 = vld [vmem:[#allocation6 + $0xf0] sm:$0xff]  ;;  %1531 = vmatmul.bf16.vlgmr.msra.gmra.mxu0 %v1443_v35 }
  0x63   : > { %2137 = vmatpush.bf16.msrb.mxu2 %v6463_v61  ;;  %v665_v45 = vrot.slane %v663_v31, 7  ;;  %v1215_v46 = vsel %vm7367_vm11, %v1210_v34, %v7411_v58  ;;  %1764 = vmatmul.bf16.vlgmr.msra.gmra.mxu1 %v6424_v7  ;;  %v961_v47 = vld [vmem:[#allocation2 + $0x6c] sm:$0xf]  ;;  %488 = vst [vmem:[#allocation2 + $0x80] sm:$0x1] %v487_v25  ;;  %v7445_v50 = vpack.c.bf16 %v355_v26, %v355_v26  ;;  %v674_v61 = vshll.u32 %v7407_v52, 16 }
  0x64   : > { %2451 = vmatpush.bf16.msrb.mxu3 %v6487_v8  ;;  %2909 = vmatpush.bf16.msrb.mxu0 %v6495_v9  ;;  %v6494_v48 = vld [vmem:[#allocation6 + $0x170] sm:$0xff]  ;;  %v7443_v49 = vrot.slane %v671_v39, 7  ;;  %v1427_v51 = vunpack.c.l.b16 %v1215_v46  ;;  %v1227_v53 = vshrl.u32 %v961_v47, 16  ;;  %v1230_v54 = vshll.u32 %v961_v47, 16  ;;  %v412_v9 = vld [vmem:[#allocation2 + $0x18] sm:$0x1] }
  0x65   : > { %1804 = vmatmul.bf16.vlgmr.msra.gmra.mxu3 %v6432_v14  ;;  %v1238_v55 = vrot.slane %v1236_v41, 5  ;;  %3224 = vmatpush.bf16.msrb.mxu1 %v6519_v21  ;;  %v1000_v56 = vld [vmem:[#allocation2 + $0x74] sm:$0x1]  ;;  %v1242_v57 = vrot.slane %v1240_v42, 4  ;;  %v6518_v58 = vld [vmem:[#allocation6 + $0x1b0] sm:$0xff]  ;;  %v668_v59 = vor.u32 %v666_v32, %v665_v45  ;;  %v669_v60 = vrot.slane %v665_v45, 4 }
  0x66   : > { %v1451_v62 = vpack.c.b16 %v1428_v40, %v1427_v51  ;;  %v1229_v63 = vrot.slane %v1227_v53, 4  ;;  %v1232_v2 = vrot.slane %v1230_v54, 5  ;;  %v1246_v3 = vshll.u32 %v1000_v56, 16  ;;  %v945_v4 = vld [vmem:[#allocation2 + $0xc] sm:$0xf]  ;;  %v6461_v15 = vld [vmem:[#allocation6 + $0xa8] sm:$0xff] }
  0x67   : > { %2138 = vmatpush.bf16.msrb.mxu2 %v6462_v28  ;;  %v1243_v22 = vor.u32 %v1242_v57, %v1238_v55  ;;  %v1035_v23 = vshrl.u32 %v945_v4, 16  ;;  %v1038_v35 = vshll.u32 %v945_v4, 16  ;;  %v676_v7 = vor.u32 %v674_v61, %v7443_v49  ;;  %v894_v8 = vld [vmem:[#allocation2 + $0x78] sm:$0xf]  ;;  %v462_v27 = vld [vmem:[#allocation2 + $0x20] sm:$0x1] }
  0x68   : > { %2452 = vmatpush.bf16.msrb.mxu3 %v6486_v44  ;;  %2910 = vmatpush.bf16.msrb.mxu0 %v6494_v48  ;;  %v1233_v11 = vor.u32 %v1232_v2, %v1229_v63  ;;  %v1248_v12 = vrot.slane %v1246_v3, 5  ;;  %v946_v13 = vld [vmem:[#allocation2 + $0x10] sm:$0xf]  ;;  %v678_v52 = vrot.slane %v7443_v49, 4  ;;  %v895_v14 = vsel %vm7349_vm10, %v668_v59, %v894_v8  ;;  %v439_v36 = vld [vmem:[#allocation2 + $0x84] sm:$0x1] }
  0x69   : > { %1571 = vmatmul.bf16.vlgmr.msra.gmra.mxu2 %v1451_v62  ;;  %v1244_v16 = vrot.slane %v1243_v22, 4  ;;  %v992_v17 = vld [vmem:[#allocation2 + $0x14] sm:$0x1]  ;;  %v1037_v18 = vrot.slane %v1035_v23, 4  ;;  %v1040_v19 = vrot.slane %v1038_v35, 5  ;;  %v1044_v20 = vshll.u32 %v946_v13, 16  ;;  %3225 = vmatpush.bf16.msrb.mxu1 %v6518_v58 }
  0x6a   : > { %v1234_v21 = vrot.slane %v1233_v11, 4  ;;  %v1048_v24 = vshrl.u32 %v946_v13, 16  ;;  %v1054_v25 = vshll.u32 %v992_v17, 16  ;;  %v677_v26 = vsel %vm7341_vm9, %v669_v60, %v676_v7  ;;  %896 = vst [vmem:[#allocation2 + $0x78] sm:$0xf] %v895_v14  ;;  %v6485_v41 = vld [vmem:[#allocation6 + $0xe8] sm:$0xff] }
  0x6b   : > { %2139 = vmatpush.bf16.msrb.mxu2 %v6461_v15  ;;  %v1249_v28 = vsel %vm7367_vm11, %v1244_v16, %v1248_v12  ;;  %v1041_v29 = vor.u32 %v1040_v19, %v1037_v18  ;;  %v1046_v31 = vrot.slane %v1044_v20, 5  ;;  %897 = vst [vmem:[#allocation2 + $0x7c] sm:$0xf] %v677_v26  ;;  %v898_v32 = vld [vmem:[#allocation2 + $0x80] sm:$0x1]  ;;  %v413_v34 = vsel %vm7323_vm3, 0, %v412_v9 }
  0x6c   : > { %v1239_v37 = vsel %vm7367_vm11, %v1234_v21, %v1238_v55  ;;  %v7463_v38 = vunpack.c.l.b16 %v1249_v28  ;;  %v1050_v39 = vrot.slane %v1048_v24, 4  ;;  %v1056_v40 = vrot.slane %v1054_v25, 5  ;;  %414 = vst [vmem:[#allocation2 + $0x18] sm:$0x1] %v413_v34  ;;  %v6493_v42 = vld [vmem:[#allocation6 + $0x168] sm:$0xff]  ;;  %2453 = vmatpush.bf16.msrb.mxu3 %v6485_v41  ;;  %v338_v56 = vld [vmem:[%s7311_s11 + $0x20] sm:$0xff] }
  0x6d   : > { %v7465_v44 = vunpack.c.l.b16 %v1239_v37  ;;  %v1042_v45 = vrot.slane %v1041_v29, 4  ;;  %v899_v46 = vsel %vm7323_vm3, %v678_v52, %v898_v32  ;;  %v527_v47 = vshrl.u32 %v7413_v0, 16  ;;  %v6517_v48 = vld [vmem:[#allocation6 + $0x1a8] sm:$0xff]  ;;  %v489_v49 = vld [vmem:[#allocation2 + $0x8c] sm:$0x1]  ;;  %2911 = vmatpush.bf16.msrb.mxu0 %v6493_v42  ;;  %s5847_s26 = sshll.u32 %s7307_s12, 7 }
  0x6e   : > { %v1051_v51 = vor.u32 %v1050_v39, %v1046_v31  ;;  %900 = vst [vmem:[#allocation2 + $0x80] sm:$0x1] %v899_v46  ;;  %v530_v53 = vshll.u32 %v7413_v0, 16  ;;  %v535_v54 = vshrl.u32 %v7415_v1, 16  ;;  %v538_v55 = vshll.u32 %v7415_v1, 16  ;;  %v6425_v58 = vld [vmem:[#allocation2 + $0xc] sm:$0xff]  ;;  %3226 = vmatpush.bf16.msrb.mxu1 %v6517_v48 }
  0x6f   : > { %v1452_v57 = vpack.c.b16 %v7463_v38, %v7465_v44  ;;  %v1047_v59 = vsel %vm7367_vm11, %v1042_v45, %v1046_v31  ;;  %v529_v60 = vrot.slane %v527_v47, 7  ;;  %v463_v61 = vsel %vm7329_vm4, 0, %v462_v27  ;;  %v6433_v0 = vld [vmem:[#allocation2 + $0x6c] sm:$0xff]  ;;  %v339_v13 = vld [vmem:[%s7311_s11 + $0x28] sm:$0xff]  ;;  %v6460_v48 = vld [vmem:[#allocation6 + $0xa0] sm:$0xff]  ;;  %s8486_s27 = scalar_lea.vmem [#allocation10], %s5847_s26 }
  0x70   : > { %v1052_v62 = vrot.slane %v1051_v51, 4  ;;  %v1413_v63 = vunpack.c.l.b16 %v1047_v59  ;;  %v537_v1 = vrot.slane %v535_v54, 7  ;;  %464 = vst [vmem:[#allocation2 + $0x20] sm:$0x1] %v463_v61  ;;  %v440_v2 = vsel %vm7323_vm3, 0, %v439_v36  ;;  %2140 = vmatpush.bf16.msrb.mxu2 %v6460_v48  ;;  %s8544_s8 = scalar_lea.vmem [#allocation9], %s5847_s26 }
  0x71   : > { %v963_v3 = vld [vmem:[#allocation2 + $0x78] sm:$0xf]  ;;  %v532_v4 = vor.u32 %v530_v53, %v529_v60  ;;  %v533_v22 = vrot.slane %v529_v60, 4  ;;  %441 = vst [vmem:[#allocation2 + $0x84] sm:$0x1] %v440_v2  ;;  %v490_v23 = vsel %vm7329_vm4, 0, %v489_v49  ;;  %v7484_v35 = vpack.c.bf16 %v338_v56, %v338_v56 }
  0x72   : > { %v1057_v7 = vsel %vm7367_vm11, %v1052_v62, %v1056_v40  ;;  %v964_v8 = vld [vmem:[#allocation2 + $0x7c] sm:$0xf]  ;;  %v1251_v9 = vshrl.u32 %v963_v3, 16  ;;  %v1254_v11 = vshll.u32 %v963_v3, 16  ;;  %v540_v12 = vor.u32 %v538_v55, %v537_v1  ;;  %491 = vst [vmem:[#allocation2 + $0x8c] sm:$0x1] %v490_v23 }
  0x73   : > { %1769 = vmatmul.bf16.gmra.mxu1 %v6425_v58  ;;  %v1414_v52 = vunpack.c.l.b16 %v1057_v7  ;;  %v1260_v14 = vshll.u32 %v964_v8, 16  ;;  %v1264_v15 = vshrl.u32 %v964_v8, 16  ;;  %v542_v16 = vrot.slane %v537_v1, 4  ;;  %v838_v17 = vld [vmem:[#allocation2 + $0x18] sm:$0xf]  ;;  %v356_v3 = vld [vmem:[%s7311_s11 + $0xb0] sm:$0xff] }
  0x74   : > { %v1253_v18 = vrot.slane %v1251_v9, 4  ;;  %v1256_v19 = vrot.slane %v1254_v11, 5  ;;  %v541_v20 = vsel %vm7341_vm9, %v533_v22, %v540_v12  ;;  %v839_v21 = vsel %vm7349_vm10, %v532_v4, %v838_v17  ;;  %v415_v24 = vld [vmem:[#allocation2 + $0x24] sm:$0x1]  ;;  %v357_v4 = vld [vmem:[%s7311_s11 + $0xb8] sm:$0xff]  ;;  %s6552_s17 = sshll.u32 %s7224_s25, 7 }
  0x75   : > { %1809 = vmatmul.bf16.gmra.mxu3 %v6433_v0  ;;  %v1444_v25 = vpack.c.b16 %v1414_v52, %v1413_v63  ;;  %v1001_v26 = vld [vmem:[#allocation2 + $0x80] sm:$0x1]  ;;  %v1262_v27 = vrot.slane %v1260_v14, 5  ;;  %v1266_v28 = vrot.slane %v1264_v15, 4  ;;  %840 = vst [vmem:[#allocation2 + $0x18] sm:$0xf] %v839_v21  ;;  %v7493_v29 = vpack.c.bf16 %v339_v13, %v339_v13  ;;  %s5615_s13 = scalar_lea.hbm %s8928_s4, %s6552_s17 }
  0x76   : > { %v1257_v31 = vor.u32 %v1256_v19, %v1253_v18  ;;  %v1270_v32 = vshll.u32 %v1001_v26, 16  ;;  %841 = vst [vmem:[#allocation2 + $0x1c] sm:$0xf] %v541_v20  ;;  %v680_v34 = vshrl.u32 %v7433_v33, 16  ;;  %v683_v36 = vshll.u32 %v7433_v33, 16  ;;  %v6434_v52 = vld [vmem:[#allocation2 + $0x78] sm:$0xff] }
  0x77   : > { %1536 = vmatmul.bf16.gmra.mxu0 %v1444_v25  ;;  %v1267_v37 = vor.u32 %v1266_v28, %v1262_v27  ;;  %v842_v38 = vld [vmem:[#allocation2 + $0x20] sm:$0x1]  ;;  %v688_v39 = vshrl.u32 %v7445_v50, 16  ;;  %v691_v40 = vshll.u32 %v7445_v50, 16  ;;  %v416_v41 = vsel %vm7323_vm3, 0, %v415_v24  ;;  %s5576_s14 = sand.u32 1, %s7224_s25  }
  0x78   : > { %v1258_v42 = vrot.slane %v1257_v31, 4  ;;  %v1272_v44 = vrot.slane %v1270_v32, 5  ;;  %v843_v45 = vsel %vm7323_vm3, %v542_v16, %v842_v38  ;;  %v682_v46 = vrot.slane %v680_v34, 7  ;;  %v901_v47 = vld [vmem:[#allocation2 + $0x84] sm:$0xf]  ;;  %v6484_v38 = vld [vmem:[#allocation6 + $0xe0] sm:$0xff] }
  0x79   : > { %1576 = vmatmul.bf16.gmra.mxu2 %v1452_v57  ;;  %v1268_v33 = vrot.slane %v1267_v37, 4  ;;  %844 = vst [vmem:[#allocation2 + $0x20] sm:$0x1] %v843_v45  ;;  %v690_v49 = vrot.slane %v688_v39, 7  ;;  %v544_v51 = vshrl.u32 %v7484_v35, 16  ;;  %v547_v53 = vshll.u32 %v7484_v35, 16  ;;  %2454 = vmatpush.bf16.msrb.mxu3 %v6484_v38 }
  0x7a   : > { %v1263_v50 = vsel %vm7367_vm11, %v1258_v42, %v1262_v27  ;;  %v685_v54 = vor.u32 %v683_v36, %v682_v46  ;;  %v686_v55 = vrot.slane %v682_v46, 4  ;;  %417 = vst [vmem:[#allocation2 + $0x24] sm:$0x1] %v416_v41  ;;  %v552_v56 = vshrl.u32 %v7493_v29, 16  ;;  %v905_v61 = vld [vmem:[#allocation2 + $0x8c] sm:$0x1] }
  0x7b   : > { %v1273_v57 = vsel %vm7367_vm11, %v1268_v33, %v1272_v44  ;;  %v7510_v58 = vunpack.c.l.b16 %v1263_v50  ;;  %v693_v59 = vor.u32 %v691_v40, %v690_v49  ;;  %v695_v60 = vrot.slane %v690_v49, 4  ;;  %v465_v9 = vld [vmem:[#allocation2 + $0x2c] sm:$0x1]  ;;  %v7524_v11 = vld [vmem:[#allocation2 + $0x90] sm:$0x1]  ;;  %v6516_v42 = vld [vmem:[#allocation6 + $0x1a0] sm:$0xff] }
  0x7c   : > { %v7512_v0 = vunpack.c.l.b16 %v1273_v57  ;;  %v947_v62 = vld [vmem:[#allocation2 + $0x18] sm:$0xf]  ;;  %v902_v63 = vsel %vm7349_vm10, %v685_v54, %v901_v47  ;;  %v546_v1 = vrot.slane %v544_v51, 7  ;;  %v7516_v2 = vrot.slane %v552_v56, 7  ;;  %v340_v45 = vld [vmem:[%s7311_s11 + $0x30] sm:$0xff]  ;;  %v341_v46 = vld [vmem:[%s7311_s11 + $0x38] sm:$0xff]  ;;  %3227 = vmatpush.bf16.msrb.mxu1 %v6516_v42 }
  0x7d   : > { %v948_v22 = vld [vmem:[#allocation2 + $0x1c] sm:$0xf]  ;;  %v1059_v23 = vshrl.u32 %v947_v62, 16  ;;  %v1062_v35 = vshll.u32 %v947_v62, 16  ;;  %v694_v7 = vsel %vm7341_vm9, %v686_v55, %v693_v59  ;;  %v906_v8 = vsel %vm7323_vm3, %v695_v60, %v905_v61  ;;  %903 = vst [vmem:[#allocation2 + $0x84] sm:$0xf] %v902_v63 }
  0x7e   : > { %v1453_v12 = vpack.c.b16 %v7512_v0, %v7510_v58  ;;  %v6426_v13 = vld [vmem:[#allocation2 + $0x18] sm:$0xff]  ;;  %v1068_v14 = vshll.u32 %v948_v22, 16  ;;  %v1072_v15 = vshrl.u32 %v948_v22, 16  ;;  %v549_v16 = vor.u32 %v547_v53, %v546_v1  ;;  %904 = vst [vmem:[#allocation2 + $0x88] sm:$0xf] %v694_v7  ;;  %s5616_s15 = sshll.u32 %s8486_s27, 4  ;;  %s8807_s15 = int_to_ptr.vmem [resolvable:$true] %s5616_s15 }
  0x7f   : > { %v7528_v17 = vld [vmem:[#allocation2 + $0x98] sm:$0x1]  ;;  %v1061_v18 = vrot.slane %v1059_v23, 4  ;;  %v1064_v19 = vrot.slane %v1062_v35, 5  ;;  %v550_v20 = vrot.slane %v546_v1, 4  ;;  %v555_v21 = vshll.u32 %v7493_v29, 16 }
  0x80   : > { %v993_v24 = vld [vmem:[#allocation2 + $0x20] sm:$0x1]  ;;  %v1070_v25 = vrot.slane %v1068_v14, 5  ;;  %v1074_v26 = vrot.slane %v1072_v15, 4  ;;  %907 = vst [vmem:[#allocation2 + $0x8c] sm:$0x1] %v906_v8  ;;  %v7531_v27 = vpack.c.bf16 %v356_v3, %v356_v3  ;;  %v7533_v28 = vpack.c.bf16 %v357_v4, %v357_v4 }
  0x81   : > { %v1065_v31 = vor.u32 %v1064_v19, %v1061_v18  ;;  %v1078_v32 = vshll.u32 %v993_v24, 16  ;;  %v557_v34 = vor.u32 %v555_v21, %v7516_v2  ;;  %v559_v36 = vrot.slane %v7516_v2, 4  ;;  %v845_v37 = vld [vmem:[#allocation2 + $0x24] sm:$0xf]  ;;  %v6492_v29 = vld [vmem:[#allocation6 + $0x160] sm:$0xff]  ;;  %v6459_v18 = vld [vmem:[#allocation6 + $0x98] sm:$0xff] }
  0x82   : > { %v1075_v39 = vor.u32 %v1074_v26, %v1070_v25  ;;  %v846_v40 = vsel %vm7349_vm10, %v549_v16, %v845_v37  ;;  %v466_v41 = vsel %vm7329_vm4, 0, %v465_v9  ;;  %v443_v44 = vsel %vm7323_vm3, 0, %v7524_v11  ;;  %v358_v51 = vld [vmem:[%s7311_s11 + $0xc0] sm:$0xff]  ;;  %2912 = vmatpush.bf16.msrb.mxu0 %v6492_v29  ;;  %2141 = vmatpush.bf16.msrb.mxu2 %v6459_v18  ;;  %v343_v18 = vld [vmem:[%s7311_s11 + $0x48] sm:$0xff]  ;;  %s5618_s10 = sshll.u32 %s5615_s13, 4  ;;  %s8814_s16 = scalar_lea.sflag [#allocation11], %s5576_s14  ;;  %s8809_s10 = int_to_ptr.hbm [resolvable:$true] %s5618_s10 }
  0x83   : > { %1774 = vmatmul.bf16.gmra.mxu1 %v6426_v13  ;;  %v1066_v47 = vrot.slane %v1065_v31, 4  ;;  %v1080_v48 = vrot.slane %v1078_v32, 5  ;;  %v558_v33 = vsel %vm7341_vm9, %v550_v20, %v557_v34  ;;  %847 = vst [vmem:[#allocation2 + $0x24] sm:$0xf] %v846_v40  ;;  %v493_v49 = vsel %vm7329_vm4, 0, %v7528_v17  ;;  %s7009_s18 = sshra.s32 %s8809_s10, 4  ;;  %s7010_s18 = int_to_ptr.hbm [resolvable:$true] %s7009_s18 }
  0x84   : > { %v1076_v53 = vrot.slane %v1075_v39, 4  ;;  %848 = vst [vmem:[#allocation2 + $0x28] sm:$0xf] %v558_v33  ;;  %v697_v50 = vshrl.u32 %v7531_v27, 16  ;;  %v700_v54 = vshll.u32 %v7531_v27, 16  ;;  %v705_v55 = vshrl.u32 %v7533_v28, 16  ;;  %p7016_p11 = scmp.lt.s32.totalorder %s7010_s18, %s8928_s4 }
  0x85   : > { %1814 = vmatmul.bf16.gmra.mxu3 %v6434_v52  ;;  %v1071_v56 = vsel %vm7367_vm11, %v1066_v47, %v1070_v25  ;;  %v965_v57 = vld [vmem:[#allocation2 + $0x84] sm:$0xf]  ;;  %467 = vst [vmem:[#allocation2 + $0x2c] sm:$0x1] %v466_v41  ;;  %v708_v59 = vshll.u32 %v7533_v28, 16  ;;  %v7558_v60 = vpack.c.bf16 %v340_v45, %v340_v45  ;;  %v7560_v61 = vpack.c.bf16 %v341_v46, %v341_v46  ;;  %s7011_s19 = scalar_lea.hbm %s7010_s18, 128 }
  0x86   : > { %v1081_v62 = vsel %vm7367_vm11, %v1076_v53, %v1080_v48  ;;  %v1415_v63 = vunpack.c.l.b16 %v1071_v56  ;;  %v966_v1 = vld [vmem:[#allocation2 + $0x88] sm:$0xf]  ;;  %v1275_v3 = vshrl.u32 %v965_v57, 16  ;;  %v1278_v4 = vshll.u32 %v965_v57, 16  ;;  %444 = vst [vmem:[#allocation2 + $0x90] sm:$0x1] %v443_v44  ;;  %p7012_p1 = scmp.ne.s32.totalorder %s7010_s18, %s7011_s19 }
  0x87   : > { %v1416_v22 = vunpack.c.l.b16 %v1081_v62  ;;  %v1002_v23 = vld [vmem:[#allocation2 + $0x8c] sm:$0x1]  ;;  %v1284_v35 = vshll.u32 %v966_v1, 16  ;;  %v1288_v7 = vshrl.u32 %v966_v1, 16  ;;  %v7564_v8 = vpack.c.bf16 %v358_v51, %v358_v51  ;;  %494 = vst [vmem:[#allocation2 + $0x98] sm:$0x1] %v493_v49 }
  0x88   : > { %v1277_v9 = vrot.slane %v1275_v3, 4  ;;  %v1280_v11 = vrot.slane %v1278_v4, 5  ;;  %v1294_v13 = vshll.u32 %v1002_v23, 16  ;;  %v699_v52 = vrot.slane %v697_v50, 7  ;;  %v418_v28 = vld [vmem:[#allocation2 + $0x30] sm:$0x1]  ;;  %p7013_p4 = pnand %p7012_p1, %p7277_p5 }
  0x89   : > { %1581 = vmatmul.bf16.gmra.mxu2 %v1453_v12  ;;  %v1445_v14 = vpack.c.b16 %v1416_v22, %v1415_v63  ;;  %v1286_v15 = vrot.slane %v1284_v35, 5  ;;  %v1290_v16 = vrot.slane %v1288_v7, 4  ;;  %v707_v17 = vrot.slane %v705_v55, 7  ;;  %v468_v42 = vld [vmem:[#allocation2 + $0x38] sm:$0x1]  ;;  %v359_v33 = vld [vmem:[%s7311_s11 + $0xc8] sm:$0xff] }
  0x8a   : > { %v1281_v19 = vor.u32 %v1280_v11, %v1277_v9  ;;  %v1296_v20 = vrot.slane %v1294_v13, 5  ;;  %v949_v21 = vld [vmem:[#allocation2 + $0x24] sm:$0xf]  ;;  %v702_v24 = vor.u32 %v700_v54, %v699_v52  ;;  %v703_v25 = vrot.slane %v699_v52, 4  ;;  %v445_v55 = vld [vmem:[#allocation2 + $0x9c] sm:$0x1]  ;;  %p7014_p8 = pneg %p7013_p4 }
  0x8b   : > { %1541 = vmatmul.bf16.gmra.mxu0 %v1445_v14  ;;  %v1291_v26 = vor.u32 %v1290_v16, %v1286_v15  ;;  %v950_v27 = vld [vmem:[#allocation2 + $0x28] sm:$0xf]  ;;  %v1083_v58 = vshrl.u32 %v949_v21, 16  ;;  %v1086_v0 = vshll.u32 %v949_v21, 16  ;;  %v710_v12 = vor.u32 %v708_v59, %v707_v17  ;;  %v495_v56 = vld [vmem:[#allocation2 + $0xa4] sm:$0x1] }
  0x8c   : > { %v1282_v31 = vrot.slane %v1281_v19, 4  ;;  %v849_v32 = vld [vmem:[#allocation2 + $0x2c] sm:$0x1]  ;;  %v1092_v34 = vshll.u32 %v950_v27, 16  ;;  %v1096_v37 = vshrl.u32 %v950_v27, 16  ;;  %v712_v38 = vrot.slane %v707_v17, 4 }
  0x8d   : > { %v1292_v29 = vrot.slane %v1291_v26, 4  ;;  %v850_v39 = vsel %vm7323_vm3, %v559_v36, %v849_v32  ;;  %v1085_v40 = vrot.slane %v1083_v58, 4  ;;  %v1088_v41 = vrot.slane %v1086_v0, 5  ;;  %v908_v48 = vld [vmem:[#allocation2 + $0x90] sm:$0xf]  ;;  %v6427_v51 = vld [vmem:[#allocation2 + $0x24] sm:$0xff] }
  0x8e   : > { %v1287_v44 = vsel %vm7367_vm11, %v1282_v31, %v1286_v15  ;;  %851 = vst [vmem:[#allocation2 + $0x2c] sm:$0x1] %v850_v39  ;;  %v1094_v45 = vrot.slane %v1092_v34, 5  ;;  %v1098_v46 = vrot.slane %v1096_v37, 4  ;;  %v711_v47 = vsel %vm7341_vm9, %v703_v25, %v710_v12  ;;  %v6435_v36 = vld [vmem:[#allocation2 + $0x84] sm:$0xff]  ;;  %v6483_v1 = vld [vmem:[#allocation6 + $0xd8] sm:$0xff] }
  0x8f   : > { %v1297_v2 = vsel %vm7367_vm11, %v1292_v29, %v1296_v20  ;;  %v1433_v49 = vunpack.c.l.b16 %v1287_v44  ;;  %v1089_v53 = vor.u32 %v1088_v41, %v1085_v40  ;;  %v909_v50 = vsel %vm7349_vm10, %v702_v24, %v908_v48  ;;  %911 = vst [vmem:[#allocation2 + $0x94] sm:$0xf] %v711_v47  ;;  %v912_v54 = vld [vmem:[#allocation2 + $0x98] sm:$0x1]  ;;  %v6491_v3 = vld [vmem:[#allocation6 + $0x158] sm:$0xff]  ;;  %2455 = vmatpush.bf16.msrb.mxu3 %v6483_v1  ;;  %v360_v40 = vld [vmem:[%s7311_s11 + $0xd0] sm:$0xff] }
  0x90   : > { %v1434_v57 = vunpack.c.l.b16 %v1297_v2  ;;  %v1099_v59 = vor.u32 %v1098_v46, %v1094_v45  ;;  %910 = vst [vmem:[#allocation2 + $0x90] sm:$0xf] %v909_v50  ;;  %v913_v62 = vsel %vm7323_vm3, %v712_v38, %v912_v54  ;;  %v419_v63 = vsel %vm7323_vm3, 0, %v418_v28  ;;  %v6515_v4 = vld [vmem:[#allocation6 + $0x198] sm:$0xff]  ;;  %2913 = vmatpush.bf16.msrb.mxu0 %v6491_v3  ;;  %v342_v17 = vld [vmem:[%s7311_s11 + $0x40] sm:$0xff] }
  0x91   : > { %v1090_v22 = vrot.slane %v1089_v53, 4  ;;  %914 = vst [vmem:[#allocation2 + $0x98] sm:$0x1] %v913_v62  ;;  %v561_v23 = vshrl.u32 %v7558_v60, 16  ;;  %v564_v35 = vshll.u32 %v7558_v60, 16  ;;  %v569_v7 = vshrl.u32 %v7560_v61, 16  ;;  %3228 = vmatpush.bf16.msrb.mxu1 %v6515_v4 }
  0x92   : > { %v1454_v9 = vpack.c.b16 %v1434_v57, %v1433_v49  ;;  %v1100_v11 = vrot.slane %v1099_v59, 4  ;;  %420 = vst [vmem:[#allocation2 + $0x30] sm:$0x1] %v419_v63  ;;  %v572_v13 = vshll.u32 %v7560_v61, 16  ;;  %v469_v52 = vsel %vm7329_vm4, 0, %v468_v42 }
  0x93   : > { %1779 = vmatmul.bf16.gmra.mxu1 %v6427_v51  ;;  %v1095_v14 = vsel %vm7367_vm11, %v1090_v22, %v1094_v45  ;;  %v563_v15 = vrot.slane %v561_v23, 7  ;;  %v571_v16 = vrot.slane %v569_v7, 7  ;;  %470 = vst [vmem:[#allocation2 + $0x38] sm:$0x1] %v469_v52  ;;  %v7594_v60 = vpack.c.bf16 %v359_v33, %v359_v33  ;;  %v421_v47 = vld [vmem:[#allocation2 + $0x3c] sm:$0x1] }
  0x94   : > { %v7598_v19 = vunpack.c.l.b16 %v1095_v14  ;;  %v446_v61 = vsel %vm7323_vm3, 0, %v445_v55  ;;  %v496_v20 = vsel %vm7329_vm4, 0, %v495_v56  ;;  %v714_v21 = vshrl.u32 %v7564_v8, 16  ;;  %v471_v63 = vld [vmem:[#allocation2 + $0x44] sm:$0x1]  ;;  %v361_v52 = vld [vmem:[%s7311_s11 + $0xd8] sm:$0xff] }
  0x95   : > { %1819 = vmatmul.bf16.gmra.mxu3 %v6435_v36  ;;  %v994_v24 = vld [vmem:[#allocation2 + $0x2c] sm:$0x1]  ;;  %v566_v25 = vor.u32 %v564_v35, %v563_v15  ;;  %v567_v26 = vrot.slane %v563_v15, 4  ;;  %v574_v27 = vor.u32 %v572_v13, %v571_v16  ;;  %v576_v58 = vrot.slane %v571_v16, 4  ;;  %447 = vst [vmem:[#allocation2 + $0x9c] sm:$0x1] %v446_v61 }
  0x96   : > { %v1102_v0 = vshll.u32 %v994_v24, 16  ;;  %v968_v12 = vld [vmem:[#allocation2 + $0x94] sm:$0xf]  ;;  %497 = vst [vmem:[#allocation2 + $0xa4] sm:$0x1] %v496_v20  ;;  %v7605_v28 = vrot.slane %v714_v21, 7  ;;  %v7607_v31 = vpack.c.bf16 %v342_v17, %v342_v17  ;;  %v7609_v32 = vpack.c.bf16 %v343_v18, %v343_v18 }
  0x97   : > { %v967_v34 = vld [vmem:[#allocation2 + $0x90] sm:$0xf]  ;;  %v1308_v37 = vshll.u32 %v968_v12, 16  ;;  %v1312_v38 = vshrl.u32 %v968_v12, 16  ;;  %v575_v29 = vsel %vm7341_vm9, %v567_v26, %v574_v27  ;;  %v717_v39 = vshll.u32 %v7564_v8, 16  ;;  %v6458_v36 = vld [vmem:[#allocation6 + $0x90] sm:$0xff] }
  0x98   : > { %v1104_v41 = vrot.slane %v1102_v0, 5  ;;  %v1003_v42 = vld [vmem:[#allocation2 + $0x98] sm:$0x1]  ;;  %v1299_v44 = vshrl.u32 %v967_v34, 16  ;;  %v1302_v45 = vshll.u32 %v967_v34, 16  ;;  %v720_v46 = vrot.slane %v7605_v28, 4  ;;  %2142 = vmatpush.bf16.msrb.mxu2 %v6458_v36 }
  0x99   : > { %1586 = vmatmul.bf16.gmra.mxu2 %v1454_v9  ;;  %v1310_v48 = vrot.slane %v1308_v37, 5  ;;  %v1314_v33 = vrot.slane %v1312_v38, 4  ;;  %v1318_v2 = vshll.u32 %v1003_v42, 16  ;;  %v852_v49 = vld [vmem:[#allocation2 + $0x30] sm:$0xf]  ;;  %v719_v51 = vor.u32 %v717_v39, %v7605_v28  ;;  %v6482_v27 = vld [vmem:[#allocation6 + $0xd0] sm:$0xff] }
  0x9a   : > { %v1105_v53 = vsel %vm7367_vm11, %v1100_v11, %v1104_v41  ;;  %v1301_v8 = vrot.slane %v1299_v44, 4  ;;  %v1304_v50 = vrot.slane %v1302_v45, 5  ;;  %v853_v54 = vsel %vm7349_vm10, %v566_v25, %v852_v49  ;;  %855 = vst [vmem:[#allocation2 + $0x34] sm:$0xf] %v575_v29  ;;  %v856_v55 = vld [vmem:[#allocation2 + $0x38] sm:$0x1]  ;;  %2456 = vmatpush.bf16.msrb.mxu3 %v6482_v27 }
  0x9b   : > { %v1418_v56 = vunpack.c.l.b16 %v1105_v53  ;;  %v1315_v57 = vor.u32 %v1314_v33, %v1310_v48  ;;  %v1320_v59 = vrot.slane %v1318_v2, 5  ;;  %854 = vst [vmem:[#allocation2 + $0x30] sm:$0xf] %v853_v54  ;;  %v857_v62 = vsel %vm7323_vm3, %v576_v58, %v856_v55  ;;  %v6436_v18 = vld [vmem:[#allocation2 + $0x90] sm:$0xff]  ;;  %v6490_v58 = vld [vmem:[#allocation6 + $0x150] sm:$0xff] }
  0x9c   : > { %v1305_v1 = vor.u32 %v1304_v50, %v1301_v8  ;;  %858 = vst [vmem:[#allocation2 + $0x38] sm:$0x1] %v857_v62  ;;  %v722_v3 = vshrl.u32 %v7594_v60, 16  ;;  %v725_v4 = vshll.u32 %v7594_v60, 16  ;;  %v915_v22 = vld [vmem:[#allocation2 + $0x9c] sm:$0xf]  ;;  %v7625_v23 = vpack.c.bf16 %v360_v40, %v360_v40  ;;  %2914 = vmatpush.bf16.msrb.mxu0 %v6490_v58 }
  0x9d   : > { %v1446_v35 = vpack.c.b16 %v1418_v56, %v7598_v19  ;;  %v1316_v7 = vrot.slane %v1315_v57, 4  ;;  %v916_v9 = vsel %vm7349_vm10, %v719_v51, %v915_v22  ;;  %v919_v11 = vld [vmem:[#allocation2 + $0xa4] sm:$0x1]  ;;  %v422_v13 = vsel %vm7323_vm3, 0, %v421_v47  ;;  %v6514_v0 = vld [vmem:[#allocation6 + $0x190] sm:$0xff] }
  0x9e   : > { %v1306_v14 = vrot.slane %v1305_v1, 4  ;;  %v724_v15 = vrot.slane %v722_v3, 7  ;;  %917 = vst [vmem:[#allocation2 + $0x9c] sm:$0xf] %v916_v9  ;;  %v578_v16 = vshrl.u32 %v7607_v31, 16  ;;  %v581_v60 = vshll.u32 %v7607_v31, 16  ;;  %3229 = vmatpush.bf16.msrb.mxu1 %v6514_v0 }
  0x9f   : > { %1546 = vmatmul.bf16.gmra.mxu0 %v1446_v35  ;;  %v1321_v17 = vsel %vm7367_vm11, %v1316_v7, %v1320_v59  ;;  %423 = vst [vmem:[#allocation2 + $0x3c] sm:$0x1] %v422_v13  ;;  %v586_v19 = vshrl.u32 %v7609_v32, 16  ;;  %v589_v61 = vshll.u32 %v7609_v32, 16  ;;  %v472_v20 = vsel %vm7329_vm4, 0, %v471_v63  ;;  %v344_v7 = vld [vmem:[%s7311_s11 + $0x50] sm:$0xff] }
  0xa0   : > { %v1311_v21 = vsel %vm7367_vm11, %v1306_v14, %v1310_v48  ;;  %v1436_v24 = vunpack.c.l.b16 %v1321_v17  ;;  %v727_v25 = vor.u32 %v725_v4, %v724_v15  ;;  %v729_v26 = vrot.slane %v724_v15, 4  ;;  %473 = vst [vmem:[#allocation2 + $0x44] sm:$0x1] %v472_v20  ;;  %v448_v44 = vld [vmem:[#allocation2 + $0xa8] sm:$0x1] }
  0xa1   : > { %v1435_v12 = vunpack.c.l.b16 %v1311_v21  ;;  %v7643_v31 = vld [vmem:[#allocation2 + $0x34] sm:$0xf]  ;;  %v580_v34 = vrot.slane %v578_v16, 7  ;;  %v588_v37 = vrot.slane %v586_v19, 7  ;;  %v7645_v38 = vpack.c.bf16 %v361_v52, %v361_v52  ;;  %v498_v36 = vld [vmem:[#allocation2 + $0xb0] sm:$0x1] }
  0xa2   : > { %v6428_v32 = vld [vmem:[#allocation2 + $0x30] sm:$0xff]  ;;  %v1116_v39 = vshll.u32 %v7643_v31, 16  ;;  %v1120_v40 = vshrl.u32 %v7643_v31, 16  ;;  %v728_v41 = vsel %vm7341_vm9, %v720_v46, %v727_v25  ;;  %v920_v42 = vsel %vm7323_vm3, %v729_v26, %v919_v11  ;;  %v6349_v5 = vld [vmem:[#allocation8] sm:$0xf] }
  0xa3   : > { %v951_v29 = vld [vmem:[#allocation2 + $0x30] sm:$0xf]  ;;  %v1455_v45 = vpack.c.b16 %v1436_v24, %v1435_v12  ;;  %v7655_v47 = vld [vmem:[#allocation2 + $0x38] sm:$0x1]  ;;  %918 = vst [vmem:[#allocation2 + $0xa0] sm:$0xf] %v728_v41  ;;  %v583_v2 = vor.u32 %v581_v60, %v580_v34  ;;  %1784 = vmatmul.bf16.gmra.mxu1 %v6428_v32  ;;  %v591_v54 = vor.u32 %v589_v61, %v588_v37 }
  0xa4   : > { %v1107_v48 = vshrl.u32 %v951_v29, 16  ;;  %v1110_v33 = vshll.u32 %v951_v29, 16  ;;  %v1118_v28 = vrot.slane %v1116_v39, 5  ;;  %v1122_v49 = vrot.slane %v1120_v40, 4  ;;  %921 = vst [vmem:[#allocation2 + $0xa4] sm:$0x1] %v920_v42 }
  0xa5   : > { %1824 = vmatmul.bf16.gmra.mxu3 %v6436_v18  ;;  %v1126_v46 = vshll.u32 %v7655_v47, 16  ;;  %v584_v51 = vrot.slane %v580_v34, 4  ;;  %v969_v50 = vld [vmem:[#allocation2 + $0x9c] sm:$0xf]  ;;  %v593_v55 = vrot.slane %v588_v37, 4  ;;  %v449_v35 = vsel %vm7323_vm3, 0, %v448_v44 }
  0xa6   : > { %v1109_v53 = vrot.slane %v1107_v48, 4  ;;  %v1112_v8 = vrot.slane %v1110_v33, 5  ;;  %v1123_v56 = vor.u32 %v1122_v49, %v1118_v28  ;;  %v1323_v59 = vshrl.u32 %v969_v50, 16  ;;  %v859_v63 = vld [vmem:[#allocation2 + $0x3c] sm:$0xf]  ;;  %v6457_v34 = vld [vmem:[#allocation6 + $0x88] sm:$0xff] }
  0xa7   : > { %v1128_v57 = vrot.slane %v1126_v46, 5  ;;  %v1326_v62 = vshll.u32 %v969_v50, 16  ;;  %v592_v3 = vsel %vm7341_vm9, %v584_v51, %v591_v54  ;;  %v860_v4 = vsel %vm7349_vm10, %v583_v2, %v859_v63  ;;  %v863_v22 = vld [vmem:[#allocation2 + $0x44] sm:$0x1]  ;;  %450 = vst [vmem:[#allocation2 + $0xa8] sm:$0x1] %v449_v35  ;;  %2143 = vmatpush.bf16.msrb.mxu2 %v6457_v34 }
  0xa8   : > { %v1113_v1 = vor.u32 %v1112_v8, %v1109_v53  ;;  %v1124_v9 = vrot.slane %v1123_v56, 4  ;;  %v1325_v11 = vrot.slane %v1323_v59, 4  ;;  %861 = vst [vmem:[#allocation2 + $0x3c] sm:$0xf] %v860_v4  ;;  %v864_v52 = vsel %vm7323_vm3, %v593_v55, %v863_v22  ;;  %v345_v40 = vld [vmem:[%s7311_s11 + $0x58] sm:$0xff] }
  0xa9   : > { %1591 = vmatmul.bf16.gmra.mxu2 %v1455_v45  ;;  %v1328_v13 = vrot.slane %v1326_v62, 5  ;;  %862 = vst [vmem:[#allocation2 + $0x40] sm:$0xf] %v592_v3  ;;  %v499_v15 = vsel %vm7329_vm4, 0, %v498_v36  ;;  %v731_v16 = vshrl.u32 %v7625_v23, 16  ;;  %v734_v60 = vshll.u32 %v7625_v23, 16 }
  0xaa   : > { %v1114_v14 = vrot.slane %v1113_v1, 4  ;;  %v1129_v17 = vsel %vm7367_vm11, %v1124_v9, %v1128_v57  ;;  %v970_v18 = vld [vmem:[#allocation2 + $0xa0] sm:$0xf]  ;;  %865 = vst [vmem:[#allocation2 + $0x44] sm:$0x1] %v864_v52  ;;  %v739_v61 = vshrl.u32 %v7645_v38, 16  ;;  %v7674_v20 = vpack.c.bf16 %v344_v7, %v344_v7 }
  0xab   : > { %v1329_v19 = vor.u32 %v1328_v13, %v1325_v11  ;;  %v1420_v24 = vunpack.c.l.b16 %v1129_v17  ;;  %v1004_v25 = vld [vmem:[#allocation2 + $0xa4] sm:$0x1]  ;;  %v1332_v26 = vshll.u32 %v970_v18, 16  ;;  %v1336_v27 = vshrl.u32 %v970_v18, 16  ;;  %500 = vst [vmem:[#allocation2 + $0xb0] sm:$0x1] %v499_v15 }
  0xac   : > { %v1119_v21 = vsel %vm7367_vm11, %v1114_v14, %v1118_v28  ;;  %v1342_v0 = vshll.u32 %v1004_v25, 16  ;;  %v733_v12 = vrot.slane %v731_v16, 7  ;;  %v741_v29 = vrot.slane %v739_v61, 7  ;;  %v424_v46 = vld [vmem:[#allocation2 + $0x48] sm:$0x1]  ;;  %v6437_v53 = vld [vmem:[#allocation2 + $0x9c] sm:$0xff] }
  0xad   : > { %v1419_v23 = vunpack.c.l.b16 %v1119_v21  ;;  %v1330_v58 = vrot.slane %v1329_v19, 4  ;;  %v1334_v37 = vrot.slane %v1332_v26, 5  ;;  %v1338_v32 = vrot.slane %v1336_v27, 4  ;;  %v474_v63 = vld [vmem:[#allocation2 + $0x50] sm:$0x1]  ;;  %v362_v7 = vld [vmem:[%s7311_s11 + $0xe0] sm:$0xff] }
  0xae   : > { %v742_v39 = vshll.u32 %v7645_v38, 16  ;;  %v1344_v42 = vrot.slane %v1342_v0, 5  ;;  %v736_v44 = vor.u32 %v734_v60, %v733_v12  ;;  %v737_v45 = vrot.slane %v733_v12, 4  ;;  %v922_v22 = vld [vmem:[#allocation2 + $0xa8] sm:$0xf]  ;;  %v6481_v61 = vld [vmem:[#allocation6 + $0xc8] sm:$0xff] }
  0xaf   : > { %v1447_v41 = vpack.c.b16 %v1420_v24, %v1419_v23  ;;  %v1335_v48 = vsel %vm7367_vm11, %v1330_v58, %v1334_v37  ;;  %v1339_v33 = vor.u32 %v1338_v32, %v1334_v37  ;;  %v953_v2 = vld [vmem:[#allocation2 + $0x3c] sm:$0xf]  ;;  %v746_v49 = vrot.slane %v741_v29, 4  ;;  %v451_v15 = vld [vmem:[#allocation2 + $0xb4] sm:$0x1]  ;;  %v6489_v21 = vld [vmem:[#allocation6 + $0x148] sm:$0xff]  ;;  %2457 = vmatpush.bf16.msrb.mxu3 %v6481_v61 }
  0xb0   : > { %v744_v28 = vor.u32 %v742_v39, %v741_v29  ;;  %v1437_v51 = vunpack.c.l.b16 %v1335_v48  ;;  %v6429_v36 = vld [vmem:[#allocation2 + $0x3c] sm:$0xff]  ;;  %v1131_v8 = vshrl.u32 %v953_v2, 16  ;;  %v1134_v50 = vshll.u32 %v953_v2, 16  ;;  %2915 = vmatpush.bf16.msrb.mxu0 %v6489_v21 }
  0xb1   : > { %1551 = vmatmul.bf16.gmra.mxu0 %v1447_v41  ;;  %v7682_v38 = vld [vmem:[#allocation2 + $0x40] sm:$0xf]  ;;  %v7684_v54 = vpack.c.bf16 %v345_v40, %v345_v40  ;;  %v1340_v55 = vrot.slane %v1339_v33, 4  ;;  %v7686_v56 = vld [vmem:[#allocation2 + $0x44] sm:$0x1]  ;;  %v425_v35 = vsel %vm7323_vm3, 0, %v424_v46  ;;  %v923_v52 = vsel %vm7349_vm10, %v736_v44, %v922_v22 }
  0xb2   : > { %v1140_v57 = vshll.u32 %v7682_v38, 16  ;;  %v1144_v59 = vshrl.u32 %v7682_v38, 16  ;;  %v745_v62 = vsel %vm7341_vm9, %v737_v45, %v744_v28  ;;  %v1133_v1 = vrot.slane %v1131_v8, 4  ;;  %v926_v14 = vld [vmem:[#allocation2 + $0xb0] sm:$0x1]  ;;  %v6513_v24 = vld [vmem:[#allocation6 + $0x188] sm:$0xff] }
  0xb3   : > { %v1136_v3 = vrot.slane %v1134_v50, 5  ;;  %v1150_v4 = vshll.u32 %v7686_v56, 16  ;;  %v1345_v9 = vsel %vm7367_vm11, %v1340_v55, %v1344_v42  ;;  %925 = vst [vmem:[#allocation2 + $0xac] sm:$0xf] %v745_v62  ;;  %v501_v16 = vld [vmem:[#allocation2 + $0xbc] sm:$0x1]  ;;  %1789 = vmatmul.bf16.gmra.mxu1 %v6429_v36  ;;  %v927_v19 = vsel %vm7323_vm3, %v746_v49, %v926_v14 }
  0xb4   : > { %v1142_v11 = vrot.slane %v1140_v57, 5  ;;  %v1146_v13 = vrot.slane %v1144_v59, 4  ;;  %v1438_v60 = vunpack.c.l.b16 %v1345_v9  ;;  %924 = vst [vmem:[#allocation2 + $0xa8] sm:$0xf] %v923_v52  ;;  %v595_v26 = vshrl.u32 %v7674_v20, 16  ;;  %v363_v58 = vld [vmem:[%s7311_s11 + $0xe8] sm:$0xff]  ;;  %3230 = vmatpush.bf16.msrb.mxu1 %v6513_v24 }
  0xb5   : > { %1829 = vmatmul.bf16.gmra.mxu3 %v6437_v53  ;;  %v1137_v17 = vor.u32 %v1136_v3, %v1133_v1  ;;  %v1152_v18 = vrot.slane %v1150_v4, 5  ;;  %928 = vst [vmem:[#allocation2 + $0xb0] sm:$0x1] %v927_v19  ;;  %v598_v27 = vshll.u32 %v7674_v20, 16  ;;  %v603_v23 = vshrl.u32 %v7684_v54, 16  ;;  %v346_v45 = vld [vmem:[%s7311_s11 + $0x60] sm:$0xff] }
  0xb6   : > { %v1147_v25 = vor.u32 %v1146_v13, %v1142_v11  ;;  %v1456_v0 = vpack.c.b16 %v1438_v60, %v1437_v51  ;;  %426 = vst [vmem:[#allocation2 + $0x48] sm:$0x1] %v425_v35  ;;  %v606_v34 = vshll.u32 %v7684_v54, 16  ;;  %v475_v37 = vsel %vm7329_vm4, 0, %v474_v63  ;;  %v347_v57 = vld [vmem:[%s7311_s11 + $0x68] sm:$0xff]  ;;  %v6456_v21 = vld [vmem:[#allocation6 + $0x80] sm:$0xff] }
  0xb7   : > { %v1138_v12 = vrot.slane %v1137_v17, 4  ;;  %v597_v29 = vrot.slane %v595_v26, 7  ;;  %v605_v39 = vrot.slane %v603_v23, 7  ;;  %476 = vst [vmem:[#allocation2 + $0x50] sm:$0x1] %v475_v37  ;;  %v394_v20 = vpack.c.bf16 %v362_v7, %v362_v7  ;;  %2144 = vmatpush.bf16.msrb.mxu2 %v6456_v21 }
  0xb8   : > { %v1148_v32 = vrot.slane %v1147_v25, 4  ;;  %v7711_v41 = vpack.c.bf16 %v363_v58, %v363_v58  ;;  %v452_v42 = vsel %vm7323_vm3, 0, %v451_v15  ;;  %v502_v44 = vsel %vm7329_vm4, 0, %v501_v16  ;;  %v427_v22 = vld [vmem:[#allocation2 + $0x54] sm:$0x1] }
  0xb9   : > { %1596 = vmatmul.bf16.gmra.mxu2 %v1456_v0  ;;  %v1143_v40 = vsel %vm7367_vm11, %v1138_v12, %v1142_v11  ;;  %v600_v2 = vor.u32 %v598_v27, %v597_v29  ;;  %v601_v28 = vrot.slane %v597_v29, 4  ;;  %453 = vst [vmem:[#allocation2 + $0xb4] sm:$0x1] %v452_v42  ;;  %v608_v51 = vor.u32 %v606_v34, %v605_v39  ;;  %v477_v58 = vld [vmem:[#allocation2 + $0x5c] sm:$0x1] }
  0xba   : > { %v1153_v48 = vsel %vm7367_vm11, %v1148_v32, %v1152_v18  ;;  %v1421_v33 = vunpack.c.l.b16 %v1143_v40  ;;  %v972_v46 = vld [vmem:[#allocation2 + $0xac] sm:$0xf]  ;;  %v610_v36 = vrot.slane %v605_v39, 4  ;;  %503 = vst [vmem:[#allocation2 + $0xbc] sm:$0x1] %v502_v44  ;;  %v748_v53 = vshrl.u32 %v394_v20, 16 }
  0xbb   : > { %v1422_v49 = vunpack.c.l.b16 %v1153_v48  ;;  %v971_v8 = vld [vmem:[#allocation2 + $0xa8] sm:$0xf]  ;;  %v1356_v50 = vshll.u32 %v972_v46, 16  ;;  %v1360_v54 = vshrl.u32 %v972_v46, 16  ;;  %v751_v55 = vshll.u32 %v394_v20, 16  ;;  %v6512_v46 = vld [vmem:[#allocation6 + $0x180] sm:$0xff] }
  0xbc   : > { %v7721_v59 = vpack.c.bf16 %v346_v45, %v346_v45  ;;  %v1005_v63 = vld [vmem:[#allocation2 + $0xb0] sm:$0x1]  ;;  %v1347_v1 = vshrl.u32 %v971_v8, 16  ;;  %v1350_v3 = vshll.u32 %v971_v8, 16  ;;  %v609_v4 = vsel %vm7341_vm9, %v601_v28, %v608_v51  ;;  %v6438_v25 = vld [vmem:[#allocation2 + $0xa8] sm:$0xff]  ;;  %v6480_v28 = vld [vmem:[#allocation6 + $0xc0] sm:$0xff]  ;;  %3231 = vmatpush.bf16.msrb.mxu1 %v6512_v46 }
  0xbd   : > { %v1448_v62 = vpack.c.b16 %v1422_v49, %v1421_v33  ;;  %v1358_v35 = vrot.slane %v1356_v50, 5  ;;  %v1362_v7 = vrot.slane %v1360_v54, 4  ;;  %v1366_v9 = vshll.u32 %v1005_v63, 16  ;;  %v866_v11 = vld [vmem:[#allocation2 + $0x48] sm:$0xf]  ;;  %v6488_v49 = vld [vmem:[#allocation6 + $0x140] sm:$0xff]  ;;  %2458 = vmatpush.bf16.msrb.mxu3 %v6480_v28 }
  0xbe   : > { %v750_v13 = vrot.slane %v748_v53, 7  ;;  %v1349_v52 = vrot.slane %v1347_v1, 4  ;;  %v1352_v14 = vrot.slane %v1350_v3, 5  ;;  %v867_v15 = vsel %vm7349_vm10, %v600_v2, %v866_v11  ;;  %869 = vst [vmem:[#allocation2 + $0x4c] sm:$0xf] %v609_v4  ;;  %2916 = vmatpush.bf16.msrb.mxu0 %v6488_v49 }
  0xbf   : > { %v870_v16 = vld [vmem:[#allocation2 + $0x50] sm:$0x1]  ;;  %v7727_v60 = vpack.c.bf16 %v347_v57, %v347_v57  ;;  %v1363_v17 = vor.u32 %v1362_v7, %v1358_v35  ;;  %v1368_v18 = vrot.slane %v1366_v9, 5  ;;  %868 = vst [vmem:[#allocation2 + $0x48] sm:$0xf] %v867_v15  ;;  %v756_v27 = vshrl.u32 %v7711_v41, 16 }
  0xc0   : > { %v871_v19 = vsel %vm7323_vm3, %v610_v36, %v870_v16  ;;  %v753_v61 = vor.u32 %v751_v55, %v750_v13  ;;  %v1353_v24 = vor.u32 %v1352_v14, %v1349_v52  ;;  %v754_v26 = vrot.slane %v750_v13, 4  ;;  %v929_v12 = vld [vmem:[#allocation2 + $0xb4] sm:$0xf]  ;;  %v2612_v43 = vld [vmem:[#allocation2 + $0xac] sm:$0xf] }
  0xc1   : > { %1556 = vmatmul.bf16.gmra.mxu0 %v1448_v62  ;;  %872 = vst [vmem:[#allocation2 + $0x50] sm:$0x1] %v871_v19  ;;  %v759_v23 = vshll.u32 %v7711_v41, 16  ;;  %v1364_v0 = vrot.slane %v1363_v17, 4  ;;  %v933_v34 = vld [vmem:[#allocation2 + $0xbc] sm:$0x1] }
  0xc2   : > { %v428_v37 = vsel %vm7323_vm3, 0, %v427_v22  ;;  %v1354_v32 = vrot.slane %v1353_v24, 4  ;;  %v758_v29 = vrot.slane %v756_v27, 7  ;;  %v930_v39 = vsel %vm7349_vm10, %v753_v61, %v929_v12 }
  0xc3   : > { %429 = vst [vmem:[#allocation2 + $0x54] sm:$0x1] %v428_v37  ;;  %v612_v20 = vshrl.u32 %v7721_v59, 16  ;;  %v1369_v40 = vsel %vm7367_vm11, %v1364_v0, %v1368_v18  ;;  %v615_v41 = vshll.u32 %v7721_v59, 16  ;;  %v620_v42 = vshrl.u32 %v7727_v60, 16  ;;  %v6527_v37 = vld [vmem:[#allocation6 + $0x1f8] sm:$0xff] }
  0xc4   : > { %931 = vst [vmem:[#allocation2 + $0xb4] sm:$0xf] %v930_v39  ;;  %v623_v44 = vshll.u32 %v7727_v60, 16  ;;  %v1359_v45 = vsel %vm7367_vm11, %v1354_v32, %v1358_v35  ;;  %v1440_v48 = vunpack.c.l.b16 %v1369_v40  ;;  %v761_v33 = vor.u32 %v759_v23, %v758_v29  ;;  %3906 = vmatpush.bf16.msra.mxu2 %v6527_v37 }
  0xc5   : > { %1834 = vmatmul.bf16.gmra.mxu3 %v6438_v25  ;;  %v763_v2 = vrot.slane %v758_v29, 4  ;;  %v1439_v51 = vunpack.c.l.b16 %v1359_v45  ;;  %v7745_v36 = vld [vmem:[#allocation2 + $0x4c] sm:$0xf]  ;;  %v614_v53 = vrot.slane %v612_v20, 7  ;;  %v7747_v8 = vrot.slane %v620_v42, 7 }
  0xc6   : > { %v478_v50 = vsel %vm7329_vm4, 0, %v477_v58  ;;  %v6430_v54 = vld [vmem:[#allocation2 + $0x48] sm:$0xff]  ;;  %v1164_v57 = vshll.u32 %v7745_v36, 16  ;;  %v1168_v59 = vshrl.u32 %v7745_v36, 16  ;;  %v762_v62 = vsel %vm7341_vm9, %v754_v26, %v761_v33 }
  0xc7   : > { %v955_v55 = vld [vmem:[#allocation2 + $0x48] sm:$0xf]  ;;  %v934_v63 = vsel %vm7323_vm3, %v763_v2, %v933_v34  ;;  %v1457_v1 = vpack.c.b16 %v1440_v48, %v1439_v51  ;;  %932 = vst [vmem:[#allocation2 + $0xb8] sm:$0xf] %v762_v62  ;;  %v617_v35 = vor.u32 %v615_v41, %v614_v53  ;;  %1794 = vmatmul.bf16.gmra.mxu1 %v6430_v54  ;;  %v618_v13 = vrot.slane %v614_v53, 4 }
  0xc8   : > { %v7757_v3 = vld [vmem:[#allocation2 + $0x50] sm:$0x1]  ;;  %v1155_v4 = vshrl.u32 %v955_v55, 16  ;;  %v1158_v22 = vshll.u32 %v955_v55, 16  ;;  %v1166_v7 = vrot.slane %v1164_v57, 5  ;;  %v1170_v9 = vrot.slane %v1168_v59, 4 }
  0xc9   : > { %v1174_v11 = vshll.u32 %v7757_v3, 16  ;;  %935 = vst [vmem:[#allocation2 + $0xbc] sm:$0x1] %v934_v63  ;;  %1601 = vmatmul.bf16.gmra.mxu2 %v1457_v1  ;;  %v625_v15 = vor.u32 %v623_v44, %v7747_v8  ;;  %v627_v34 = vrot.slane %v7747_v8, 4  ;;  %v6535_v63 = vld [vmem:[#allocation6 + $0x238] sm:$0xff]  ;;  %vm1893_vm12 = vcmask 1042432  }
  0xca   : > { %v1157_v52 = vrot.slane %v1155_v4, 4  ;;  %v1160_v14 = vrot.slane %v1158_v22, 5  ;;  %v873_v16 = vld [vmem:[#allocation2 + $0x54] sm:$0xf]  ;;  %v1171_v60 = vor.u32 %v1170_v9, %v1166_v7  ;;  %479 = vst [vmem:[#allocation2 + $0x5c] sm:$0x1] %v478_v50  ;;  %4332 = vmatpush.bf16.msra.mxu3 %v6535_v63 }
  0xcb   : > { %v1176_v17 = vrot.slane %v1174_v11, 5  ;;  %v973_v18 = vld [vmem:[#allocation2 + $0xb4] sm:$0xf]  ;;  %v874_v19 = vsel %vm7349_vm10, %v617_v35, %v873_v16  ;;  %v626_v25 = vsel %vm7341_vm9, %v618_v13, %v625_v15  ;;  %v6551_v15 = vld [vmem:[#allocation8 + $0x74] sm:$0xf0]  ;;  %vm1894_vm13 = vcmask 1046532  }
  0xcc   : > { %v1161_v61 = vor.u32 %v1160_v14, %v1157_v52  ;;  %v1371_v21 = vshrl.u32 %v973_v18, 16  ;;  %v1374_v24 = vshll.u32 %v973_v18, 16  ;;  %875 = vst [vmem:[#allocation2 + $0x54] sm:$0xf] %v874_v19  ;;  %v1172_v26 = vrot.slane %v1171_v60, 4  ;;  %vm7787_vm14 = vmor %vm1893_vm12, %vm1894_vm13 }
  0xcd   : > { %876 = vst [vmem:[#allocation2 + $0x58] sm:$0xf] %v626_v25  ;;  %v6405_v14 = vld [vmem:[#allocation8 + $0x70] sm:$0xf]  ;;  %v6550_v18 = vld [vmem:[#allocation8 + $0x74] sm:$0xf] }
  0xce   : > { %v1162_v27 = vrot.slane %v1161_v61, 4  ;;  %v1373_v23 = vrot.slane %v1371_v21, 4  ;;  %v1376_v58 = vrot.slane %v1374_v24, 5  ;;  %v1177_v0 = vsel %vm7367_vm11, %v1172_v26, %v1176_v17  ;;  %v974_v12 = vld [vmem:[#allocation2 + $0xb8] sm:$0xf] }
  0xcf   : > { %v1424_v29 = vunpack.c.l.b16 %v1177_v0  ;;  %v1380_v40 = vshll.u32 %v974_v12, 16  ;;  %v1384_v42 = vshrl.u32 %v974_v12, 16  ;;  %v6439_v45 = vld [vmem:[#allocation2 + $0xb4] sm:$0xff]  ;;  %v1845_v17 = vld [vmem:[#allocation2] sm:$0xe] }
  0xd0   : > { %v1167_v32 = vsel %vm7367_vm11, %v1162_v27, %v1166_v7  ;;  %v1006_v39 = vld [vmem:[#allocation2 + $0xbc] sm:$0x1]  ;;  %v1377_v20 = vor.u32 %v1376_v58, %v1373_v23  ;;  %v6849_v21 = vld [vmem:[#allocation2 + $0x4] sm:$0xf]  ;;  %v6407_v25 = vld [vmem:[#allocation8 + $0x78] sm:$0xf0]  ;;  %v6406_v58 = vor.u32 %v6551_v15, %v6405_v14 }
  0xd1   : > { %v1423_v41 = vunpack.c.l.b16 %v1167_v32  ;;  %v1390_v44 = vshll.u32 %v1006_v39, 16  ;;  %v1382_v33 = vrot.slane %v1380_v40, 5  ;;  %v877_v2 = vld [vmem:[#allocation2 + $0x5c] sm:$0x1]  ;;  %v1386_v49 = vrot.slane %v1384_v42, 4 }
  0xd2   : > { %v1378_v48 = vrot.slane %v1377_v20, 4  ;;  %v878_v46 = vsel %vm7323_vm3, %v627_v34, %v877_v2  ;;  %v1898_v24 = vrot.slane %v6849_v21, 5  ;;  %v5979_v34 = vrot.slane %v1845_v17, 9  ;;  %5013 = vmatpush.bf16.msra.mxu0 %v6406_v58  ;;  %v6850_v20 = vld [vmem:[#allocation2 + $0x8] sm:$0x1]  ;;  %v6465_v58 = vld [vmem:[#allocation2 + $0x18] sm:$0xff] }
  0xd3   : > { %v1449_v28 = vpack.c.b16 %v1424_v29, %v1423_v41  ;;  %v957_v51 = vld [vmem:[#allocation2 + $0x54] sm:$0xf]  ;;  %v1392_v53 = vrot.slane %v1390_v44, 5  ;;  %879 = vst [vmem:[#allocation2 + $0x5c] sm:$0x1] %v878_v46  ;;  %v1387_v55 = vor.u32 %v1386_v49, %v1382_v33  ;;  %v6410_v37 = vor.u32 %v6550_v18, %v6407_v25  ;;  %v6526_v18 = vld [vmem:[#allocation6 + $0x1f0] sm:$0xff] }
  0xd4   : > { %v7772_v8 = vld [vmem:[#allocation2 + $0x58] sm:$0xf]  ;;  %v1179_v50 = vshrl.u32 %v957_v51, 16  ;;  %v1383_v54 = vsel %vm7367_vm11, %v1378_v48, %v1382_v33  ;;  %v1182_v59 = vshll.u32 %v957_v51, 16  ;;  %v1900_v39 = vrot.slane %v1898_v24, 4  ;;  %v6464_v48 = vld [vmem:[#allocation2 + $0xc] sm:$0xff]  ;;  %3907 = vmatpush.bf16.msra.mxu2 %v6526_v18 }
  0xd5   : > { %1561 = vmatmul.bf16.gmra.mxu0 %v1449_v28  ;;  %v6431_v57 = vld [vmem:[#allocation2 + $0x54] sm:$0xff]  ;;  %1839 = vmatmul.bf16.gmra.mxu3 %v6439_v45  ;;  %v1188_v62 = vshll.u32 %v7772_v8, 16  ;;  %v1192_v4 = vshrl.u32 %v7772_v8, 16  ;;  %v1388_v22 = vrot.slane %v1387_v55, 4  ;;  %v1441_v9 = vunpack.c.l.b16 %v1383_v54  ;;  %v2573_v41 = vld [vmem:[#allocation2 + $0x10] sm:$0xf] }
  0xd6   : > { %v1181_v1 = vrot.slane %v1179_v50, 4  ;;  %v1184_v35 = vrot.slane %v1182_v59, 5  ;;  %v1901_v40 = vrot.slane %v6850_v20, 5  ;;  %5102 = vmatpush.bf16.msra.mxu1 %v6410_v37  ;;  %v1899_v2 = vsel %vm7787_vm14, %v5979_v34, %v1898_v24  ;;  %v2574_v50 = vld [vmem:[#allocation2 + $0x14] sm:$0x1]  ;;  %v6496_v55 = vld [vmem:[#allocation2 + $0x18] sm:$0xff] }
  0xd7   : > { %v1190_v7 = vrot.slane %v1188_v62, 5  ;;  %v1194_v11 = vrot.slane %v1192_v4, 4  ;;  %v1393_v13 = vsel %vm7367_vm11, %v1388_v22, %v1392_v53  ;;  %1799 = vmatmul.bf16.gmra.mxu1 %v6431_v57  ;;  %v2670_v28 = vrot.slane %v2573_v41, 5  ;;  %v2572_v53 = vld [vmem:[#allocation2 + $0xc] sm:$0xe]  ;;  %v6497_v20 = vld [vmem:[#allocation2 + $0x24] sm:$0xff] }
  0xd8   : > { %v1185_v52 = vor.u32 %v1184_v35, %v1181_v1  ;;  %v1442_v16 = vunpack.c.l.b16 %v1393_v13  ;;  %v1902_v51 = vsel %vm7787_vm14, %v1900_v39, %v1901_v40  ;;  %v2025_v54 = vunpack.c.l.b16 %v1899_v2  ;;  %v1846_v14 = vld [vmem:[#allocation2 + $0xc] sm:$0xe]  ;;  %v2576_v17 = vld [vmem:[#allocation2 + $0x1c] sm:$0xf]  ;;  %v6852_v24 = vld [vmem:[#allocation2 + $0x14] sm:$0x1] }
  0xd9   : > { %v1195_v60 = vor.u32 %v1194_v11, %v1190_v7  ;;  %v2026_v57 = vunpack.c.l.b16 %v1902_v51  ;;  %v6123_v59 = vrot.slane %v2572_v53, 9  ;;  %v2672_v62 = vrot.slane %v2670_v28, 4  ;;  %v6851_v11 = vld [vmem:[#allocation2 + $0x10] sm:$0xf]  ;;  %v2577_v34 = vld [vmem:[#allocation2 + $0x20] sm:$0x1] }
  0xda   : > { %v7780_v19 = vld [vmem:[#allocation2 + $0x5c] sm:$0x1]  ;;  %v1186_v61 = vrot.slane %v1185_v52, 4  ;;  %v1458_v26 = vpack.c.b16 %v1442_v16, %v1441_v9  ;;  %v2673_v63 = vrot.slane %v2574_v50, 5  ;;  %v1905_v13 = vrot.slane %v6851_v11, 5 }
  0xdb   : > { %v1196_v27 = vrot.slane %v1195_v60, 4  ;;  %v1198_v23 = vshll.u32 %v7780_v19, 16  ;;  %v2057_v22 = vpack.c.b16 %v2026_v57, %v2025_v54  ;;  %v2671_v35 = vsel %vm7787_vm14, %v6123_v59, %v2670_v28  ;;  %v6549_v51 = vld [vmem:[#allocation8 + $0x64] sm:$0xf0]  ;;  %v6548_v53 = vld [vmem:[#allocation8 + $0x64] sm:$0xf] }
  0xdc   : > { %v1191_v0 = vsel %vm7367_vm11, %v1186_v61, %v1190_v7  ;;  %1606 = vmatmul.bf16.gmra.mxu2 %v1458_v26  ;;  %v2674_v7 = vsel %vm7787_vm14, %v2672_v62, %v2673_v63  ;;  %v2797_v15 = vunpack.c.l.b16 %v2671_v35  ;;  %v5980_v61 = vrot.slane %v1846_v14, 9  ;;  %v6399_v50 = vld [vmem:[#allocation8 + $0x68] sm:$0xf0]  ;;  %v6853_v35 = vld [vmem:[#allocation2 + $0x1c] sm:$0xf] }
  0xdd   : > { %v1200_v12 = vrot.slane %v1198_v23, 5  ;;  %v1425_v32 = vunpack.c.l.b16 %v1191_v0  ;;  %v2798_v16 = vunpack.c.l.b16 %v2674_v7  ;;  %v1907_v21 = vrot.slane %v1905_v13, 4  ;;  %v6854_v18 = vld [vmem:[#allocation2 + $0x20] sm:$0x1] }
  0xde   : > { %v1908_v25 = vrot.slane %v6852_v24, 5  ;;  %v2677_v0 = vrot.slane %v2576_v17, 5  ;;  %v1906_v37 = vsel %vm7787_vm14, %v5980_v61, %v1905_v13  ;;  %v1912_v7 = vrot.slane %v6853_v35, 5 }
  0xdf   : > { %v1201_v42 = vsel %vm7367_vm11, %v1196_v27, %v1200_v12  ;;  %v1532_v33 = vpop.f32.mrf.mxu0  ;;  %v2829_v27 = vpack.c.b16 %v2798_v16, %v2797_v15  ;;  %v2575_v12 = vld [vmem:[#allocation2 + $0x18] sm:$0xe]  ;;  %v2027_v28 = vunpack.c.l.b16 %v1906_v37  ;;  %v1915_v61 = vrot.slane %v6854_v18, 5 }
  0xe0   : > { %v1426_v44 = vunpack.c.l.b16 %v1201_v42  ;;  %v1765_v45 = vpop.f32.mrf.mxu1  ;;  %v6124_v42 = vrot.slane %v2575_v12, 9  ;;  %v1914_v17 = vrot.slane %v1912_v7, 4  ;;  %v2578_v12 = vld [vmem:[#allocation2 + $0x24] sm:$0xe] }
  0xe1   : > { %v7795_v46 = vadd.f32 %v1765_v45, %v1532_v33  ;;  %v2680_v45 = vrot.slane %v2577_v34, 5  ;;  %v6397_v33 = vld [vmem:[#allocation8 + $0x60] sm:$0xf]  ;;  %v2580_v34 = vld [vmem:[#allocation2 + $0x2c] sm:$0x1] }
  0xe2   : > { %v1450_v49 = vpack.c.b16 %v1426_v44, %v1425_v32  ;;  %v1909_v32 = vsel %vm7787_vm14, %v1907_v21, %v1908_v25  ;;  %v2679_v44 = vrot.slane %v2677_v0, 4  ;;  %v6398_v54 = vor.u32 %v6549_v51, %v6397_v33  ;;  %v2579_v21 = vld [vmem:[#allocation2 + $0x28] sm:$0xf] }
  0xe3   : > { %v2678_v63 = vsel %vm7787_vm14, %v6124_v42, %v2677_v0  ;;  %v1916_v0 = vsel %vm7787_vm14, %v1914_v17, %v1915_v61  ;;  %v6125_v42 = vrot.slane %v2578_v12, 9 }
  0xe4   : > { %5014 = vmatpush.bf16.msra.mxu0 %v6398_v54  ;;  %v2799_v13 = vunpack.c.l.b16 %v2678_v63  ;;  %v6855_v54 = vld [vmem:[#allocation2 + $0x28] sm:$0xf] }
  0xe5   : > { %1566 = vmatmul.bf16.gmra.mxu0 %v1450_v49  ;;  %2459 = vmatmul.bf16.vlgmr.msrb.gmra.mxu3 %v6464_v48  ;;  %v6534_v48 = vld [vmem:[#allocation6 + $0x230] sm:$0xff]  ;;  %v2028_v49 = vunpack.c.l.b16 %v1909_v32 }
  0xe6   : > { %4333 = vmatpush.bf16.msra.mxu3 %v6534_v48 }
  0xe7   : > { %3232 = vmatmul.bf16.vlgmr.msrb.gmra.mxu1 %v6496_v55  ;;  %v7805_v9 = vpop.f32.mrf.mxu0  ;;  %v6402_v55 = vor.u32 %v6548_v53, %v6399_v50  ;;  %v2058_v62 = vpack.c.b16 %v2028_v49, %v2027_v28 }
  0xe8   : > { %v1805_v1 = vpop.f32.mrf.mxu3  ;;  %v7799_v4 = vpop.f32.mrf.mxu1 }
  0xe9   : > { %5103 = vmatpush.bf16.msra.mxu1 %v6402_v55  ;;  %v1919_v55 = vrot.slane %v6855_v54, 5 }
  0xec   : > { %v1572_v52 = vpop.f32.mrf.mxu2  ;;  %2145 = vmatmul.bf16.vlgmr.msrb.gmra.mxu2 %v2057_v22  ;;  %v1847_v22 = vld [vmem:[#allocation2 + $0x18] sm:$0xe] }
  0xed   : > { %v7807_v60 = vadd.f32 %v1805_v1, %v1572_v52  ;;  %v2681_v1 = vsel %vm7787_vm14, %v2679_v44, %v2680_v45  ;;  %v5981_v15 = vrot.slane %v1847_v22, 9  ;;  %v2687_v45 = vrot.slane %v2580_v34, 5  ;;  %v6499_v34 = vld [vmem:[#allocation2 + $0x3c] sm:$0xff] }
  0xee   : > { %v2800_v52 = vunpack.c.l.b16 %v2681_v1 }
  0xf0   : > { %v1807_v26 = vpop.f32.mrf.mxu3  ;;  %v1770_v23 = vpop.f32.mrf.mxu1  ;;  %v2830_v25 = vpack.c.b16 %v2800_v52, %v2799_v13  ;;  %v2582_v52 = vld [vmem:[#allocation2 + $0x34] sm:$0xf] }
  0xf4   : > { %v1574_v39 = vpop.f32.mrf.mxu2  ;;  %v1537_v41 = vpop.f32.mrf.mxu0 }
  0xf5   : > { %2917 = vmatmul.bf16.vlgmr.msrb.gmra.mxu0 %v2829_v27  ;;  %v7813_v40 = vadd.f32 %v1807_v26, %v1574_v39  ;;  %2464 = vmatmul.bf16.gmra.mxu3 %v6465_v58  ;;  %v7815_v2 = vadd.f32 %v1770_v23, %v1537_v41  ;;  %v6466_v27 = vld [vmem:[#allocation2 + $0x24] sm:$0xff]  ;;  %v1913_v23 = vsel %vm7787_vm14, %v5981_v15, %v1912_v7  ;;  %v2684_v58 = vrot.slane %v2579_v21, 5  ;;  %v6467_v21 = vld [vmem:[#allocation2 + $0x30] sm:$0xff] }
  0xf6   : > { %v2029_v39 = vunpack.c.l.b16 %v1913_v23  ;;  %v2030_v41 = vunpack.c.l.b16 %v1916_v0  ;;  %v1921_v7 = vrot.slane %v1919_v55, 4  ;;  %v6525_v15 = vld [vmem:[#allocation6 + $0x1e8] sm:$0xff] }
  0xf7   : > { %3237 = vmatmul.bf16.gmra.mxu1 %v6497_v20  ;;  %v6498_v20 = vld [vmem:[#allocation2 + $0x30] sm:$0xff]  ;;  %v2686_v44 = vrot.slane %v2684_v58, 4  ;;  %v2685_v53 = vsel %vm7787_vm14, %v6125_v42, %v2684_v58  ;;  %3908 = vmatpush.bf16.msra.mxu2 %v6525_v15  ;;  %v2583_v58 = vld [vmem:[#allocation2 + $0x38] sm:$0x1] }
  0xf8   : > { %v1810_v57 = vpop.f32.mrf.mxu3  ;;  %v7817_v59 = vpop.f32.mrf.mxu1  ;;  %v2059_v51 = vpack.c.b16 %v2030_v41, %v2029_v39  ;;  %v2801_v63 = vunpack.c.l.b16 %v2685_v53  ;;  %v6533_v39 = vld [vmem:[#allocation6 + $0x228] sm:$0xff] }
  0xf9   : > { %v2688_v50 = vsel %vm7787_vm14, %v2686_v44, %v2687_v45  ;;  %v2694_v44 = vrot.slane %v2583_v58, 5  ;;  %4334 = vmatpush.bf16.msra.mxu3 %v6533_v39  ;;  %v6389_v45 = vld [vmem:[#allocation8 + $0x50] sm:$0xf]  ;;  %v6468_v58 = vld [vmem:[#allocation2 + $0x3c] sm:$0xff] }
  0xfa   : > { %v2802_v1 = vunpack.c.l.b16 %v2688_v50  ;;  %v6391_v50 = vld [vmem:[#allocation8 + $0x58] sm:$0xf0] }
  0xfc   : > { %v1577_v11 = vpop.f32.mrf.mxu2  ;;  %2150 = vmatmul.bf16.gmra.mxu2 %v2058_v62  ;;  %v7825_v16 = vpop.f32.mrf.mxu0  ;;  %v1848_v62 = vld [vmem:[#allocation2 + $0x24] sm:$0xe]  ;;  %v2831_v18 = vpack.c.b16 %v2802_v1, %v2801_v63  ;;  %v1926_v1 = vrot.slane %v7643_v31, 5 }
  0xfd   : > { %v7823_v14 = vadd.f32 %v1810_v57, %v1577_v11  ;;  %v5982_v35 = vrot.slane %v1848_v62, 9  ;;  %v6856_v11 = vld [vmem:[#allocation2 + $0x2c] sm:$0x1] }
  0xfe   : > { %v1922_v13 = vrot.slane %v6856_v11, 5 }
 0x100   : > { %v1812_v24 = vpop.f32.mrf.mxu3  ;;  %v1775_v26 = vpop.f32.mrf.mxu1  ;;  %v1923_v23 = vsel %vm7787_vm14, %v1921_v7, %v1922_v13  ;;  %v1849_v7 = vld [vmem:[#allocation2 + $0x30] sm:$0xe] }
 0x101   : > { %v2032_v41 = vunpack.c.l.b16 %v1923_v23 }
 0x104   : > { %v1579_v37 = vpop.f32.mrf.mxu2 }
 0x105   : > { %2922 = vmatmul.bf16.gmra.mxu0 %v2830_v25  ;;  %v7831_v32 = vadd.f32 %v1812_v24, %v1579_v37  ;;  %2469 = vmatmul.bf16.gmra.mxu3 %v6466_v27  ;;  %v2581_v24 = vld [vmem:[#allocation2 + $0x30] sm:$0xe]  ;;  %v2691_v25 = vrot.slane %v2582_v52, 5  ;;  %v1920_v27 = vsel %vm7787_vm14, %v5982_v35, %v1919_v55 }
 0x106   : > { %v6126_v37 = vrot.slane %v2581_v24, 9  ;;  %v1928_v24 = vrot.slane %v1926_v1, 4 }
 0x107   : > { %3242 = vmatmul.bf16.gmra.mxu1 %v6498_v20  ;;  %v2031_v20 = vunpack.c.l.b16 %v1920_v27  ;;  %v2693_v42 = vrot.slane %v2691_v25, 4 }
 0x108   : > { %v1815_v48 = vpop.f32.mrf.mxu3  ;;  %v1542_v33 = vpop.f32.mrf.mxu0  ;;  %v2692_v62 = vsel %vm7787_vm14, %v6126_v37, %v2691_v25  ;;  %v1929_v25 = vrot.slane %v7655_v47, 5  ;;  %v6500_v47 = vld [vmem:[#allocation2 + $0x48] sm:$0xff] }
 0x109   : > { %v7833_v28 = vpop.f32.mrf.mxu1  ;;  %v7835_v49 = vadd.f32 %v1775_v26, %v1542_v33  ;;  %v6546_v33 = vld [vmem:[#allocation8 + $0x54] sm:$0xf]  ;;  %v2695_v63 = vsel %vm7787_vm14, %v2693_v42, %v2694_v44  ;;  %v2803_v13 = vunpack.c.l.b16 %v2692_v62 }
 0x10a   : > { %v6394_v55 = vor.u32 %v6546_v33, %v6391_v50  ;;  %v2804_v52 = vunpack.c.l.b16 %v2695_v63  ;;  %v1930_v39 = vsel %vm7787_vm14, %v1928_v24, %v1929_v25  ;;  %v1936_v25 = vrot.slane %v7686_v56, 5  ;;  %v6501_v56 = vld [vmem:[#allocation2 + $0x54] sm:$0xff] }
 0x10c   : > { %v1582_v57 = vpop.f32.mrf.mxu2  ;;  %2155 = vmatmul.bf16.gmra.mxu2 %v2059_v51  ;;  %5104 = vmatpush.bf16.msra.mxu1 %v6394_v55  ;;  %v2832_v23 = vpack.c.b16 %v2804_v52, %v2803_v13 }
 0x10d   : > { %v7841_v22 = vadd.f32 %v1815_v48, %v1582_v57  ;;  %v6547_v48 = vld [vmem:[#allocation8 + $0x54] sm:$0xf0]  ;;  %v2060_v57 = vpack.c.b16 %v2032_v41, %v2031_v20 }
 0x10e   : > { %v6390_v53 = vor.u32 %v6547_v48, %v6389_v45 }
 0x110   : > { %v1817_v17 = vpop.f32.mrf.mxu3  ;;  %v7843_v26 = vpop.f32.mrf.mxu0  ;;  %5015 = vmatpush.bf16.msra.mxu0 %v6390_v53 }
 0x111   : > { %v1780_v61 = vpop.f32.mrf.mxu1 }
 0x114   : > { %v1584_v0 = vpop.f32.mrf.mxu2 }
 0x115   : > { %2927 = vmatmul.bf16.gmra.mxu0 %v2831_v18  ;;  %v7849_v12 = vadd.f32 %v1817_v17, %v1584_v0  ;;  %2474 = vmatmul.bf16.gmra.mxu3 %v6467_v21  ;;  %v2585_v18 = vld [vmem:[#allocation2 + $0x40] sm:$0xf]  ;;  %v5983_v21 = vrot.slane %v1849_v7, 9  ;;  %v1850_v7 = vld [vmem:[#allocation2 + $0x3c] sm:$0xe] }
 0x116   : > { %v2698_v31 = vrot.slane %v2585_v18, 5 }
 0x117   : > { %3247 = vmatmul.bf16.gmra.mxu1 %v6499_v34  ;;  %v2584_v34 = vld [vmem:[#allocation2 + $0x3c] sm:$0xe]  ;;  %v1927_v37 = vsel %vm7787_vm14, %v5983_v21, %v1926_v1  ;;  %v1933_v1 = vrot.slane %v7682_v38, 5  ;;  %v5984_v21 = vrot.slane %v1850_v7, 9  ;;  %v2587_v38 = vld [vmem:[#allocation2 + $0x48] sm:$0xe] }
 0x118   : > { %v1820_v51 = vpop.f32.mrf.mxu3  ;;  %v6127_v44 = vrot.slane %v2584_v34, 9  ;;  %v2700_v45 = vrot.slane %v2698_v31, 4  ;;  %v2033_v33 = vunpack.c.l.b16 %v1927_v37 }
 0x119   : > { %v1782_v54 = vpop.f32.mrf.mxu1  ;;  %v1935_v24 = vrot.slane %v1933_v1, 4 }
 0x11c   : > { %v1587_v35 = vpop.f32.mrf.mxu2  ;;  %v1547_v11 = vpop.f32.mrf.mxu0  ;;  %2160 = vmatmul.bf16.gmra.mxu2 %v2060_v57  ;;  %v2699_v57 = vsel %vm7787_vm14, %v6127_v44, %v2698_v31  ;;  %v6469_v31 = vld [vmem:[#allocation2 + $0x48] sm:$0xff]  ;;  %v6128_v44 = vrot.slane %v2587_v38, 9 }
 0x11d   : > { %v7856_v15 = vadd.f32 %v1820_v51, %v1587_v35  ;;  %v7858_v17 = vadd.f32 %v1780_v61, %v1547_v11  ;;  %v2586_v61 = vld [vmem:[#allocation2 + $0x44] sm:$0x1]  ;;  %v2034_v51 = vunpack.c.l.b16 %v1930_v39  ;;  %v2805_v11 = vunpack.c.l.b16 %v2699_v57 }
 0x11e   : > { %v2701_v53 = vrot.slane %v2586_v61, 5  ;;  %v1934_v39 = vsel %vm7787_vm14, %v5984_v21, %v1933_v1  ;;  %v1937_v61 = vsel %vm7787_vm14, %v1935_v24, %v1936_v25  ;;  %v6544_v21 = vld [vmem:[#allocation8 + $0x44] sm:$0xf] }
 0x11f   : > { %v2061_v55 = vpack.c.b16 %v2034_v51, %v2033_v33  ;;  %v2035_v51 = vunpack.c.l.b16 %v1934_v39 }
 0x120   : > { %v1822_v27 = vpop.f32.mrf.mxu3  ;;  %v2702_v62 = vsel %vm7787_vm14, %v2700_v45, %v2701_v53  ;;  %v6532_v45 = vld [vmem:[#allocation6 + $0x220] sm:$0xff]  ;;  %v2036_v53 = vunpack.c.l.b16 %v1937_v61 }
 0x121   : > { %v1785_v0 = vpop.f32.mrf.mxu1  ;;  %4335 = vmatpush.bf16.msra.mxu3 %v6532_v45  ;;  %v6470_v45 = vld [vmem:[#allocation2 + $0x54] sm:$0xff] }
 0x122   : > { %v2062_v1 = vpack.c.b16 %v2036_v53, %v2035_v51 }
 0x124   : > { %v1589_v20 = vpop.f32.mrf.mxu2  ;;  %v1549_v41 = vpop.f32.mrf.mxu0 }
 0x125   : > { %2932 = vmatmul.bf16.gmra.mxu0 %v2832_v23  ;;  %v7865_v42 = vadd.f32 %v1822_v27, %v1589_v20  ;;  %2479 = vmatmul.bf16.gmra.mxu3 %v6468_v58  ;;  %v7867_v48 = vadd.f32 %v1782_v54, %v1549_v41  ;;  %v2806_v54 = vunpack.c.l.b16 %v2702_v62  ;;  %v2588_v27 = vld [vmem:[#allocation2 + $0x4c] sm:$0xf]  ;;  %v2589_v20 = vld [vmem:[#allocation2 + $0x50] sm:$0x1] }
 0x126   : > { %v2705_v37 = vrot.slane %v2588_v27, 5  ;;  %v1851_v27 = vld [vmem:[#allocation2 + $0x48] sm:$0xe] }
 0x127   : > { %3252 = vmatmul.bf16.gmra.mxu1 %v6500_v47  ;;  %v2833_v58 = vpack.c.b16 %v2806_v54, %v2805_v11  ;;  %v1940_v11 = vrot.slane %v7745_v36, 5  ;;  %v6381_v54 = vld [vmem:[#allocation8 + $0x40] sm:$0xf] }
 0x128   : > { %v1825_v50 = vpop.f32.mrf.mxu3 }
 0x129   : > { %v1787_v63 = vpop.f32.mrf.mxu1  ;;  %v1942_v36 = vrot.slane %v1940_v11, 4 }
 0x12c   : > { %v1592_v35 = vpop.f32.mrf.mxu2  ;;  %2165 = vmatmul.bf16.gmra.mxu2 %v2061_v55  ;;  %v2708_v55 = vrot.slane %v2589_v20, 5  ;;  %v5985_v20 = vrot.slane %v1851_v27, 9 }
 0x12d   : > { %v7874_v13 = vadd.f32 %v1825_v50, %v1592_v35  ;;  %v2707_v50 = vrot.slane %v2705_v37, 4  ;;  %v2706_v35 = vsel %vm7787_vm14, %v6128_v44, %v2705_v37 }
 0x12e   : > { %v1552_v52 = vpop.f32.mrf.mxu0  ;;  %v1941_v53 = vsel %vm7787_vm14, %v5985_v20, %v1940_v11 }
 0x12f   : > { %v7876_v18 = vadd.f32 %v1785_v0, %v1552_v52  ;;  %v6524_v0 = vld [vmem:[#allocation6 + $0x1e0] sm:$0xff]  ;;  %v2709_v7 = vsel %vm7787_vm14, %v2707_v50, %v2708_v55  ;;  %v6545_v52 = vld [vmem:[#allocation8 + $0x44] sm:$0xf0] }
 0x130   : > { %v1827_v23 = vpop.f32.mrf.mxu3  ;;  %3909 = vmatpush.bf16.msra.mxu2 %v6524_v0  ;;  %v1943_v0 = vrot.slane %v7757_v3, 5  ;;  %v2592_v55 = vld [vmem:[#allocation2 + $0x5c] sm:$0x1]  ;;  %v6502_v3 = vld [vmem:[#allocation2 + $0x60] sm:$0xff] }
 0x131   : > { %v1790_v34 = vpop.f32.mrf.mxu1 }
 0x132   : > { %v1944_v50 = vsel %vm7787_vm14, %v1942_v36, %v1943_v0 }
 0x134   : > { %v1594_v41 = vpop.f32.mrf.mxu2 }
 0x135   : > { %2937 = vmatmul.bf16.gmra.mxu0 %v2833_v58  ;;  %v7883_v47 = vadd.f32 %v1827_v23, %v1594_v41  ;;  %2484 = vmatmul.bf16.gmra.mxu3 %v6469_v31  ;;  %v6383_v23 = vld [vmem:[#allocation8 + $0x48] sm:$0xf0]  ;;  %v2807_v58 = vunpack.c.l.b16 %v2706_v35  ;;  %v2808_v31 = vunpack.c.l.b16 %v2709_v7  ;;  %v2591_v41 = vld [vmem:[#allocation2 + $0x58] sm:$0xf] }
 0x136   : > { %v1554_v33 = vpop.f32.mrf.mxu0  ;;  %v6386_v39 = vor.u32 %v6544_v21, %v6383_v23  ;;  %v2712_v51 = vrot.slane %v2591_v41, 5 }
 0x137   : > { %v7885_v57 = vadd.f32 %v1787_v63, %v1554_v33  ;;  %3257 = vmatmul.bf16.gmra.mxu1 %v6501_v56  ;;  %v6382_v63 = vor.u32 %v6545_v52, %v6381_v54  ;;  %v2834_v44 = vpack.c.b16 %v2808_v31, %v2807_v58  ;;  %v2590_v33 = vld [vmem:[#allocation2 + $0x54] sm:$0xe]  ;;  %v2037_v54 = vunpack.c.l.b16 %v1941_v53  ;;  %v6471_v53 = vld [vmem:[#allocation2 + $0x60] sm:$0xff] }
 0x138   : > { %v1830_v62 = vpop.f32.mrf.mxu3  ;;  %5105 = vmatpush.bf16.msra.mxu1 %v6386_v39  ;;  %v2038_v52 = vunpack.c.l.b16 %v1944_v50  ;;  %v2714_v21 = vrot.slane %v2712_v51, 4  ;;  %v1947_v31 = vrot.slane %v7772_v8, 5  ;;  %v1852_v39 = vld [vmem:[#allocation2 + $0x54] sm:$0xe] }
 0x139   : > { %v1792_v25 = vpop.f32.mrf.mxu1  ;;  %5016 = vmatpush.bf16.msra.mxu0 %v6382_v63 }
 0x13a   : > { %v2063_v63 = vpack.c.b16 %v2038_v52, %v2037_v54  ;;  %v1949_v41 = vrot.slane %v1947_v31, 4  ;;  %v2595_v54 = vld [vmem:[#allocation2 + $0x68] sm:$0x1] }
 0x13c   : > { %v1597_v24 = vpop.f32.mrf.mxu2  ;;  %2170 = vmatmul.bf16.gmra.mxu2 %v2062_v1  ;;  %v6129_v1 = vrot.slane %v2590_v33, 9 }
 0x13d   : > { %v7892_v38 = vadd.f32 %v1830_v62, %v1597_v24  ;;  %v2715_v24 = vrot.slane %v2592_v55, 5  ;;  %v2593_v55 = vld [vmem:[#allocation2 + $0x60] sm:$0xe] }
 0x13e   : > { %v1557_v61 = vpop.f32.mrf.mxu0  ;;  %v2713_v23 = vsel %vm7787_vm14, %v6129_v1, %v2712_v51 }
 0x13f   : > { %v7894_v37 = vadd.f32 %v1790_v34, %v1557_v61  ;;  %v2716_v58 = vsel %vm7787_vm14, %v2714_v21, %v2715_v24  ;;  %v2809_v61 = vunpack.c.l.b16 %v2713_v23  ;;  %v6503_v21 = vld [vmem:[#allocation2 + $0x6c] sm:$0xff]  ;;  %v6130_v24 = vrot.slane %v2593_v55, 9 }
 0x140   : > { %v1832_v56 = vpop.f32.mrf.mxu3  ;;  %v2810_v20 = vunpack.c.l.b16 %v2716_v58 }
 0x142   : > { %v2835_v51 = vpack.c.b16 %v2810_v20, %v2809_v61  ;;  %v2722_v61 = vrot.slane %v2595_v54, 5  ;;  %v6375_v54 = vld [vmem:[#allocation8 + $0x38] sm:$0xf0] }
 0x144   : > { %v1599_v34 = vpop.f32.mrf.mxu2  ;;  %v1795_v7 = vpop.f32.mrf.mxu1 }
 0x145   : > { %2942 = vmatmul.bf16.gmra.mxu0 %v2834_v44  ;;  %v7901_v62 = vadd.f32 %v1832_v56, %v1599_v34  ;;  %2489 = vmatmul.bf16.gmra.mxu3 %v6470_v45  ;;  %v1950_v56 = vrot.slane %v7780_v19, 5  ;;  %v5986_v44 = vrot.slane %v1852_v39, 9  ;;  %v2594_v45 = vld [vmem:[#allocation2 + $0x64] sm:$0xf] }
 0x146   : > { %v1559_v35 = vpop.f32.mrf.mxu0  ;;  %v2719_v34 = vrot.slane %v2594_v45, 5 }
 0x147   : > { %v7903_v27 = vadd.f32 %v1792_v25, %v1559_v35  ;;  %3262 = vmatmul.bf16.gmra.mxu1 %v6502_v3  ;;  %v1951_v8 = vsel %vm7787_vm14, %v1949_v41, %v1950_v56  ;;  %v6523_v3 = vld [vmem:[#allocation6 + $0x1d8] sm:$0xff]  ;;  %v1948_v35 = vsel %vm7787_vm14, %v5986_v44, %v1947_v31  ;;  %v6373_v56 = vld [vmem:[#allocation8 + $0x30] sm:$0xf] }
 0x148   : > { %v1835_v11 = vpop.f32.mrf.mxu3  ;;  %3910 = vmatpush.bf16.msra.mxu2 %v6523_v3  ;;  %v2040_v52 = vunpack.c.l.b16 %v1951_v8  ;;  %v2039_v58 = vunpack.c.l.b16 %v1948_v35  ;;  %v2721_v39 = vrot.slane %v2719_v34, 4  ;;  %v6543_v44 = vld [vmem:[#allocation8 + $0x34] sm:$0xf0]  ;;  %v6542_v35 = vld [vmem:[#allocation8 + $0x34] sm:$0xf] }
 0x14a   : > { %v2064_v31 = vpack.c.b16 %v2040_v52, %v2039_v58  ;;  %v2723_v41 = vsel %vm7787_vm14, %v2721_v39, %v2722_v61  ;;  %v6858_v52 = vld [vmem:[#allocation2 + $0x68] sm:$0x1]  ;;  %v6472_v61 = vld [vmem:[#allocation2 + $0x6c] sm:$0xff] }
 0x14b   : > { %v2812_v55 = vunpack.c.l.b16 %v2723_v41 }
 0x14c   : > { %v1602_v36 = vpop.f32.mrf.mxu2  ;;  %2175 = vmatmul.bf16.gmra.mxu2 %v2063_v63  ;;  %v1797_v25 = vpop.f32.mrf.mxu1 }
 0x14d   : > { %v7910_v0 = vadd.f32 %v1835_v11, %v1602_v36  ;;  %v6531_v11 = vld [vmem:[#allocation6 + $0x218] sm:$0xff]  ;;  %v2720_v36 = vsel %vm7787_vm14, %v6130_v24, %v2719_v34 }
 0x14e   : > { %4336 = vmatpush.bf16.msra.mxu3 %v6531_v11  ;;  %v2811_v8 = vunpack.c.l.b16 %v2720_v36  ;;  %v2597_v24 = vld [vmem:[#allocation2 + $0x70] sm:$0xf]  ;;  %v6378_v11 = vor.u32 %v6542_v35, %v6375_v54  ;;  %v2596_v36 = vld [vmem:[#allocation2 + $0x6c] sm:$0xe] }
 0x14f   : > { %8961 = vst [vmem:[#allocation20_spill] sm:$0xff] %v7910_v0  ;;  %v2726_v41 = vrot.slane %v2597_v24, 5 }
 0x150   : > { %v1837_v33 = vpop.f32.mrf.mxu3  ;;  %5106 = vmatpush.bf16.msra.mxu1 %v6378_v11 }
 0x152   : > { %v1562_v50 = vpop.f32.mrf.mxu0 }
 0x153   : > { %v7915_v1 = vadd.f32 %v1795_v7, %v1562_v50  ;;  %v1853_v50 = vld [vmem:[#allocation2 + $0x60] sm:$0xe] }
 0x154   : > { %v1604_v19 = vpop.f32.mrf.mxu2  ;;  %v1800_v23 = vpop.f32.mrf.mxu1 }
 0x155   : > { %2947 = vmatmul.bf16.gmra.mxu0 %v2835_v51  ;;  %2494 = vmatmul.bf16.gmra.mxu3 %v6471_v53  ;;  %v7919_v63 = vadd.f32 %v1837_v33, %v1604_v19  ;;  %v6857_v33 = vld [vmem:[#allocation2 + $0x64] sm:$0xf]  ;;  %v6374_v53 = vor.u32 %v6543_v44, %v6373_v56  ;;  %v5987_v19 = vrot.slane %v1853_v50, 9  ;;  %v6504_v50 = vld [vmem:[#allocation2 + $0x78] sm:$0xff] }
 0x156   : > { %v1954_v51 = vrot.slane %v6857_v33, 5 }
 0x157   : > { %8962 = vst [vmem:[#allocation21_spill] sm:$0xff] %v7919_v63  ;;  %3267 = vmatmul.bf16.gmra.mxu1 %v6503_v21  ;;  %5017 = vmatpush.bf16.msra.mxu0 %v6374_v53  ;;  %v1957_v21 = vrot.slane %v6858_v52, 5  ;;  %v2598_v53 = vld [vmem:[#allocation2 + $0x74] sm:$0x1] }
 0x158   : > { %v1840_v7 = vpop.f32.mrf.mxu3  ;;  %v1956_v34 = vrot.slane %v1954_v51, 4  ;;  %v1955_v44 = vsel %vm7787_vm14, %v5987_v19, %v1954_v51  ;;  %v2729_v52 = vrot.slane %v2598_v53, 5  ;;  %v2600_v53 = vld [vmem:[#allocation2 + $0x7c] sm:$0xf] }
 0x159   : > { %v2041_v35 = vunpack.c.l.b16 %v1955_v44 }
 0x15a   : > { %v1564_v20 = vpop.f32.mrf.mxu0  ;;  %v1958_v33 = vsel %vm7787_vm14, %v1956_v34, %v1957_v21 }
 0x15b   : > { %v7925_v45 = vadd.f32 %v1797_v25, %v1564_v20  ;;  %v2836_v25 = vpack.c.b16 %v2812_v55, %v2811_v8  ;;  %v6131_v8 = vrot.slane %v2596_v36, 9  ;;  %v2042_v54 = vunpack.c.l.b16 %v1958_v33 }
 0x15c   : > { %2180 = vmatmul.bf16.gmra.mxu2 %v2064_v31  ;;  %v1802_v3 = vpop.f32.mrf.mxu1 }
 0x15d   : > { %v2065_v51 = vpack.c.b16 %v2042_v54, %v2041_v35  ;;  %v2727_v19 = vsel %vm7787_vm14, %v6131_v8, %v2726_v41  ;;  %v6860_v35 = vld [vmem:[#allocation2 + $0x74] sm:$0x1] }
 0x15e   : > { %v2813_v36 = vunpack.c.l.b16 %v2727_v19  ;;  %v1964_v54 = vrot.slane %v6860_v35, 5 }
 0x15f   : > { %v1607_v39 = vpop.f32.mrf.mxu2 }
 0x160   : > { %v1842_v58 = vpop.f32.mrf.mxu3  ;;  %v7927_v56 = vadd.f32 %v1840_v7, %v1607_v39  ;;  %v2728_v7 = vrot.slane %v2726_v41, 4 }
 0x162   : > { %v1567_v20 = vpop.f32.mrf.mxu0  ;;  %8963 = vst [vmem:[#allocation22_spill] sm:$0xff] %v7927_v56  ;;  %v2730_v34 = vsel %vm7787_vm14, %v2728_v7, %v2729_v52  ;;  %v2733_v7 = vrot.slane %v2600_v53, 5  ;;  %v6530_v53 = vld [vmem:[#allocation6 + $0x210] sm:$0xff] }
 0x163   : > { %v7929_v31 = vadd.f32 %v1800_v23, %v1567_v20  ;;  %v1854_v20 = vld [vmem:[#allocation2 + $0x6c] sm:$0xe]  ;;  %v2814_v44 = vunpack.c.l.b16 %v2730_v34  ;;  %v2601_v34 = vld [vmem:[#allocation2 + $0x80] sm:$0x1]  ;;  %4337 = vmatpush.bf16.msra.mxu3 %v6530_v53  ;;  %v2603_v53 = vld [vmem:[#allocation2 + $0x88] sm:$0xf] }
 0x164   : > { %v3233_v55 = vpop.f32.mrf.mxu1  ;;  %v2735_v35 = vrot.slane %v2733_v7, 4  ;;  %v2736_v0 = vrot.slane %v2601_v34, 5 }
 0x165   : > { %2952 = vmatmul.bf16.gmra.mxu0 %v2836_v25  ;;  %2499 = vmatmul.bf16.gmra.mxu3 %v6472_v61  ;;  %v6859_v25 = vld [vmem:[#allocation2 + $0x70] sm:$0xf]  ;;  %v2837_v41 = vpack.c.b16 %v2814_v44, %v2813_v36  ;;  %v6505_v36 = vld [vmem:[#allocation2 + $0x84] sm:$0xff] }
 0x166   : > { %v1961_v61 = vrot.slane %v6859_v25, 5  ;;  %v6522_v25 = vld [vmem:[#allocation6 + $0x1d0] sm:$0xff] }
 0x167   : > { %v1609_v24 = vpop.f32.mrf.mxu2  ;;  %3272 = vmatmul.bf16.gmra.mxu1 %v6504_v50  ;;  %3911 = vmatpush.bf16.msra.mxu2 %v6522_v25  ;;  %v6541_v25 = vld [vmem:[#allocation8 + $0x24] sm:$0xf0] }
 0x168   : > { %v2460_v11 = vpop.f32.mrf.mxu3  ;;  %v7935_v39 = vadd.f32 %v1842_v58, %v1609_v24  ;;  %v5988_v58 = vrot.slane %v1854_v20, 9  ;;  %v1963_v50 = vrot.slane %v1961_v61, 4 }
 0x16a   : > { %v1569_v23 = vpop.f32.mrf.mxu0  ;;  %8964 = vst [vmem:[#allocation23_spill] sm:$0xff] %v7935_v39  ;;  %v6473_v39 = vld [vmem:[#allocation2 + $0x78] sm:$0xff]  ;;  %v1965_v19 = vsel %vm7787_vm14, %v1963_v50, %v1964_v54 }
 0x16b   : > { %v7941_v21 = vadd.f32 %v1802_v3, %v1569_v23  ;;  %v2599_v23 = vld [vmem:[#allocation2 + $0x78] sm:$0xe] }
 0x16c   : > { %2185 = vmatmul.bf16.gmra.mxu2 %v2065_v51  ;;  %v7943_v33 = vpop.f32.mrf.mxu1  ;;  %v1962_v51 = vsel %vm7787_vm14, %v5988_v58, %v1961_v61  ;;  %v6132_v44 = vrot.slane %v2599_v23, 9  ;;  %v1768_v61 = vadd.f32 %v7799_v4, %v7805_v9  ;;  %v6365_v23 = vld [vmem:[#allocation8 + $0x20] sm:$0xf] }
 0x16d   : > { %v6366_v34 = vor.u32 %v6541_v25, %v6365_v23  ;;  %v1855_v9 = vld [vmem:[#allocation2 + $0x78] sm:$0xe]  ;;  %v2602_v23 = vld [vmem:[#allocation2 + $0x84] sm:$0xe] }
 0x16f   : > { %v2146_v8 = vpop.f32.mrf.mxu2  ;;  %5018 = vmatpush.bf16.msra.mxu0 %v6366_v34 }
 0x170   : > { %v2462_v24 = vpop.f32.mrf.mxu3  ;;  %v2226_v52 = vadd.f32 %v2146_v8, %v7795_v46  ;;  %v2043_v46 = vunpack.c.l.b16 %v1962_v51  ;;  %v2044_v8 = vunpack.c.l.b16 %v1965_v19  ;;  %v6861_v51 = vld [vmem:[#allocation2 + $0x7c] sm:$0xf] }
 0x171   : > { %v1968_v19 = vrot.slane %v6861_v51, 5 }
 0x172   : > { %v2918_v3 = vpop.f32.mrf.mxu0  ;;  %v2540_v20 = vadd.f32 %v2460_v11, %v2226_v52  ;;  %v2734_v52 = vsel %vm7787_vm14, %v6132_v44, %v2733_v7  ;;  %v5989_v7 = vrot.slane %v1855_v9, 9 }
 0x173   : > { %v1970_v44 = vrot.slane %v1968_v19, 4 }
 0x174   : > { %v2998_v56 = vadd.f32 %v2918_v3, %v2540_v20  ;;  %v3238_v63 = vpop.f32.mrf.mxu1  ;;  %v2737_v3 = vsel %vm7787_vm14, %v2735_v35, %v2736_v0  ;;  %v1969_v25 = vsel %vm7787_vm14, %v5989_v7, %v1968_v19 }
 0x175   : > { %2957 = vmatmul.bf16.gmra.mxu0 %v2837_v41  ;;  %2504 = vmatmul.bf16.gmra.mxu3 %v6473_v39  ;;  %v2066_v41 = vpack.c.b16 %v2044_v8, %v2043_v46  ;;  %v6540_v46 = vld [vmem:[#allocation8 + $0x24] sm:$0xf]  ;;  %v6367_v8 = vld [vmem:[#allocation8 + $0x28] sm:$0xf0] }
 0x176   : > { %v7952_v50 = vadd.f32 %v3233_v55, %v2998_v56  ;;  %v2815_v56 = vunpack.c.l.b16 %v2734_v52  ;;  %v2816_v55 = vunpack.c.l.b16 %v2737_v3  ;;  %v6370_v35 = vor.u32 %v6540_v46, %v6367_v8  ;;  %v6474_v52 = vld [vmem:[#allocation2 + $0x84] sm:$0xff] }
 0x177   : > { %v2148_v11 = vpop.f32.mrf.mxu2  ;;  %3277 = vmatmul.bf16.gmra.mxu1 %v6505_v36  ;;  %v2740_v3 = vrot.slane %v2603_v53, 5  ;;  %v2045_v46 = vunpack.c.l.b16 %v1969_v25 }
 0x178   : > { %v2465_v58 = vpop.f32.mrf.mxu3  ;;  %v2227_v39 = vadd.f32 %v2148_v11, %v1768_v61  ;;  %v6862_v61 = vld [vmem:[#allocation2 + $0x80] sm:$0x1]  ;;  %5107 = vmatpush.bf16.msra.mxu1 %v6370_v35 }
 0x179   : > { %v1971_v0 = vrot.slane %v6862_v61, 5 }
 0x17a   : > { %v2920_v54 = vpop.f32.mrf.mxu0  ;;  %v2541_v4 = vadd.f32 %v2462_v24, %v2227_v39  ;;  %v2838_v24 = vpack.c.b16 %v2816_v55, %v2815_v56  ;;  %v6133_v56 = vrot.slane %v2602_v23, 9  ;;  %v2742_v55 = vrot.slane %v2740_v3, 4  ;;  %v1856_v23 = vld [vmem:[#allocation2 + $0x84] sm:$0xe] }
 0x17b   : > { %v1972_v34 = vsel %vm7787_vm14, %v1970_v44, %v1971_v0 }
 0x17c   : > { %v2999_v20 = vadd.f32 %v2920_v54, %v2541_v4  ;;  %2190 = vmatmul.bf16.gmra.mxu2 %v2066_v41  ;;  %v3240_v36 = vpop.f32.mrf.mxu1  ;;  %v2604_v4 = vld [vmem:[#allocation2 + $0x8c] sm:$0x1]  ;;  %v2046_v8 = vunpack.c.l.b16 %v1972_v34  ;;  %v2606_v34 = vld [vmem:[#allocation2 + $0x94] sm:$0xf] }
 0x17d   : > { %v2743_v61 = vrot.slane %v2604_v4, 5  ;;  %v5990_v4 = vrot.slane %v1856_v23, 9 }
 0x17e   : > { %v7959_v51 = vadd.f32 %v7943_v33, %v2999_v20  ;;  %v6506_v33 = vld [vmem:[#allocation2 + $0x90] sm:$0xff]  ;;  %v2067_v0 = vpack.c.b16 %v2046_v8, %v2045_v46 }
 0x17f   : > { %v2151_v39 = vpop.f32.mrf.mxu2  ;;  %v6475_v8 = vld [vmem:[#allocation2 + $0x90] sm:$0xff] }
 0x180   : > { %v2467_v11 = vpop.f32.mrf.mxu3  ;;  %v2228_v41 = vadd.f32 %v2151_v39, %v7815_v2  ;;  %v1773_v2 = vadd.f32 %v7817_v59, %v7825_v16  ;;  %v2744_v39 = vsel %vm7787_vm14, %v2742_v55, %v2743_v61  ;;  %v2747_v61 = vrot.slane %v2606_v34, 5 }
 0x181   : > { %v2818_v59 = vunpack.c.l.b16 %v2744_v39 }
 0x182   : > { %v2923_v54 = vpop.f32.mrf.mxu0  ;;  %v2542_v9 = vadd.f32 %v2465_v58, %v2228_v41 }
 0x184   : > { %v3000_v20 = vadd.f32 %v2923_v54, %v2542_v9  ;;  %v3243_v53 = vpop.f32.mrf.mxu1 }
 0x185   : > { %2962 = vmatmul.bf16.gmra.mxu0 %v2838_v24  ;;  %2509 = vmatmul.bf16.gmra.mxu3 %v6474_v52  ;;  %v2741_v24 = vsel %vm7787_vm14, %v6133_v56, %v2740_v3  ;;  %v6863_v52 = vld [vmem:[#allocation2 + $0x88] sm:$0xf] }
 0x186   : > { %v7968_v19 = vadd.f32 %v3238_v63, %v3000_v20  ;;  %v1975_v54 = vrot.slane %v6863_v52, 5  ;;  %v2817_v25 = vunpack.c.l.b16 %v2741_v24 }
 0x187   : > { %v2153_v7 = vpop.f32.mrf.mxu2  ;;  %3282 = vmatmul.bf16.gmra.mxu1 %v6506_v33  ;;  %v6864_v33 = vld [vmem:[#allocation2 + $0x8c] sm:$0x1] }
 0x188   : > { %v2470_v35 = vpop.f32.mrf.mxu3  ;;  %v2229_v58 = vadd.f32 %v2153_v7, %v1773_v2  ;;  %v1977_v9 = vrot.slane %v1975_v54, 4  ;;  %v1978_v20 = vrot.slane %v6864_v33, 5  ;;  %v2839_v56 = vpack.c.b16 %v2818_v59, %v2817_v25  ;;  %v2605_v7 = vld [vmem:[#allocation2 + $0x90] sm:$0xe]  ;;  %v6529_v25 = vld [vmem:[#allocation6 + $0x208] sm:$0xff] }
 0x189   : > { %v6134_v52 = vrot.slane %v2605_v7, 9  ;;  %4338 = vmatpush.bf16.msra.mxu3 %v6529_v25  ;;  %v1857_v7 = vld [vmem:[#allocation2 + $0x90] sm:$0xe]  ;;  %v6359_v25 = vld [vmem:[#allocation8 + $0x18] sm:$0xf0] }
 0x18a   : > { %v2925_v44 = vpop.f32.mrf.mxu0  ;;  %v2543_v41 = vadd.f32 %v2467_v11, %v2229_v58  ;;  %v6521_v58 = vld [vmem:[#allocation6 + $0x1c8] sm:$0xff]  ;;  %v1979_v24 = vsel %vm7787_vm14, %v1977_v9, %v1978_v20 }
 0x18b   : > { %3912 = vmatpush.bf16.msra.mxu2 %v6521_v58  ;;  %v2048_v34 = vunpack.c.l.b16 %v1979_v24  ;;  %v2748_v33 = vsel %vm7787_vm14, %v6134_v52, %v2747_v61  ;;  %v6539_v58 = vld [vmem:[#allocation8 + $0x14] sm:$0xf0]  ;;  %v5991_v24 = vrot.slane %v1857_v7, 9  ;;  %v6866_v52 = vld [vmem:[#allocation2 + $0x98] sm:$0x1] }
 0x18c   : > { %v3001_v16 = vadd.f32 %v2925_v44, %v2543_v41  ;;  %2195 = vmatmul.bf16.gmra.mxu2 %v2067_v0  ;;  %v7974_v63 = vpop.f32.mrf.mxu1  ;;  %v2607_v44 = vld [vmem:[#allocation2 + $0x98] sm:$0x1]  ;;  %v1976_v0 = vsel %vm7787_vm14, %v5990_v4, %v1975_v54  ;;  %v2749_v41 = vrot.slane %v2747_v61, 4  ;;  %v1778_v54 = vadd.f32 %v7833_v28, %v7843_v26  ;;  %v2608_v7 = vld [vmem:[#allocation2 + $0x9c] sm:$0xe] }
 0x18d   : > { %v2750_v23 = vrot.slane %v2607_v44, 5  ;;  %v6357_v44 = vld [vmem:[#allocation8 + $0x10] sm:$0xf] }
 0x18e   : > { %v7976_v3 = vadd.f32 %v3240_v36, %v3001_v16  ;;  %v6507_v36 = vld [vmem:[#allocation2 + $0x9c] sm:$0xff]  ;;  %v2047_v16 = vunpack.c.l.b16 %v1976_v0  ;;  %v6358_v28 = vor.u32 %v6539_v58, %v6357_v44 }
 0x18f   : > { %v2156_v55 = vpop.f32.mrf.mxu2  ;;  %v2751_v20 = vsel %vm7787_vm14, %v2749_v41, %v2750_v23  ;;  %v1985_v41 = vrot.slane %v6866_v52, 5  ;;  %v6538_v23 = vld [vmem:[#allocation8 + $0x14] sm:$0xf]  ;;  %v2610_v52 = vld [vmem:[#allocation2 + $0xa4] sm:$0x1] }
 0x190   : > { %v2472_v46 = vpop.f32.mrf.mxu3  ;;  %v2230_v2 = vadd.f32 %v2156_v55, %v7835_v49  ;;  %v2820_v0 = vunpack.c.l.b16 %v2751_v20  ;;  %5019 = vmatpush.bf16.msra.mxu0 %v6358_v28 }
 0x192   : > { %v2928_v11 = vpop.f32.mrf.mxu0  ;;  %v2544_v39 = vadd.f32 %v2470_v35, %v2230_v2  ;;  %v2068_v2 = vpack.c.b16 %v2048_v34, %v2047_v16  ;;  %v6362_v16 = vor.u32 %v6538_v23, %v6359_v25  ;;  %v454_v34 = vld [vmem:[#allocation2 + $0xc0] sm:$0x1] }
 0x193   : > { %v455_v20 = vsel %vm7323_vm3, 0, %v454_v34  ;;  %v6135_v34 = vrot.slane %v2608_v7, 9 }
 0x194   : > { %v3002_v59 = vadd.f32 %v2928_v11, %v2544_v39  ;;  %v7983_v49 = vpop.f32.mrf.mxu1  ;;  %5108 = vmatpush.bf16.msra.mxu1 %v6362_v16  ;;  %456 = vst [vmem:[#allocation2 + $0xc0] sm:$0x1] %v455_v20 }
 0x195   : > { %2967 = vmatmul.bf16.gmra.mxu0 %v2839_v56  ;;  %2514 = vmatmul.bf16.gmra.mxu3 %v6475_v8  ;;  %v6865_v56 = vld [vmem:[#allocation2 + $0x94] sm:$0xf] }
 0x196   : > { %v7987_v9 = vadd.f32 %v3243_v53, %v3002_v59  ;;  %v1982_v55 = vrot.slane %v6865_v56, 5  ;;  %v2819_v53 = vunpack.c.l.b16 %v2748_v33  ;;  %v2609_v59 = vld [vmem:[#allocation2 + $0xa0] sm:$0xf]  ;;  %v365_v33 = vld [vmem:[%s7311_s11 + $0xf8] sm:$0xff] }
 0x197   : > { %v2158_v35 = vpop.f32.mrf.mxu2  ;;  %3287 = vmatmul.bf16.gmra.mxu1 %v6507_v36  ;;  %v397_v58 = vpack.c.bf16 %v365_v33, %v365_v33 }
 0x198   : > { %v2475_v4 = vpop.f32.mrf.mxu3  ;;  %8965 = vst [vmem:[#allocation24_spill] sm:$0xff] %v7987_v9  ;;  %v2231_v11 = vadd.f32 %v2158_v35, %v1778_v54  ;;  %v1984_v36 = vrot.slane %v1982_v55, 4  ;;  %v2840_v54 = vpack.c.b16 %v2820_v0, %v2819_v53  ;;  %v364_v35 = vld [vmem:[%s7311_s11 + $0xf0] sm:$0xff]  ;;  %v2754_v0 = vrot.slane %v2609_v59, 5 }
 0x199   : > { %v396_v44 = vpack.c.bf16 %v364_v35, %v364_v35 }
 0x19a   : > { %v2930_v8 = vpop.f32.mrf.mxu0  ;;  %v2545_v26 = vadd.f32 %v2472_v46, %v2231_v11  ;;  %v1983_v11 = vsel %vm7787_vm14, %v5991_v24, %v1982_v55  ;;  %v1986_v53 = vsel %vm7787_vm14, %v1984_v36, %v1985_v41  ;;  %v6508_v24 = vld [vmem:[#allocation2 + $0xa8] sm:$0xff]  ;;  %v2757_v36 = vrot.slane %v2610_v52, 5  ;;  %v6867_v52 = vld [vmem:[#allocation2 + $0xa0] sm:$0xf] }
 0x19b   : > { %v2049_v25 = vunpack.c.l.b16 %v1983_v11  ;;  %v2050_v55 = vunpack.c.l.b16 %v1986_v53  ;;  %v768_v35 = vshll.u32 %v396_v44, 16  ;;  %v776_v41 = vshll.u32 %v397_v58, 16  ;;  %v936_v11 = vld [vmem:[#allocation2 + $0xc0] sm:$0xf] }
 0x19c   : > { %v3003_v61 = vadd.f32 %v2930_v8, %v2545_v26  ;;  %2200 = vmatmul.bf16.gmra.mxu2 %v2068_v2  ;;  %v7993_v39 = vpop.f32.mrf.mxu1  ;;  %v6476_v2 = vld [vmem:[#allocation2 + $0x9c] sm:$0xff] }
 0x19d   : > { %v2069_v7 = vpack.c.b16 %v2050_v55, %v2049_v25  ;;  %v504_v25 = vld [vmem:[#allocation2 + $0xc8] sm:$0x1] }
 0x19e   : > { %v8000_v56 = vadd.f32 %v7974_v63, %v3003_v61  ;;  %v765_v63 = vshrl.u32 %v396_v44, 16  ;;  %v773_v61 = vshrl.u32 %v397_v58, 16  ;;  %v2755_v44 = vsel %vm7787_vm14, %v6135_v34, %v2754_v0 }
 0x19f   : > { %v2161_v8 = vpop.f32.mrf.mxu2  ;;  %v505_v55 = vsel %vm7329_vm4, 0, %v504_v25 }
 0x1a0   : > { %v2477_v46 = vpop.f32.mrf.mxu3  ;;  %8966 = vst [vmem:[#allocation25_spill] sm:$0xff] %v8000_v56  ;;  %v2232_v26 = vadd.f32 %v2161_v8, %v7858_v17  ;;  %v767_v16 = vrot.slane %v765_v63, 7  ;;  %v8007_v33 = vrot.slane %v773_v61, 7  ;;  %v2756_v8 = vrot.slane %v2754_v0, 4  ;;  %v1858_v61 = vld [vmem:[#allocation2 + $0x9c] sm:$0xe] }
 0x1a1   : > { %v1989_v63 = vrot.slane %v6867_v52, 5  ;;  %v2821_v0 = vunpack.c.l.b16 %v2755_v44  ;;  %506 = vst [vmem:[#allocation2 + $0xc8] sm:$0x1] %v505_v55  ;;  %v6509_v52 = vld [vmem:[#allocation2 + $0xb4] sm:$0xff] }
 0x1a2   : > { %v2933_v28 = vpop.f32.mrf.mxu0  ;;  %v2546_v23 = vadd.f32 %v2475_v4, %v2232_v26  ;;  %v770_v59 = vor.u32 %v768_v35, %v767_v16  ;;  %v771_v56 = vrot.slane %v767_v16, 4  ;;  %v778_v4 = vor.u32 %v776_v41, %v8007_v33  ;;  %v6477_v41 = vld [vmem:[#allocation2 + $0xa8] sm:$0xff] }
 0x1a3   : > { %v2758_v53 = vsel %vm7787_vm14, %v2756_v8, %v2757_v36  ;;  %v5992_v16 = vrot.slane %v1858_v61, 9  ;;  %v1991_v35 = vrot.slane %v1989_v63, 4  ;;  %v780_v44 = vrot.slane %v8007_v33, 4 }
 0x1a4   : > { %v3004_v20 = vadd.f32 %v2933_v28, %v2546_v23  ;;  %v8009_v17 = vpop.f32.mrf.mxu1  ;;  %v937_v28 = vsel %vm7349_vm10, %v770_v59, %v936_v11  ;;  %v2822_v34 = vunpack.c.l.b16 %v2758_v53  ;;  %v2761_v59 = vrot.slane %v2612_v43, 5 }
 0x1a5   : > { %2972 = vmatmul.bf16.gmra.mxu0 %v2840_v54  ;;  %2519 = vmatmul.bf16.gmra.mxu3 %v6476_v2  ;;  %938 = vst [vmem:[#allocation2 + $0xc0] sm:$0xf] %v937_v28  ;;  %v1990_v11 = vsel %vm7787_vm14, %v5992_v16, %v1989_v63  ;;  %v6520_v28 = vld [vmem:[#allocation6 + $0x1c0] sm:$0xff] }
 0x1a6   : > { %v8013_v54 = vadd.f32 %v7983_v49, %v3004_v20  ;;  %v779_v49 = vsel %vm7341_vm9, %v771_v56, %v778_v4  ;;  %v6868_v20 = vld [vmem:[#allocation2 + $0xa4] sm:$0x1]  ;;  %3913 = vmatpush.bf16.msra.mxu2 %v6520_v28  ;;  %v2763_v25 = vrot.slane %v2761_v59, 4 }
 0x1a7   : > { %v2163_v2 = vpop.f32.mrf.mxu2  ;;  %3292 = vmatmul.bf16.gmra.mxu1 %v6508_v24  ;;  %939 = vst [vmem:[#allocation2 + $0xc4] sm:$0xf] %v779_v49  ;;  %v1992_v30 = vrot.slane %v6868_v20, 5 }
 0x1a8   : > { %v2480_v9 = vpop.f32.mrf.mxu3  ;;  %v2233_v58 = vadd.f32 %v2163_v2, %v7867_v48  ;;  %v940_v61 = vld [vmem:[#allocation2 + $0xc8] sm:$0x1] }
 0x1a9   : > { %v1993_v2 = vsel %vm7787_vm14, %v1991_v35, %v1992_v30  ;;  %v941_v33 = vsel %vm7323_vm3, %v780_v44, %v940_v61  ;;  %v6537_v30 = vld [vmem:[#allocation8 + $0x4] sm:$0xf0] }
 0x1aa   : > { %v2935_v26 = vpop.f32.mrf.mxu0  ;;  %v2547_v23 = vadd.f32 %v2477_v46, %v2233_v58  ;;  %v2841_v46 = vpack.c.b16 %v2822_v34, %v2821_v0  ;;  %v2051_v58 = vunpack.c.l.b16 %v1990_v11  ;;  %v2052_v53 = vunpack.c.l.b16 %v1993_v2  ;;  %942 = vst [vmem:[#allocation2 + $0xc8] sm:$0x1] %v941_v33  ;;  %v2615_v2 = vld [vmem:[#allocation2 + $0xb8] sm:$0xf] }
 0x1ab   : > { %v2768_v61 = vrot.slane %v2615_v2, 5  ;;  %v6478_v33 = vld [vmem:[#allocation2 + $0xb4] sm:$0xff]  ;;  %v4453_v2 = vld [vmem:[#allocation2 + $0xc] sm:$0xf] }
 0x1ac   : > { %v3005_v48 = vadd.f32 %v2935_v26, %v2547_v23  ;;  %2205 = vmatmul.bf16.gmra.mxu2 %v2069_v7  ;;  %v8026_v24 = vpop.f32.mrf.mxu1  ;;  %v2611_v7 = vld [vmem:[#allocation2 + $0xa8] sm:$0xe]  ;;  %v2613_v26 = vld [vmem:[#allocation2 + $0xb0] sm:$0x1]  ;;  %v2070_v16 = vpack.c.b16 %v2052_v53, %v2051_v58 }
 0x1ad   : > { %v6136_v49 = vrot.slane %v2611_v7, 9  ;;  %v2764_v0 = vrot.slane %v2613_v26, 5  ;;  %v6870_v7 = vld [vmem:[#allocation2 + $0x10] sm:$0xf]  ;;  %v6536_v26 = vld [vmem:[#allocation8 + $0x4] sm:$0xf] }
 0x1ae   : > { %v8029_v8 = vadd.f32 %v7993_v39, %v3005_v48  ;;  %v4483_v44 = vshrl.u32 %v6870_v7, 16 }
 0x1af   : > { %v2166_v36 = vpop.f32.mrf.mxu2  ;;  %v2762_v35 = vsel %vm7787_vm14, %v6136_v49, %v2761_v59  ;;  %v2765_v20 = vsel %vm7787_vm14, %v2763_v25, %v2764_v0 }
 0x1b0   : > { %v2482_v56 = vpop.f32.mrf.mxu3  ;;  %v2234_v6 = vadd.f32 %v2166_v36, %v7876_v18  ;;  %v6528_v18 = vld [vmem:[#allocation6 + $0x200] sm:$0xff]  ;;  %v2824_v11 = vunpack.c.l.b16 %v2765_v20 }
 0x1b1   : > { %4339 = vmatpush.bf16.msra.mxu3 %v6528_v18 }
 0x1b2   : > { %v2938_v4 = vpop.f32.mrf.mxu0  ;;  %v2548_v39 = vadd.f32 %v2480_v9, %v2234_v6  ;;  %v2823_v6 = vunpack.c.l.b16 %v2762_v35 }
 0x1b4   : > { %v3006_v23 = vadd.f32 %v2938_v4, %v2548_v39  ;;  %v8037_v63 = vpop.f32.mrf.mxu1  ;;  %v6351_v39 = vld [vmem:[#allocation8 + $0x8] sm:$0xf0]  ;;  %v2842_v25 = vpack.c.b16 %v2824_v11, %v2823_v6 }
 0x1b5   : > { %2977 = vmatmul.bf16.gmra.mxu0 %v2841_v46  ;;  %2524 = vmatmul.bf16.gmra.mxu3 %v6477_v41  ;;  %v6869_v46 = vld [vmem:[#allocation2 + $0xac] sm:$0xf]  ;;  %v6350_v41 = vor.u32 %v6537_v30, %v6349_v5  ;;  %v6354_v18 = vor.u32 %v6536_v26, %v6351_v39  ;;  %v6510_v11 = vld [vmem:[#allocation2 + $0xc0] sm:$0xff]  ;;  %v4473_v26 = vshll.u32 %v4453_v2, 16 }
 0x1b6   : > { %v8042_v34 = vadd.f32 %v8009_v17, %v3006_v23  ;;  %v1996_v36 = vrot.slane %v6869_v46, 5  ;;  %v1859_v17 = vld [vmem:[#allocation2 + $0xa8] sm:$0xe] }
 0x1b7   : > { %v2168_v43 = vpop.f32.mrf.mxu2  ;;  %3297 = vmatmul.bf16.gmra.mxu1 %v6509_v52  ;;  %5020 = vmatpush.bf16.msra.mxu0 %v6350_v41  ;;  %v5993_v58 = vrot.slane %v1859_v17, 9  ;;  %v6871_v52 = vld [vmem:[#allocation2 + $0xb0] sm:$0x1]  ;;  %v2770_v41 = vrot.slane %v2768_v61, 4  ;;  %v6872_v17 = vld [vmem:[#allocation2 + $0x14] sm:$0x1] }
 0x1b8   : > { %v2485_v9 = vpop.f32.mrf.mxu3  ;;  %v2235_v48 = vadd.f32 %v2168_v43, %v7885_v57  ;;  %v4479_v57 = vshll.u32 %v6870_v7, 16  ;;  %v1998_v53 = vrot.slane %v1996_v36, 4  ;;  %v1999_v49 = vrot.slane %v6871_v52, 5  ;;  %v2614_v43 = vld [vmem:[#allocation2 + $0xb4] sm:$0xe]  ;;  %5109 = vmatpush.bf16.msra.mxu1 %v6354_v18 }
 0x1b9   : > { %v1997_v5 = vsel %vm7787_vm14, %v5993_v58, %v1996_v36  ;;  %v6137_v46 = vrot.slane %v2614_v43, 9  ;;  %v4489_v6 = vshll.u32 %v6872_v17, 16  ;;  %v6874_v17 = vld [vmem:[#allocation2 + $0xbc] sm:$0x1] }
 0x1ba   : > { %v2940_v55 = vpop.f32.mrf.mxu0  ;;  %v2549_v4 = vadd.f32 %v2482_v56, %v2235_v48  ;;  %v8054_v48 = vrot.slane %v4479_v57, 5  ;;  %v2000_v30 = vsel %vm7787_vm14, %v1998_v53, %v1999_v49  ;;  %v6873_v53 = vld [vmem:[#allocation2 + $0xb8] sm:$0xf] }
 0x1bb   : > { %v2054_v36 = vunpack.c.l.b16 %v2000_v30  ;;  %v2003_v52 = vrot.slane %v6873_v53, 5  ;;  %v2618_v30 = vld [vmem:[#allocation2 + $0xc4] sm:$0xf] }
 0x1bc   : > { %v3007_v28 = vadd.f32 %v2940_v55, %v2549_v4  ;;  %2210 = vmatmul.bf16.gmra.mxu2 %v2070_v16  ;;  %v8049_v59 = vpop.f32.mrf.mxu1  ;;  %v2616_v55 = vld [vmem:[#allocation2 + $0xbc] sm:$0x1]  ;;  %v4485_v16 = vrot.slane %v4483_v44, 4  ;;  %v2053_v44 = vunpack.c.l.b16 %v1997_v5 }
 0x1bd   : > { %v2771_v4 = vrot.slane %v2616_v55, 5  ;;  %v4491_v55 = vrot.slane %v4489_v6, 5  ;;  %v2617_v6 = vld [vmem:[#allocation2 + $0xc0] sm:$0xe] }
 0x1be   : > { %v8052_v23 = vadd.f32 %v8026_v24, %v3007_v28  ;;  %v4486_v7 = vor.u32 %v4485_v16, %v8054_v48  ;;  %v4470_v28 = vshrl.u32 %v4453_v2, 16  ;;  %v2006_v2 = vrot.slane %v6874_v17, 5 }
 0x1bf   : > { %v2171_v0 = vpop.f32.mrf.mxu2  ;;  %v2772_v39 = vsel %vm7787_vm14, %v2770_v41, %v2771_v4 }
 0x1c0   : > { %v2487_v56 = vpop.f32.mrf.mxu3  ;;  %v2236_v20 = vadd.f32 %v2171_v0, %v7894_v37  ;;  %v4472_v0 = vrot.slane %v4470_v28, 4  ;;  %v4487_v43 = vrot.slane %v4486_v7, 4  ;;  %v2826_v5 = vunpack.c.l.b16 %v2772_v39 }
 0x1c2   : > { %v2943_v35 = vpop.f32.mrf.mxu0  ;;  %v2550_v24 = vadd.f32 %v2485_v9, %v2236_v20  ;;  %v2769_v9 = vsel %vm7787_vm14, %v6137_v46, %v2768_v61  ;;  %v2071_v61 = vpack.c.b16 %v2054_v36, %v2053_v44  ;;  %v4492_v44 = vsel %vm7367_vm11, %v4487_v43, %v4491_v55 }
 0x1c3   : > { %v2825_v20 = vunpack.c.l.b16 %v2769_v9  ;;  %v2619_v9 = vld [vmem:[#allocation2 + $0xc8] sm:$0x1]  ;;  %v6138_v43 = vrot.slane %v2617_v6, 9  ;;  %v3347_v6 = vld [vmem:[#allocation2 + $0x20] sm:$0x1] }
 0x1c4   : > { %v3008_v57 = vadd.f32 %v2943_v35, %v2550_v24  ;;  %v8062_v37 = vpop.f32.mrf.mxu1  ;;  %v3345_v24 = vld [vmem:[#allocation2 + $0x18] sm:$0xf] }
 0x1c5   : > { %2982 = vmatmul.bf16.gmra.mxu0 %v2842_v25  ;;  %2529 = vmatmul.bf16.gmra.mxu3 %v6478_v33  ;;  %v1860_v25 = vld [vmem:[#allocation2 + $0xb4] sm:$0xe]  ;;  %v4475_v33 = vrot.slane %v4473_v26, 5  ;;  %v2775_v26 = vrot.slane %v2618_v30, 5  ;;  %v2843_v36 = vpack.c.b16 %v2826_v5, %v2825_v20  ;;  %v3397_v39 = vshll.u32 %v3345_v24, 16 }
 0x1c6   : > { %v8069_v49 = vadd.f32 %v8037_v63, %v3008_v57  ;;  %v5994_v4 = vrot.slane %v1860_v25, 9  ;;  %v2005_v63 = vrot.slane %v2003_v52, 4 }
 0x1c7   : > { %v2173_v18 = vpop.f32.mrf.mxu2  ;;  %3302 = vmatmul.bf16.gmra.mxu1 %v6510_v11  ;;  %v4476_v46 = vor.u32 %v4475_v33, %v4472_v0  ;;  %v3346_v11 = vld [vmem:[#allocation2 + $0x1c] sm:$0xf] }
 0x1c8   : > { %v2490_v58 = vpop.f32.mrf.mxu3  ;;  %v2237_v35 = vadd.f32 %v2173_v18, %v7903_v27  ;;  %v3394_v27 = vshrl.u32 %v3345_v24, 16  ;;  %v3407_v53 = vshrl.u32 %v3346_v11, 16  ;;  %v2004_v25 = vsel %vm7787_vm14, %v5994_v4, %v2003_v52  ;;  %v4027_v4 = vld [vmem:[#allocation2 + $0x18] sm:$0xe] }
 0x1c9   : > { %v4477_v57 = vrot.slane %v4476_v46, 4  ;;  %v2007_v0 = vsel %vm7787_vm14, %v2005_v63, %v2006_v2  ;;  %v4093_v55 = vrot.slane %v3346_v11, 5  ;;  %v2777_v52 = vrot.slane %v2775_v26, 4 }
 0x1ca   : > { %v2945_v16 = vpop.f32.mrf.mxu0  ;;  %v2551_v41 = vadd.f32 %v2487_v56, %v2237_v35  ;;  %v3403_v56 = vshll.u32 %v3346_v11, 16  ;;  %v2778_v46 = vrot.slane %v2619_v9, 5  ;;  %v3399_v63 = vrot.slane %v3397_v39, 5  ;;  %v6511_v11 = vld [vmem:[#allocation2 + $0xcc] sm:$0xff] }
 0x1cb   : > { %v4482_v33 = vsel %vm7367_vm11, %v4477_v57, %v8054_v48  ;;  %v3409_v48 = vrot.slane %v3407_v53, 4  ;;  %v2055_v9 = vunpack.c.l.b16 %v2004_v25  ;;  %v2776_v39 = vsel %vm7787_vm14, %v6138_v43, %v2775_v26 }
 0x1cc   : > { %v3009_v28 = vadd.f32 %v2945_v16, %v2551_v41  ;;  %2215 = vmatmul.bf16.gmra.mxu2 %v2071_v61  ;;  %v8072_v7 = vpop.f32.mrf.mxu1  ;;  %v4870_v16 = vunpack.c.l.b16 %v4492_v44  ;;  %v6479_v61 = vld [vmem:[#allocation2 + $0xc0] sm:$0xff]  ;;  %v4869_v20 = vunpack.c.l.b16 %v4482_v33  ;;  %v3396_v41 = vrot.slane %v3394_v27, 4 }
 0x1cd   : > { %v8087_v17 = vrot.slane %v3403_v56, 5  ;;  %v4096_v44 = vrot.slane %v3347_v6, 5  ;;  %v2056_v27 = vunpack.c.l.b16 %v2007_v0  ;;  %v2779_v56 = vsel %vm7787_vm14, %v2777_v52, %v2778_v46 }
 0x1ce   : > { %v8084_v5 = vadd.f32 %v8049_v59, %v3009_v28  ;;  %v8089_v2 = vpack.c.b16 %v4870_v16, %v4869_v20  ;;  %v6299_v59 = vrot.slane %v4027_v4, 9  ;;  %v4095_v28 = vrot.slane %v4093_v55, 4 }
 0x1cf   : > { %v2176_v35 = vpop.f32.mrf.mxu2  ;;  %v3400_v53 = vor.u32 %v3399_v63, %v3396_v41  ;;  %v2072_v26 = vpack.c.b16 %v2056_v27, %v2055_v9  ;;  %v2827_v43 = vunpack.c.l.b16 %v2776_v39 }
 0x1d0   : > { %v2492_v18 = vpop.f32.mrf.mxu3  ;;  %v2238_v24 = vadd.f32 %v2176_v35, %v7915_v1  ;;  %v4097_v25 = vsel %vm7787_vm14, %v4095_v28, %v4096_v44  ;;  %v6875_v28 = vld [vmem:[#allocation2 + $0x1c] sm:$0xf] }
 0x1d1   : > { %v3401_v52 = vrot.slane %v3400_v53, 4  ;;  %v4507_v44 = vshrl.u32 %v6875_v28, 16  ;;  %v4503_v27 = vshll.u32 %v6875_v28, 16 }
 0x1d2   : > { %v2948_v30 = vpop.f32.mrf.mxu0  ;;  %v2552_v57 = vadd.f32 %v2490_v58, %v2238_v24  ;;  %v3410_v58 = vor.u32 %v3409_v48, %v8087_v17  ;;  %v4454_v24 = vld [vmem:[#allocation2 + $0x18] sm:$0xf] }
 0x1d4   : > { %v3010_v33 = vadd.f32 %v2948_v30, %v2552_v57  ;;  %v8091_v1 = vpop.f32.mrf.mxu1  ;;  %v2828_v30 = vunpack.c.l.b16 %v2779_v56  ;;  %v3411_v46 = vrot.slane %v3410_v58, 4  ;;  %v4221_v57 = vunpack.c.l.b16 %v4097_v25 }
 0x1d5   : > { %2987 = vmatmul.bf16.gmra.mxu0 %v2843_v36  ;;  %2534 = vmatmul.bf16.gmra.mxu3 %v6479_v61  ;;  %v3413_v36 = vshll.u32 %v3347_v6, 16  ;;  %v4094_v61 = vsel %vm7787_vm14, %v6299_v59, %v4093_v55  ;;  %v3348_v55 = vld [vmem:[#allocation2 + $0x24] sm:$0xf]  ;;  %v3349_v6 = vld [vmem:[#allocation2 + $0x28] sm:$0xf]  ;;  %v4497_v59 = vshll.u32 %v4454_v24, 16 }
 0x1d6   : > { %v8104_v4 = vadd.f32 %v8062_v37, %v3010_v33  ;;  %v4220_v48 = vunpack.c.l.b16 %v4094_v61  ;;  %v2844_v39 = vpack.c.b16 %v2828_v30, %v2827_v43  ;;  %v3406_v37 = vsel %vm7367_vm11, %v3401_v52, %v8087_v17  ;;  %v4028_v17 = vld [vmem:[#allocation2 + $0x24] sm:$0xe] }
 0x1d7   : > { %v2178_v35 = vpop.f32.mrf.mxu2  ;;  %3307 = vmatmul.bf16.gmra.mxu1 %v6511_v11  ;;  %v3415_v41 = vrot.slane %v3413_v36, 5  ;;  %v4494_v11 = vshrl.u32 %v4454_v24, 16  ;;  %v3418_v53 = vshrl.u32 %v3348_v55, 16  ;;  %v3421_v58 = vshll.u32 %v3348_v55, 16  ;;  %v3350_v55 = vld [vmem:[#allocation2 + $0x2c] sm:$0x1] }
 0x1d8   : > { %v2495_v16 = vpop.f32.mrf.mxu3  ;;  %v2239_v20 = vadd.f32 %v2178_v35, %v7925_v45  ;;  %8967 = vst [vmem:[#allocation26_spill] sm:$0xff] %v8104_v4  ;;  %v4252_v56 = vpack.c.b16 %v4221_v57, %v4220_v48  ;;  %v3427_v36 = vshll.u32 %v3349_v6, 16  ;;  %v4100_v61 = vrot.slane %v3349_v6, 5 }
 0x1d9   : > { %v4496_v25 = vrot.slane %v4494_v11, 4  ;;  %v3431_v30 = vshrl.u32 %v3349_v6, 16  ;;  %v4505_v24 = vrot.slane %v4503_v27, 5  ;;  %v4509_v52 = vrot.slane %v4507_v44, 4 }
 0x1da   : > { %v2950_v0 = vpop.f32.mrf.mxu0  ;;  %v2553_v63 = vadd.f32 %v2492_v18, %v2239_v20  ;;  %v3416_v18 = vsel %vm7367_vm11, %v3411_v46, %v3415_v41  ;;  %v6876_v46 = vld [vmem:[#allocation2 + $0x20] sm:$0x1]  ;;  %v3420_v28 = vrot.slane %v3418_v53, 4  ;;  %v3423_v4 = vrot.slane %v3421_v58, 5  ;;  %v4455_v53 = vld [vmem:[#allocation2 + $0x24] sm:$0xf] }
 0x1db   : > { %v4513_v41 = vshll.u32 %v6876_v46, 16  ;;  %v3795_v57 = vunpack.c.l.b16 %v3416_v18  ;;  %v6300_v11 = vrot.slane %v4028_v17, 9  ;;  %v8119_v6 = vrot.slane %v3427_v36, 5 }
 0x1dc   : > { %v3011_v45 = vadd.f32 %v2950_v0, %v2553_v63  ;;  %2220 = vmatmul.bf16.gmra.mxu2 %v2072_v26  ;;  %v8106_v9 = vpop.f32.mrf.mxu1  ;;  %v4499_v0 = vrot.slane %v4497_v59, 5  ;;  %v3794_v63 = vunpack.c.l.b16 %v3406_v37  ;;  %v4103_v59 = vrot.slane %v3350_v55, 5 }
 0x1dd   : > { %v3433_v44 = vrot.slane %v3431_v30, 4  ;;  %v4510_v27 = vor.u32 %v4509_v52, %v4505_v24  ;;  %v4515_v52 = vrot.slane %v4513_v41, 5  ;;  %v4521_v46 = vshll.u32 %v4455_v53, 16 }
 0x1de   : > { %v8114_v20 = vadd.f32 %v8072_v7, %v3011_v45  ;;  %v4102_v7 = vrot.slane %v4100_v61, 4  ;;  %v4500_v45 = vor.u32 %v4499_v0, %v4496_v25 }
 0x1df   : > { %v2181_v35 = vpop.f32.mrf.mxu2  ;;  %v3434_v30 = vor.u32 %v3433_v44, %v8119_v6  ;;  %v4511_v17 = vrot.slane %v4510_v27, 4  ;;  %v3351_v44 = vld [vmem:[#allocation2 + $0x30] sm:$0xf]  ;;  %v3352_v27 = vld [vmem:[#allocation2 + $0x34] sm:$0xf] }
 0x1e0   : > { %v2497_v33 = vpop.f32.mrf.mxu3  ;;  %8968 = vst [vmem:[#allocation27_spill] sm:$0xff] %v8114_v20  ;;  %v2240_v43 = vadd.f32 %v2181_v35, %v7929_v31  ;;  %v6877_v35 = vld [vmem:[#allocation2 + $0x28] sm:$0xf]  ;;  %v4104_v25 = vsel %vm7787_vm14, %v4102_v7, %v4103_v59  ;;  %v4501_v36 = vrot.slane %v4500_v45, 4 }
 0x1e1   : > { %v4531_v37 = vshrl.u32 %v6877_v35, 16  ;;  %v3435_v59 = vrot.slane %v3434_v30, 4  ;;  %v4516_v41 = vsel %vm7367_vm11, %v4511_v17, %v4515_v52  ;;  %v3451_v52 = vshll.u32 %v3352_v27, 16 }
 0x1e2   : > { %v2953_v26 = vpop.f32.mrf.mxu0  ;;  %v2554_v48 = vadd.f32 %v2495_v16, %v2240_v43  ;;  %v3826_v16 = vpack.c.b16 %v3795_v57, %v3794_v63  ;;  %v3424_v43 = vor.u32 %v3423_v4, %v3420_v28  ;;  %v4518_v4 = vshrl.u32 %v4455_v53, 16 }
 0x1e3   : > { %v4527_v63 = vshll.u32 %v6877_v35, 16  ;;  %v4223_v28 = vunpack.c.l.b16 %v4104_v25  ;;  %v4533_v35 = vrot.slane %v4531_v37, 4  ;;  %v4872_v25 = vunpack.c.l.b16 %v4516_v41 }
 0x1e4   : > { %v3012_v20 = vadd.f32 %v2953_v26, %v2554_v48  ;;  %v8117_v31 = vpop.f32.mrf.mxu1 }
 0x1e5   : > { %2992 = vmatmul.bf16.gmra.mxu0 %v2844_v39  ;;  %4340 = vmatmul.bf16.vlgmr.msra.gmra.mxu3 %v4252_v56  ;;  %v3437_v39 = vshll.u32 %v3350_v55, 16  ;;  %v4101_v56 = vsel %vm7787_vm14, %v6300_v11, %v4100_v61  ;;  %v3425_v55 = vrot.slane %v3424_v43, 4  ;;  %v4506_v11 = vsel %vm7367_vm11, %v4501_v36, %v4505_v24 }
 0x1e6   : > { %v8129_v48 = vadd.f32 %v8091_v1, %v3012_v20  ;;  %v4222_v61 = vunpack.c.l.b16 %v4101_v56  ;;  %v4520_v1 = vrot.slane %v4518_v4, 4  ;;  %v4523_v20 = vrot.slane %v4521_v46, 5 }
 0x1e7   : > { %v2183_v58 = vpop.f32.mrf.mxu2  ;;  %5110 = vmatmul.bf16.vlgmr.msra.gmra.mxu1 %v8089_v2  ;;  %v3439_v45 = vrot.slane %v3437_v39, 5  ;;  %v3430_v24 = vsel %vm7367_vm11, %v3425_v55, %v8119_v6  ;;  %v4871_v53 = vunpack.c.l.b16 %v4506_v11  ;;  %v4107_v56 = vrot.slane %v3352_v27, 5  ;;  %v6878_v6 = vld [vmem:[#allocation2 + $0x2c] sm:$0x1] }
 0x1e8   : > { %v2500_v18 = vpop.f32.mrf.mxu3  ;;  %v2241_v26 = vadd.f32 %v2183_v58, %v7941_v21  ;;  %v4029_v58 = vld [vmem:[#allocation2 + $0x30] sm:$0xe]  ;;  %v3442_v36 = vshrl.u32 %v3351_v44, 16  ;;  %v3455_v4 = vshrl.u32 %v3352_v27, 16  ;;  %v4537_v46 = vshll.u32 %v6878_v6, 16 }
 0x1e9   : > { %v3440_v37 = vsel %vm7367_vm11, %v3435_v59, %v3439_v45  ;;  %v4524_v55 = vor.u32 %v4523_v20, %v4520_v1  ;;  %v3796_v11 = vunpack.c.l.b16 %v3430_v24  ;;  %v4109_v41 = vrot.slane %v4107_v56, 4 }
 0x1ea   : > { %v2955_v0 = vpop.f32.mrf.mxu0  ;;  %v2555_v57 = vadd.f32 %v2497_v33, %v2241_v26  ;;  %v8137_v33 = vrot.slane %v4527_v63, 5  ;;  %v3353_v63 = vld [vmem:[#allocation2 + $0x38] sm:$0x1]  ;;  %v3444_v59 = vrot.slane %v3442_v36, 4  ;;  %v3457_v1 = vrot.slane %v3455_v4, 4 }
 0x1eb   : > { %v4525_v20 = vrot.slane %v4524_v55, 4  ;;  %v4539_v24 = vrot.slane %v4537_v46, 5  ;;  %v3354_v55 = vld [vmem:[#allocation2 + $0x3c] sm:$0xf] }
 0x1ec   : > { %v3013_v7 = vadd.f32 %v2955_v0, %v2555_v57  ;;  %3914 = vmatmul.bf16.vlgmr.msra.gmra.mxu2 %v3826_v16  ;;  %v8133_v21 = vpop.f32.mrf.mxu1  ;;  %v4253_v16 = vpack.c.b16 %v4223_v28, %v4222_v61  ;;  %v3445_v0 = vshll.u32 %v3351_v44, 16  ;;  %v6301_v57 = vrot.slane %v4029_v58, 9 }
 0x1ed   : > { %v4534_v61 = vor.u32 %v4533_v35, %v8137_v33  ;;  %v4530_v46 = vsel %vm7367_vm11, %v4525_v20, %v8137_v33  ;;  %v3469_v33 = vshll.u32 %v3354_v55, 16 }
 0x1ee   : > { %v8143_v26 = vadd.f32 %v8106_v9, %v3013_v7  ;;  %v4110_v9 = vrot.slane %v3353_v63, 5  ;;  %v3797_v7 = vunpack.c.l.b16 %v3440_v37  ;;  %v3447_v45 = vrot.slane %v3445_v0, 5 }
 0x1ef   : > { %v2186_v39 = vpop.f32.mrf.mxu2  ;;  %v4535_v35 = vrot.slane %v4534_v61, 4 }
 0x1f0   : > { %v2502_v43 = vpop.f32.mrf.mxu3  ;;  %v2242_v17 = vadd.f32 %v2186_v39, %v7807_v60  ;;  %v8150_v60 = vpack.c.b16 %v4872_v25, %v4871_v53  ;;  %v8154_v39 = vrot.slane %v3451_v52, 5  ;;  %v3827_v36 = vpack.c.b16 %v3797_v7, %v3796_v11 }
 0x1f1   : > { %v3448_v0 = vor.u32 %v3447_v45, %v3444_v59  ;;  %v3461_v52 = vshll.u32 %v3353_v63, 16  ;;  %v3355_v45 = vld [vmem:[#allocation2 + $0x40] sm:$0xf] }
 0x1f2   : > { %v2958_v30 = vpop.f32.mrf.mxu0  ;;  %v2556_v28 = vadd.f32 %v2500_v18, %v2242_v17  ;;  %v4108_v18 = vsel %vm7787_vm14, %v6301_v57, %v4107_v56  ;;  %v3458_v56 = vor.u32 %v3457_v1, %v8154_v39  ;;  %v4540_v57 = vsel %vm7367_vm11, %v4535_v35, %v4539_v24 }
 0x1f3   : > { %v4224_v4 = vunpack.c.l.b16 %v4108_v18  ;;  %v3463_v59 = vrot.slane %v3461_v52, 5  ;;  %v3466_v1 = vshrl.u32 %v3354_v55, 16  ;;  %v4873_v35 = vunpack.c.l.b16 %v4530_v46  ;;  %v6880_v46 = vld [vmem:[#allocation2 + $0x38] sm:$0x1] }
 0x1f4   : > { %v3014_v44 = vadd.f32 %v2958_v30, %v2556_v28  ;;  %v8152_v27 = vpop.f32.mrf.mxu1  ;;  %v4456_v30 = vld [vmem:[#allocation2 + $0x30] sm:$0xf]  ;;  %v3459_v18 = vrot.slane %v3458_v56, 4  ;;  %v4874_v24 = vunpack.c.l.b16 %v4540_v57  ;;  %v4561_v57 = vshll.u32 %v6880_v46, 16 }
 0x1f5   : > { %5021 = vmatmul.bf16.vlgmr.msra.gmra.mxu0 %v8089_v2  ;;  %4345 = vmatmul.bf16.gmra.mxu3 %v4253_v16  ;;  %v4111_v2 = vsel %vm7787_vm14, %v4109_v41, %v4110_v9  ;;  %v6879_v16 = vld [vmem:[#allocation2 + $0x34] sm:$0xf]  ;;  %v4542_v11 = vshrl.u32 %v4456_v30, 16  ;;  %v4545_v41 = vshll.u32 %v4456_v30, 16  ;;  %v3449_v9 = vrot.slane %v3448_v0, 4 }
 0x1f6   : > { %v4555_v53 = vshrl.u32 %v6879_v16, 16  ;;  %v4225_v6 = vunpack.c.l.b16 %v4111_v2  ;;  %v8169_v61 = vadd.f32 %v8117_v31, %v3014_v44  ;;  %v3475_v0 = vshll.u32 %v3355_v45, 16 }
 0x1f7   : > { %v2188_v25 = vpop.f32.mrf.mxu2  ;;  %5115 = vmatmul.bf16.gmra.mxu1 %v8150_v60  ;;  %v4544_v31 = vrot.slane %v4542_v11, 4  ;;  %v4547_v44 = vrot.slane %v4545_v41, 5  ;;  %v3479_v30 = vshrl.u32 %v3355_v45, 16  ;;  %v3454_v55 = vsel %vm7367_vm11, %v3449_v9, %v8154_v39  ;;  %v3356_v41 = vld [vmem:[#allocation2 + $0x44] sm:$0x1] }
 0x1f8   : > { %v2505_v58 = vpop.f32.mrf.mxu3  ;;  %v2243_v37 = vadd.f32 %v2188_v25, %v7813_v40  ;;  %v4551_v40 = vshll.u32 %v6879_v16, 16  ;;  %v4254_v20 = vpack.c.b16 %v4225_v6, %v4224_v4  ;;  %v4557_v25 = vrot.slane %v4555_v53, 4 }
 0x1f9   : > { %v3468_v4 = vrot.slane %v3466_v1, 4  ;;  %v3471_v6 = vrot.slane %v3469_v33, 5  ;;  %v3464_v53 = vsel %vm7367_vm11, %v3459_v18, %v3463_v59  ;;  %v4117_v33 = vrot.slane %v3356_v41, 5 }
 0x1fa   : > { %v2960_v17 = vpop.f32.mrf.mxu0  ;;  %v2557_v28 = vadd.f32 %v2502_v43, %v2243_v37  ;;  %v8173_v43 = vrot.slane %v4551_v40, 5  ;;  %v4548_v40 = vor.u32 %v4547_v44, %v4544_v31  ;;  %v3798_v59 = vunpack.c.l.b16 %v3454_v55 }
 0x1fb   : > { %v3799_v18 = vunpack.c.l.b16 %v3464_v53 }
 0x1fc   : > { %v3015_v7 = vadd.f32 %v2960_v17, %v2557_v28  ;;  %3919 = vmatmul.bf16.gmra.mxu2 %v3827_v36  ;;  %v8171_v63 = vpop.f32.mrf.mxu1  ;;  %v4030_v36 = vld [vmem:[#allocation2 + $0x3c] sm:$0xe]  ;;  %v4114_v17 = vrot.slane %v3355_v45, 5  ;;  %v8184_v28 = vpack.c.b16 %v4874_v24, %v4873_v35  ;;  %v3481_v45 = vrot.slane %v3479_v30, 4 }
 0x1fd   : > { %v3472_v35 = vor.u32 %v3471_v6, %v3468_v4  ;;  %v4549_v31 = vrot.slane %v4548_v40, 4 }
 0x1fe   : > { %v8176_v37 = vadd.f32 %v8133_v21, %v3015_v7  ;;  %v6302_v21 = vrot.slane %v4030_v36, 9  ;;  %v4558_v7 = vor.u32 %v4557_v25, %v8173_v43  ;;  %v4116_v1 = vrot.slane %v4114_v17, 4 }
 0x1ff   : > { %v2191_v16 = vpop.f32.mrf.mxu2  ;;  %v4563_v25 = vrot.slane %v4561_v57, 5  ;;  %v3473_v4 = vrot.slane %v3472_v35, 4 }
 0x200   : > { %v2507_v2 = vpop.f32.mrf.mxu3  ;;  %v2244_v56 = vadd.f32 %v2191_v16, %v7823_v14  ;;  %v8188_v14 = vrot.slane %v3475_v0, 5  ;;  %v4115_v24 = vsel %vm7787_vm14, %v6302_v21, %v4114_v17  ;;  %v4559_v44 = vrot.slane %v4558_v7, 4  ;;  %v3357_v17 = vld [vmem:[#allocation2 + $0x48] sm:$0xf]  ;;  %v3358_v7 = vld [vmem:[#allocation2 + $0x4c] sm:$0xf] }
 0x201   : > { %v3485_v0 = vshll.u32 %v3356_v41, 16  ;;  %v4118_v30 = vsel %vm7787_vm14, %v4116_v1, %v4117_v33  ;;  %v4226_v6 = vunpack.c.l.b16 %v4115_v24  ;;  %v3493_v35 = vshll.u32 %v3357_v17, 16 }
 0x202   : > { %v2963_v52 = vpop.f32.mrf.mxu0  ;;  %v2558_v11 = vadd.f32 %v2505_v58, %v2244_v56  ;;  %v3482_v16 = vor.u32 %v3481_v45, %v8188_v14  ;;  %v3828_v56 = vpack.c.b16 %v3799_v18, %v3798_v59  ;;  %v4227_v53 = vunpack.c.l.b16 %v4118_v30  ;;  %v6881_v45 = vld [vmem:[#allocation2 + $0x40] sm:$0xf] }
 0x203   : > { %v4564_v41 = vsel %vm7367_vm11, %v4559_v44, %v4563_v25  ;;  %v3487_v40 = vrot.slane %v3485_v0, 5  ;;  %v4579_v1 = vshrl.u32 %v6881_v45, 16  ;;  %v3490_v18 = vshrl.u32 %v3357_v17, 16 }
 0x204   : > { %v3016_v39 = vadd.f32 %v2963_v52, %v2558_v11  ;;  %v8190_v9 = vpop.f32.mrf.mxu1  ;;  %v4554_v11 = vsel %vm7367_vm11, %v4549_v31, %v8173_v43  ;;  %v3483_v21 = vrot.slane %v3482_v16, 4  ;;  %v4876_v24 = vunpack.c.l.b16 %v4564_v41  ;;  %v3359_v41 = vld [vmem:[#allocation2 + $0x50] sm:$0x1] }
 0x205   : > { %5026 = vmatmul.bf16.gmra.mxu0 %v8150_v60  ;;  %4350 = vmatmul.bf16.gmra.mxu3 %v4254_v20  ;;  %v4457_v60 = vld [vmem:[#allocation2 + $0x3c] sm:$0xf]  ;;  %v4875_v43 = vunpack.c.l.b16 %v4554_v11  ;;  %v3503_v16 = vshrl.u32 %v3358_v7, 16  ;;  %v4121_v0 = vrot.slane %v3358_v7, 5 }
 0x206   : > { %v4566_v46 = vshrl.u32 %v4457_v60, 16  ;;  %v4569_v55 = vshll.u32 %v4457_v60, 16  ;;  %v4255_v60 = vpack.c.b16 %v4227_v53, %v4226_v6  ;;  %v3488_v6 = vsel %vm7367_vm11, %v3483_v21, %v3487_v40 }
 0x207   : > { %v2193_v20 = vpop.f32.mrf.mxu2  ;;  %5120 = vmatmul.bf16.gmra.mxu1 %v8184_v28  ;;  %v8220_v11 = vpack.c.b16 %v4876_v24, %v4875_v43  ;;  %v3509_v43 = vshll.u32 %v3359_v41, 16 }
 0x208   : > { %v2510_v58 = vpop.f32.mrf.mxu3  ;;  %v2245_v52 = vadd.f32 %v2193_v20, %v7831_v32  ;;  %v4575_v32 = vshll.u32 %v6881_v45, 16  ;;  %v4568_v31 = vrot.slane %v4566_v46, 4  ;;  %v4571_v44 = vrot.slane %v4569_v55, 5 }
 0x209   : > { %v3499_v20 = vshll.u32 %v3358_v7, 16  ;;  %v3492_v46 = vrot.slane %v3490_v18, 4  ;;  %v3495_v55 = vrot.slane %v3493_v35, 5 }
 0x20a   : > { %v2965_v36 = vpop.f32.mrf.mxu0  ;;  %v2559_v57 = vadd.f32 %v2507_v2, %v2245_v52  ;;  %v3478_v2 = vsel %vm7367_vm11, %v3473_v4, %v8188_v14  ;;  %v8209_v52 = vrot.slane %v4575_v32, 5  ;;  %v4572_v7 = vor.u32 %v4571_v44, %v4568_v31  ;;  %v4458_v44 = vld [vmem:[#allocation2 + $0x48] sm:$0xf] }
 0x20b   : > { %v3800_v53 = vunpack.c.l.b16 %v3478_v2  ;;  %v3801_v2 = vunpack.c.l.b16 %v3488_v6  ;;  %v3496_v35 = vor.u32 %v3495_v55, %v3492_v46  ;;  %v3511_v46 = vrot.slane %v3509_v43, 5  ;;  %v3360_v55 = vld [vmem:[#allocation2 + $0x54] sm:$0xf] }
 0x20c   : > { %v3017_v33 = vadd.f32 %v2965_v36, %v2559_v57  ;;  %3924 = vmatmul.bf16.gmra.mxu2 %v3828_v56  ;;  %v8204_v59 = vpop.f32.mrf.mxu1  ;;  %v4031_v36 = vld [vmem:[#allocation2 + $0x48] sm:$0xe]  ;;  %v4581_v56 = vrot.slane %v4579_v1, 4  ;;  %v8212_v57 = vadd.f32 %v8152_v27, %v3016_v39  ;;  %v4123_v27 = vrot.slane %v4121_v0, 4 }
 0x20d   : > { %v6303_v32 = vrot.slane %v4031_v36, 9  ;;  %v4124_v39 = vrot.slane %v3359_v41, 5  ;;  %v4573_v31 = vrot.slane %v4572_v7, 4  ;;  %v3361_v41 = vld [vmem:[#allocation2 + $0x58] sm:$0xf]  ;;  %v4593_v7 = vshll.u32 %v4458_v44, 16 }
 0x20e   : > { %v8215_v14 = vadd.f32 %v8171_v63, %v3017_v33  ;;  %v8223_v63 = vrot.slane %v3499_v20, 5  ;;  %v4582_v1 = vor.u32 %v4581_v56, %v8209_v52  ;;  %v6882_v33 = vld [vmem:[#allocation2 + $0x44] sm:$0x1]  ;;  %v3523_v43 = vshll.u32 %v3361_v41, 16 }
 0x20f   : > { %v2196_v30 = vpop.f32.mrf.mxu2  ;;  %v4585_v18 = vshll.u32 %v6882_v33, 16  ;;  %v4122_v24 = vsel %vm7787_vm14, %v6303_v32, %v4121_v0 }
 0x210   : > { %v2512_v25 = vpop.f32.mrf.mxu3  ;;  %v2246_v17 = vadd.f32 %v2196_v30, %v7841_v22  ;;  %v3505_v22 = vrot.slane %v3503_v16, 4  ;;  %v4583_v16 = vrot.slane %v4582_v1, 4  ;;  %v4228_v0 = vunpack.c.l.b16 %v4122_v24 }
 0x211   : > { %v4587_v30 = vrot.slane %v4585_v18, 5  ;;  %v3517_v18 = vshll.u32 %v3360_v55, 16  ;;  %v3527_v24 = vshrl.u32 %v3361_v41, 16 }
 0x212   : > { %v2968_v4 = vpop.f32.mrf.mxu0  ;;  %v2560_v45 = vadd.f32 %v2510_v58, %v2246_v17  ;;  %v3506_v20 = vor.u32 %v3505_v22, %v8223_v63  ;;  %v3497_v17 = vrot.slane %v3496_v35, 4 }
 0x214   : > { %v3018_v21 = vadd.f32 %v2968_v4, %v2560_v45  ;;  %v8226_v40 = vpop.f32.mrf.mxu1  ;;  %v3829_v4 = vpack.c.b16 %v3801_v2, %v3800_v53  ;;  %v4590_v45 = vshrl.u32 %v4458_v44, 16  ;;  %v3507_v33 = vrot.slane %v3506_v20, 4 }
 0x215   : > { %5031 = vmatmul.bf16.gmra.mxu0 %v8184_v28  ;;  %4355 = vmatmul.bf16.gmra.mxu3 %v4255_v60  ;;  %v4125_v28 = vsel %vm7787_vm14, %v4123_v27, %v4124_v39  ;;  %v4578_v27 = vsel %vm7367_vm11, %v4573_v31, %v8209_v52  ;;  %v6883_v39 = vld [vmem:[#allocation2 + $0x4c] sm:$0xf]  ;;  %v3514_v53 = vshrl.u32 %v3360_v55, 16  ;;  %v4595_v44 = vrot.slane %v4593_v7, 5  ;;  %v3362_v7 = vld [vmem:[#allocation2 + $0x5c] sm:$0x1] }
 0x216   : > { %v4229_v6 = vunpack.c.l.b16 %v4125_v28  ;;  %v4599_v22 = vshll.u32 %v6883_v39, 16  ;;  %v4603_v1 = vshrl.u32 %v6883_v39, 16  ;;  %v4877_v52 = vunpack.c.l.b16 %v4578_v27 }
 0x217   : > { %v2198_v60 = vpop.f32.mrf.mxu2  ;;  %5125 = vmatmul.bf16.gmra.mxu1 %v8220_v11  ;;  %v4128_v28 = vrot.slane %v3361_v41, 5  ;;  %v4592_v31 = vrot.slane %v4590_v45, 4  ;;  %v3516_v55 = vrot.slane %v3514_v53, 4  ;;  %v8248_v39 = vadd.f32 %v8190_v9, %v3018_v21  ;;  %v6884_v21 = vld [vmem:[#allocation2 + $0x50] sm:$0x1] }
 0x218   : > { %v2515_v58 = vpop.f32.mrf.mxu3  ;;  %v2247_v56 = vadd.f32 %v2198_v60, %v7849_v12  ;;  %v4588_v12 = vsel %vm7367_vm11, %v4583_v16, %v4587_v30  ;;  %v4256_v20 = vpack.c.b16 %v4229_v6, %v4228_v0  ;;  %v4032_v16 = vld [vmem:[#allocation2 + $0x54] sm:$0xe]  ;;  %v8245_v30 = vrot.slane %v4599_v22, 5 }
 0x219   : > { %v3512_v0 = vsel %vm7367_vm11, %v3507_v33, %v3511_v46  ;;  %v8256_v6 = vrot.slane %v3523_v43, 5  ;;  %v3529_v45 = vrot.slane %v3527_v24, 4  ;;  %v6304_v27 = vrot.slane %v4032_v16, 9 }
 0x21a   : > { %v2970_v36 = vpop.f32.mrf.mxu0  ;;  %v2561_v32 = vadd.f32 %v2512_v25, %v2247_v56  ;;  %v3502_v25 = vsel %vm7367_vm11, %v3497_v17, %v8223_v63  ;;  %v4878_v56 = vunpack.c.l.b16 %v4588_v12  ;;  %v4130_v22 = vrot.slane %v4128_v28, 4 }
 0x21b   : > { %v4131_v53 = vrot.slane %v3362_v7, 5  ;;  %v3530_v24 = vor.u32 %v3529_v45, %v8256_v6 }
 0x21c   : > { %v3019_v2 = vadd.f32 %v2970_v36, %v2561_v32  ;;  %3929 = vmatmul.bf16.gmra.mxu2 %v3829_v4  ;;  %v8240_v35 = vpop.f32.mrf.mxu1  ;;  %v4605_v36 = vrot.slane %v4603_v1, 4  ;;  %v3519_v32 = vrot.slane %v3517_v18, 5  ;;  %v4596_v1 = vor.u32 %v4595_v44, %v4592_v31 }
 0x21d   : > { %v3802_v18 = vunpack.c.l.b16 %v3502_v25  ;;  %v3533_v31 = vshll.u32 %v3362_v7, 16 }
 0x21e   : > { %v8251_v63 = vadd.f32 %v8204_v59, %v3019_v2  ;;  %v4606_v9 = vor.u32 %v4605_v36, %v8245_v30  ;;  %v4609_v59 = vshll.u32 %v6884_v21, 16  ;;  %v8260_v2 = vpack.c.b16 %v4878_v56, %v4877_v52 }
 0x21f   : > { %v2201_v4 = vpop.f32.mrf.mxu2  ;;  %v3520_v46 = vor.u32 %v3519_v32, %v3516_v55  ;;  %v4597_v44 = vrot.slane %v4596_v1, 4  ;;  %v4459_v55 = vld [vmem:[#allocation2 + $0x54] sm:$0xf] }
 0x220   : > { %v2517_v60 = vpop.f32.mrf.mxu3  ;;  %v2248_v41 = vadd.f32 %v2201_v4, %v7856_v15  ;;  %v3803_v15 = vunpack.c.l.b16 %v3512_v0  ;;  %v4607_v25 = vrot.slane %v4606_v9, 4  ;;  %v4611_v36 = vrot.slane %v4609_v59, 5  ;;  %v6885_v59 = vld [vmem:[#allocation2 + $0x58] sm:$0xf] }
 0x221   : > { %v3521_v4 = vrot.slane %v3520_v46, 4  ;;  %v3535_v0 = vrot.slane %v3533_v31, 5  ;;  %v4602_v7 = vsel %vm7367_vm11, %v4597_v44, %v8245_v30  ;;  %v4614_v9 = vshrl.u32 %v4459_v55, 16 }
 0x222   : > { %v2973_v17 = vpop.f32.mrf.mxu0  ;;  %v2562_v12 = vadd.f32 %v2515_v58, %v2248_v41  ;;  %v4129_v58 = vsel %vm7787_vm14, %v6304_v27, %v4128_v28  ;;  %v3830_v56 = vpack.c.b16 %v3803_v15, %v3802_v18  ;;  %v3531_v41 = vrot.slane %v3530_v24, 4  ;;  %v8274_v27 = vld [vmem:[#allocation2 + $0x64] sm:$0xf] }
 0x223   : > { %v4230_v28 = vunpack.c.l.b16 %v4129_v58  ;;  %v4617_v21 = vshll.u32 %v4459_v55, 16  ;;  %v4623_v18 = vshll.u32 %v6885_v59, 16  ;;  %v4627_v15 = vshrl.u32 %v6885_v59, 16  ;;  %v3365_v55 = vld [vmem:[#allocation2 + $0x68] sm:$0x1] }
 0x224   : > { %v3020_v33 = vadd.f32 %v2973_v17, %v2562_v12  ;;  %v8262_v43 = vpop.f32.mrf.mxu1  ;;  %v3536_v24 = vsel %vm7367_vm11, %v3531_v41, %v3535_v0  ;;  %v3551_v31 = vshrl.u32 %v8274_v27, 16  ;;  %v4879_v58 = vunpack.c.l.b16 %v4602_v7 }
 0x225   : > { %5036 = vmatmul.bf16.gmra.mxu0 %v8220_v11  ;;  %4360 = vmatmul.bf16.gmra.mxu3 %v4256_v20  ;;  %v4132_v11 = vsel %vm7787_vm14, %v4130_v22, %v4131_v53  ;;  %v3363_v20 = vld [vmem:[#allocation2 + $0x60] sm:$0xf]  ;;  %v4612_v53 = vsel %vm7367_vm11, %v4607_v25, %v4611_v36  ;;  %v4629_v41 = vrot.slane %v4627_v15, 4  ;;  %v3557_v59 = vshll.u32 %v3365_v55, 16 }
 0x226   : > { %v4231_v45 = vunpack.c.l.b16 %v4132_v11  ;;  %v3538_v22 = vshrl.u32 %v3363_v20, 16  ;;  %v3541_v1 = vshll.u32 %v3363_v20, 16  ;;  %v4880_v44 = vunpack.c.l.b16 %v4612_v53 }
 0x227   : > { %v2203_v52 = vpop.f32.mrf.mxu2  ;;  %5130 = vmatmul.bf16.gmra.mxu1 %v8260_v2  ;;  %v4135_v20 = vrot.slane %v8274_v27, 5  ;;  %v8291_v0 = vadd.f32 %v8226_v40, %v3020_v33 }
 0x228   : > { %v2520_v16 = vpop.f32.mrf.mxu3  ;;  %v2249_v17 = vadd.f32 %v2203_v52, %v7865_v42  ;;  %v3526_v42 = vsel %vm7367_vm11, %v3521_v4, %v8256_v6  ;;  %v3540_v11 = vrot.slane %v3538_v22, 4  ;;  %v3543_v25 = vrot.slane %v3541_v1, 5 }
 0x229   : > { %v4257_v6 = vpack.c.b16 %v4231_v45, %v4230_v28  ;;  %v4616_v52 = vrot.slane %v4614_v9, 4  ;;  %v4619_v4 = vrot.slane %v4617_v21, 5  ;;  %8969 = vst [vmem:[#allocation28_spill] sm:$0xff] %v8291_v0  ;;  %v3553_v45 = vrot.slane %v3551_v31, 4 }
 0x22a   : > { %v2975_v32 = vpop.f32.mrf.mxu0  ;;  %v2563_v12 = vadd.f32 %v2517_v60, %v2249_v17  ;;  %v3547_v60 = vshll.u32 %v8274_v27, 16  ;;  %v8288_v17 = vrot.slane %v4623_v18, 5  ;;  %v3804_v27 = vunpack.c.l.b16 %v3526_v42 }
 0x22b   : > { %v8299_v53 = vpack.c.b16 %v4880_v44, %v4879_v58  ;;  %v3544_v9 = vor.u32 %v3543_v25, %v3540_v11  ;;  %v4620_v15 = vor.u32 %v4619_v4, %v4616_v52  ;;  %v4137_v40 = vrot.slane %v4135_v20, 4  ;;  %v8306_v58 = vld [vmem:[#allocation2 + $0x70] sm:$0xf]  ;;  %v4460_v4 = vld [vmem:[#allocation2 + $0x60] sm:$0xf] }
 0x22c   : > { %v3021_v46 = vadd.f32 %v2975_v32, %v2563_v12  ;;  %3934 = vmatmul.bf16.gmra.mxu2 %v3830_v56  ;;  %v8281_v30 = vpop.f32.mrf.mxu1  ;;  %v4033_v32 = vld [vmem:[#allocation2 + $0x60] sm:$0xe]  ;;  %v8297_v28 = vrot.slane %v3547_v60, 5  ;;  %v3805_v12 = vunpack.c.l.b16 %v3536_v24  ;;  %v4630_v33 = vor.u32 %v4629_v41, %v8288_v17  ;;  %v3366_v60 = vld [vmem:[#allocation2 + $0x6c] sm:$0xf] }
 0x22d   : > { %v6305_v18 = vrot.slane %v4033_v32, 9  ;;  %v3565_v44 = vshll.u32 %v3366_v60, 16  ;;  %v4621_v52 = vrot.slane %v4620_v15, 4  ;;  %v4638_v15 = vshrl.u32 %v4460_v4, 16 }
 0x22e   : > { %v8294_v7 = vadd.f32 %v8240_v35, %v3021_v46  ;;  %v4138_v35 = vrot.slane %v3365_v55, 5  ;;  %v3554_v24 = vor.u32 %v3553_v45, %v8297_v28  ;;  %v3831_v11 = vpack.c.b16 %v3805_v12, %v3804_v27 }
 0x22f   : > { %v2206_v56 = vpop.f32.mrf.mxu2  ;;  %v4136_v55 = vsel %vm7787_vm14, %v6305_v18, %v4135_v20  ;;  %v4631_v41 = vrot.slane %v4630_v33, 4  ;;  %v3571_v12 = vshll.u32 %v8306_v58, 16 }
 0x230   : > { %v2522_v36 = vpop.f32.mrf.mxu3  ;;  %8970 = vst [vmem:[#allocation29_spill] sm:$0xff] %v8294_v7  ;;  %v2250_v1 = vadd.f32 %v2206_v56, %v7874_v13  ;;  %v6886_v13 = vld [vmem:[#allocation2 + $0x5c] sm:$0x1]  ;;  %v4139_v32 = vsel %vm7787_vm14, %v4137_v40, %v4138_v35  ;;  %v3555_v27 = vrot.slane %v3554_v24, 4  ;;  %v4232_v18 = vunpack.c.l.b16 %v4136_v55  ;;  %v3368_v35 = vld [vmem:[#allocation2 + $0x74] sm:$0x1] }
 0x231   : > { %v4633_v46 = vshll.u32 %v6886_v13, 16  ;;  %v4641_v13 = vshll.u32 %v4460_v4, 16  ;;  %v4233_v40 = vunpack.c.l.b16 %v4139_v32  ;;  %v3581_v55 = vshll.u32 %v3368_v35, 16  ;;  %v4034_v7 = vld [vmem:[#allocation2 + $0x6c] sm:$0xe] }
 0x232   : > { %v2978_v22 = vpop.f32.mrf.mxu0  ;;  %v2564_v21 = vadd.f32 %v2520_v16, %v2250_v1  ;;  %v3562_v16 = vshrl.u32 %v3366_v60, 16  ;;  %v4640_v32 = vrot.slane %v4638_v15, 4 }
 0x234   : > { %v3022_v31 = vadd.f32 %v2978_v22, %v2564_v21  ;;  %v8303_v42 = vpop.f32.mrf.mxu1  ;;  %v4635_v22 = vrot.slane %v4633_v46, 5  ;;  %v3564_v21 = vrot.slane %v3562_v16, 4  ;;  %v6887_v46 = vld [vmem:[#allocation2 + $0x64] sm:$0xf] }
 0x235   : > { %5041 = vmatmul.bf16.gmra.mxu0 %v8260_v2  ;;  %4365 = vmatmul.bf16.gmra.mxu3 %v4257_v6  ;;  %v3545_v2 = vrot.slane %v3544_v9, 4  ;;  %v3559_v6 = vrot.slane %v3557_v59, 5  ;;  %v3575_v9 = vshrl.u32 %v8306_v58, 16  ;;  %v3567_v59 = vrot.slane %v3565_v44, 5 }
 0x236   : > { %v4636_v33 = vsel %vm7367_vm11, %v4631_v41, %v4635_v22  ;;  %v4647_v24 = vshll.u32 %v6887_v46, 16  ;;  %v4651_v16 = vshrl.u32 %v6887_v46, 16 }
 0x237   : > { %v2208_v56 = vpop.f32.mrf.mxu2  ;;  %5135 = vmatmul.bf16.gmra.mxu1 %v8299_v53  ;;  %v3550_v20 = vsel %vm7367_vm11, %v3545_v2, %v8297_v28  ;;  %v3560_v28 = vsel %vm7367_vm11, %v3555_v27, %v3559_v6  ;;  %v8328_v2 = vrot.slane %v3571_v12, 5  ;;  %v3577_v4 = vrot.slane %v3575_v9, 4 }
 0x238   : > { %v2525_v25 = vpop.f32.mrf.mxu3  ;;  %v2251_v45 = vadd.f32 %v2208_v56, %v7883_v47  ;;  %v4626_v47 = vsel %vm7367_vm11, %v4621_v52, %v8288_v17  ;;  %v3568_v56 = vor.u32 %v3567_v59, %v3564_v21  ;;  %v4643_v17 = vrot.slane %v4641_v13, 5 }
 0x239   : > { %v4881_v41 = vunpack.c.l.b16 %v4626_v47  ;;  %v4882_v22 = vunpack.c.l.b16 %v4636_v33  ;;  %v4653_v46 = vrot.slane %v4651_v16, 4  ;;  %v8334_v6 = vadd.f32 %v8262_v43, %v3022_v31  ;;  %v6888_v16 = vld [vmem:[#allocation2 + $0x68] sm:$0x1]  ;;  %v3369_v31 = vld [vmem:[#allocation2 + $0x78] sm:$0xf] }
 0x23a   : > { %v2980_v1 = vpop.f32.mrf.mxu0  ;;  %v2565_v60 = vadd.f32 %v2522_v36, %v2251_v45  ;;  %v4258_v45 = vpack.c.b16 %v4233_v40, %v4232_v18  ;;  %v3806_v21 = vunpack.c.l.b16 %v3550_v20  ;;  %v3807_v59 = vunpack.c.l.b16 %v3560_v28  ;;  %v8345_v20 = vld [vmem:[#allocation2 + $0x7c] sm:$0xf] }
 0x23b   : > { %8971 = vst [vmem:[#allocation30_spill] sm:$0xff] %v8334_v6  ;;  %v3578_v15 = vor.u32 %v3577_v4, %v8328_v2  ;;  %v3569_v13 = vrot.slane %v3568_v56, 4  ;;  %v3583_v18 = vrot.slane %v3581_v55, 5  ;;  %v4644_v40 = vor.u32 %v4643_v17, %v4640_v32 }
 0x23c   : > { %v3023_v44 = vadd.f32 %v2980_v1, %v2565_v60  ;;  %3939 = vmatmul.bf16.gmra.mxu2 %v3831_v11  ;;  %v8324_v36 = vpop.f32.mrf.mxu1  ;;  %v4142_v1 = vrot.slane %v8306_v58, 5  ;;  %v8331_v60 = vrot.slane %v4647_v24, 5  ;;  %v6306_v58 = vrot.slane %v4034_v7, 9 }
 0x23d   : > { %v4145_v24 = vrot.slane %v3368_v35, 5  ;;  %v4657_v43 = vshll.u32 %v6888_v16, 16  ;;  %v3579_v7 = vrot.slane %v3578_v15, 4  ;;  %v3589_v56 = vshll.u32 %v3369_v31, 16 }
 0x23e   : > { %v8337_v27 = vadd.f32 %v8281_v30, %v3023_v44  ;;  %v4144_v33 = vrot.slane %v4142_v1, 4  ;;  %v8342_v30 = vpack.c.b16 %v4882_v22, %v4881_v41  ;;  %v4461_v44 = vld [vmem:[#allocation2 + $0x6c] sm:$0xf]  ;;  %v3832_v35 = vpack.c.b16 %v3807_v59, %v3806_v21 }
 0x23f   : > { %v2211_v11 = vpop.f32.mrf.mxu2  ;;  %v4143_v55 = vsel %vm7787_vm14, %v6306_v58, %v4142_v1  ;;  %v3595_v32 = vshll.u32 %v8345_v20, 16  ;;  %v3599_v41 = vshrl.u32 %v8345_v20, 16  ;;  %v4662_v22 = vshrl.u32 %v4461_v44, 16 }
 0x240   : > { %v2527_v52 = vpop.f32.mrf.mxu3  ;;  %8972 = vst [vmem:[#allocation31_spill] sm:$0xff] %v8337_v27  ;;  %v2252_v9 = vadd.f32 %v2211_v11, %v7892_v38  ;;  %v4654_v38 = vor.u32 %v4653_v46, %v8331_v60  ;;  %v4665_v11 = vshll.u32 %v4461_v44, 16  ;;  %v3591_v59 = vrot.slane %v3589_v56, 5  ;;  %v3371_v44 = vld [vmem:[#allocation2 + $0x80] sm:$0x1] }
 0x241   : > { %v3574_v58 = vsel %vm7367_vm11, %v3569_v13, %v8328_v2  ;;  %v8365_v16 = vrot.slane %v3595_v32, 5  ;;  %v4036_v27 = vld [vmem:[#allocation2 + $0x84] sm:$0xe] }
 0x242   : > { %v2983_v12 = vpop.f32.mrf.mxu0  ;;  %v2566_v47 = vadd.f32 %v2525_v25, %v2252_v9  ;;  %v3586_v25 = vshrl.u32 %v3369_v31, 16  ;;  %v4659_v9 = vrot.slane %v4657_v43, 5  ;;  %v6889_v43 = vld [vmem:[#allocation2 + $0x70] sm:$0xf]  ;;  %v4667_v56 = vrot.slane %v4665_v11, 5 }
 0x244   : > { %v3024_v28 = vadd.f32 %v2983_v12, %v2566_v47  ;;  %v8347_v4 = vpop.f32.mrf.mxu1  ;;  %v4655_v12 = vrot.slane %v4654_v38, 4  ;;  %v3588_v21 = vrot.slane %v3586_v25, 4  ;;  %v4234_v47 = vunpack.c.l.b16 %v4143_v55 }
 0x245   : > { %5046 = vmatmul.bf16.gmra.mxu0 %v8299_v53  ;;  %4370 = vmatmul.bf16.gmra.mxu3 %v4258_v45  ;;  %v4645_v53 = vrot.slane %v4644_v40, 4  ;;  %v4146_v45 = vsel %vm7787_vm14, %v4144_v33, %v4145_v24  ;;  %v3584_v40 = vsel %vm7367_vm11, %v3579_v7, %v3583_v18  ;;  %v4671_v38 = vshll.u32 %v6889_v43, 16 }
 0x246   : > { %v4235_v33 = vunpack.c.l.b16 %v4146_v45  ;;  %v4664_v25 = vrot.slane %v4662_v22, 4  ;;  %v4660_v2 = vsel %vm7367_vm11, %v4655_v12, %v4659_v9  ;;  %v3592_v13 = vor.u32 %v3591_v59, %v3588_v21 }
 0x247   : > { %v2213_v46 = vpop.f32.mrf.mxu2  ;;  %5140 = vmatmul.bf16.gmra.mxu1 %v8342_v30  ;;  %v4650_v24 = vsel %vm7367_vm11, %v4645_v53, %v8331_v60  ;;  %v4675_v18 = vshrl.u32 %v6889_v43, 16  ;;  %v8371_v45 = vunpack.c.l.b16 %v3574_v58  ;;  %v8373_v60 = vunpack.c.l.b16 %v3584_v40 }
 0x248   : > { %v2530_v17 = vpop.f32.mrf.mxu3  ;;  %v2253_v1 = vadd.f32 %v2213_v46, %v7901_v62  ;;  %v3601_v62 = vrot.slane %v3599_v41, 4  ;;  %v4259_v53 = vpack.c.b16 %v4235_v33, %v4234_v47  ;;  %v4883_v32 = vunpack.c.l.b16 %v4650_v24  ;;  %v4035_v46 = vld [vmem:[#allocation2 + $0x78] sm:$0xe] }
 0x249   : > { %v4149_v41 = vrot.slane %v8345_v20, 5  ;;  %v4884_v11 = vunpack.c.l.b16 %v4660_v2  ;;  %v4668_v9 = vor.u32 %v4667_v56, %v4664_v25  ;;  %v8377_v21 = vrot.slane %v4671_v38, 5  ;;  %v8975_v47 = vld [vmem:[#allocation20_spill] sm:$0xff]  ;;  %v6890_v2 = vld [vmem:[#allocation2 + $0x74] sm:$0x1] }
 0x24a   : > { %v2985_v15 = vpop.f32.mrf.mxu0  ;;  %v2567_v31 = vadd.f32 %v2527_v52, %v2253_v1  ;;  %v3605_v52 = vshll.u32 %v3371_v44, 16  ;;  %v3602_v12 = vor.u32 %v3601_v62, %v8365_v16  ;;  %v3593_v59 = vrot.slane %v3592_v13, 4 }
 0x24b   : > { %v8380_v1 = vadd.f32 %v8303_v42, %v3024_v28  ;;  %v6307_v20 = vrot.slane %v4035_v46, 9  ;;  %v3833_v24 = vpack.c.b16 %v8373_v60, %v8371_v45  ;;  %v4152_v38 = vrot.slane %v3371_v44, 5  ;;  %v4462_v44 = vld [vmem:[#allocation2 + $0x78] sm:$0xf] }
 0x24c   : > { %v3025_v7 = vadd.f32 %v2985_v15, %v2567_v31  ;;  %3944 = vmatmul.bf16.gmra.mxu2 %v3832_v35  ;;  %v8369_v55 = vpop.f32.mrf.mxu1  ;;  %v4677_v15 = vrot.slane %v4675_v18, 4  ;;  %v3607_v43 = vrot.slane %v3605_v52, 5  ;;  %v4151_v31 = vrot.slane %v4149_v41, 4  ;;  %v3372_v18 = vld [vmem:[#allocation2 + $0x84] sm:$0xf] }
 0x24d   : > { %8973 = vst [vmem:[#allocation32_spill] sm:$0xff] %v8380_v1  ;;  %v3603_v25 = vrot.slane %v3602_v12, 4  ;;  %v4669_v56 = vrot.slane %v4668_v9, 4  ;;  %v4681_v13 = vshll.u32 %v6890_v2, 16  ;;  %v8389_v42 = vpack.c.b16 %v4884_v11, %v4883_v32 }
 0x24e   : > { %v8383_v58 = vadd.f32 %v8324_v36, %v3025_v7  ;;  %v3598_v36 = vsel %vm7367_vm11, %v3593_v59, %v8365_v16  ;;  %v4678_v28 = vor.u32 %v4677_v15, %v8377_v21  ;;  %v8395_v7 = vld [vmem:[#allocation2 + $0x88] sm:$0xf]  ;;  %v4150_v60 = vsel %vm7787_vm14, %v6307_v20, %v4149_v41 }
 0x24f   : > { %v2216_v35 = vpop.f32.mrf.mxu2  ;;  %v4153_v32 = vsel %vm7787_vm14, %v4151_v31, %v4152_v38  ;;  %v3619_v52 = vshll.u32 %v8395_v7, 16  ;;  %v3623_v16 = vshrl.u32 %v8395_v7, 16  ;;  %v4686_v46 = vshrl.u32 %v4462_v44, 16  ;;  %v8976_v38 = vld [vmem:[#allocation21_spill] sm:$0xff] }
 0x250   : > { %v2532_v22 = vpop.f32.mrf.mxu3  ;;  %8974 = vst [vmem:[#allocation33_spill] sm:$0xff] %v8383_v58  ;;  %v2254_v33 = vadd.f32 %v2216_v35, %v8975_v47  ;;  %v3608_v12 = vsel %vm7367_vm11, %v3603_v25, %v3607_v43  ;;  %v4689_v59 = vshll.u32 %v4462_v44, 16  ;;  %v4679_v41 = vrot.slane %v4678_v28, 4  ;;  %v3374_v47 = vld [vmem:[#allocation2 + $0x8c] sm:$0x1] }
 0x251   : > { %v3625_v20 = vrot.slane %v3623_v16, 4  ;;  %v4236_v2 = vunpack.c.l.b16 %v4150_v60  ;;  %v4674_v43 = vsel %vm7367_vm11, %v4669_v56, %v8377_v21  ;;  %v4688_v25 = vrot.slane %v4686_v46, 4  ;;  %v6891_v44 = vld [vmem:[#allocation2 + $0x7c] sm:$0xf] }
 0x252   : > { %v2988_v40 = vpop.f32.mrf.mxu0  ;;  %v2568_v62 = vadd.f32 %v2530_v17, %v2254_v33  ;;  %v3621_v33 = vrot.slane %v3619_v52, 5  ;;  %v4691_v52 = vrot.slane %v4689_v59, 5  ;;  %v8412_v16 = vunpack.c.l.b16 %v3598_v36 }
 0x253   : > { %v8419_v21 = vunpack.c.l.b16 %v3608_v12  ;;  %v4885_v56 = vunpack.c.l.b16 %v4674_v43 }
 0x254   : > { %v3026_v17 = vadd.f32 %v2988_v40, %v2568_v62  ;;  %v8397_v45 = vpop.f32.mrf.mxu1  ;;  %v4683_v40 = vrot.slane %v4681_v13, 5  ;;  %v3626_v28 = vor.u32 %v3625_v20, %v3621_v33  ;;  %v3629_v13 = vshll.u32 %v3374_v47, 16 }
 0x255   : > { %5051 = vmatmul.bf16.gmra.mxu0 %v8342_v30  ;;  %4375 = vmatmul.bf16.gmra.mxu3 %v4259_v53  ;;  %v3610_v30 = vshrl.u32 %v3372_v18, 16  ;;  %v3613_v53 = vshll.u32 %v3372_v18, 16  ;;  %v4237_v18 = vunpack.c.l.b16 %v4153_v32  ;;  %v4156_v32 = vrot.slane %v8395_v7, 5 }
 0x256   : > { %v4684_v60 = vsel %vm7367_vm11, %v4679_v41, %v4683_v40  ;;  %v8425_v41 = vrot.slane %v3629_v13, 5  ;;  %v4692_v7 = vor.u32 %v4691_v52, %v4688_v25  ;;  %v4159_v40 = vrot.slane %v3374_v47, 5  ;;  %v8458_v13 = vld [vmem:[#allocation2 + $0x94] sm:$0xf]  ;;  %v4463_v52 = vld [vmem:[#allocation2 + $0x84] sm:$0xf] }
 0x257   : > { %v3612_v9 = vrot.slane %v3610_v30, 4  ;;  %v3615_v35 = vrot.slane %v3613_v53, 5  ;;  %v2218_v15 = vpop.f32.mrf.mxu2  ;;  %5145 = vmatmul.bf16.gmra.mxu1 %v8389_v42  ;;  %v4695_v30 = vshll.u32 %v6891_v44, 16  ;;  %v4699_v53 = vshrl.u32 %v6891_v44, 16  ;;  %v6892_v44 = vld [vmem:[#allocation2 + $0x80] sm:$0x1] }
 0x258   : > { %v2535_v11 = vpop.f32.mrf.mxu3  ;;  %v2255_v62 = vadd.f32 %v2218_v15, %v8976_v38  ;;  %v6308_v15 = vrot.slane %v4036_v27, 9  ;;  %v4886_v38 = vunpack.c.l.b16 %v4684_v60  ;;  %v8428_v12 = vadd.f32 %v8347_v4, %v3026_v17 }
 0x259   : > { %v3616_v58 = vor.u32 %v3615_v35, %v3612_v9  ;;  %v8421_v20 = vrot.slane %v4695_v30, 5  ;;  %v4701_v59 = vrot.slane %v4699_v53, 4  ;;  %v4705_v47 = vshll.u32 %v6892_v44, 16 }
 0x25a   : > { %v2990_v31 = vpop.f32.mrf.mxu0  ;;  %v2569_v1 = vadd.f32 %v2532_v22, %v2255_v62  ;;  %v4260_v22 = vpack.c.b16 %v4237_v18, %v4236_v2  ;;  %v8423_v62 = vrot.slane %v3626_v28, 4  ;;  %8977 = vst [vmem:[#allocation20_spill] sm:$0xff] %v8428_v12  ;;  %v8438_v43 = vsel %vm7787_vm14, %v6308_v15, %v4156_v32  ;;  %v3375_v28 = vld [vmem:[#allocation2 + $0x90] sm:$0xf] }
 0x25b   : > { %v3617_v46 = vrot.slane %v3616_v58, 4  ;;  %v4702_v25 = vor.u32 %v4701_v59, %v8421_v20  ;;  %v3834_v4 = vpack.c.b16 %v8419_v21, %v8412_v16  ;;  %v8446_v17 = vpack.c.b16 %v4886_v38, %v4885_v56 }
 0x25c   : > { %v3027_v9 = vadd.f32 %v2990_v31, %v2569_v1  ;;  %3949 = vmatmul.bf16.gmra.mxu2 %v3833_v24  ;;  %v8417_v35 = vpop.f32.mrf.mxu1  ;;  %v4158_v24 = vrot.slane %v4156_v32, 4  ;;  %v8979_v31 = vld [vmem:[#allocation22_spill] sm:$0xff]  ;;  %v4238_v60 = vunpack.c.l.b16 %v8438_v43  ;;  %v3634_v32 = vshrl.u32 %v3375_v28, 16  ;;  %v8980_v43 = vld [vmem:[#allocation23_spill] sm:$0xff] }
 0x25d   : > { %v3622_v18 = vsel %vm7367_vm11, %v3617_v46, %v3621_v33  ;;  %v3632_v33 = vsel %vm7367_vm11, %v8423_v62, %v8425_v41  ;;  %v4703_v21 = vrot.slane %v4702_v25, 4  ;;  %v4707_v56 = vrot.slane %v4705_v47, 5 }
 0x25e   : > { %v8431_v58 = vadd.f32 %v8369_v55, %v3027_v9  ;;  %v8443_v55 = vrot.slane %v4692_v7, 4  ;;  %v8452_v53 = vunpack.c.l.b16 %v3622_v18  ;;  %v3637_v9 = vshll.u32 %v3375_v28, 16 }
 0x25f   : > { %v2221_v1 = vpop.f32.mrf.mxu2  ;;  %v3643_v46 = vshll.u32 %v8458_v13, 16  ;;  %v3636_v59 = vrot.slane %v3634_v32, 4  ;;  %v4710_v62 = vshrl.u32 %v4463_v52, 16  ;;  %v4713_v41 = vshll.u32 %v4463_v52, 16  ;;  %v4037_v32 = vld [vmem:[#allocation2 + $0x90] sm:$0xe] }
 0x260   : > { %v2537_v36 = vpop.f32.mrf.mxu3  ;;  %8978 = vst [vmem:[#allocation21_spill] sm:$0xff] %v8431_v58  ;;  %v2256_v2 = vadd.f32 %v2221_v1, %v8979_v31  ;;  %v3639_v38 = vrot.slane %v3637_v9, 5  ;;  %v6893_v31 = vld [vmem:[#allocation2 + $0x88] sm:$0xf]  ;;  %v4698_v28 = vsel %vm7367_vm11, %v8443_v55, %v8421_v20 }
 0x261   : > { %v4723_v9 = vshrl.u32 %v6893_v31, 16  ;;  %v4712_v58 = vrot.slane %v4710_v62, 4  ;;  %v8482_v62 = vunpack.c.l.b16 %v3632_v33 }
 0x262   : > { %v2993_v27 = vpop.f32.mrf.mxu0  ;;  %v2570_v30 = vadd.f32 %v2535_v11, %v2256_v2  ;;  %v8456_v11 = vsel %vm7787_vm14, %v4158_v24, %v4159_v40  ;;  %v3377_v24 = vld [vmem:[#allocation2 + $0x98] sm:$0x1]  ;;  %v3645_v40 = vrot.slane %v3643_v46, 5  ;;  %v4719_v2 = vshll.u32 %v6893_v31, 16 }
 0x263   : > { %v4239_v1 = vunpack.c.l.b16 %v8456_v11  ;;  %v3640_v44 = vor.u32 %v3639_v38, %v3636_v59  ;;  %v3653_v47 = vshll.u32 %v3377_v24, 16  ;;  %v4708_v11 = vsel %vm7367_vm11, %v4703_v21, %v4707_v56 }
 0x264   : > { %v8460_v16 = vadd.f32 %v2993_v27, %v2570_v30  ;;  %v4163_v30 = vrot.slane %v8458_v13, 5  ;;  %v4725_v0 = vrot.slane %v4723_v9, 4  ;;  %v4166_v31 = vrot.slane %v3377_v24, 5  ;;  %v3378_v9 = vld [vmem:[#allocation2 + $0x9c] sm:$0xf] }
 0x265   : > { %5056 = vmatmul.bf16.gmra.mxu0 %v8389_v42  ;;  %4380 = vmatmul.bf16.gmra.mxu3 %v4260_v22  ;;  %v5111_v42 = vpop.f32.mrf.mxu1  ;;  %v3647_v22 = vshrl.u32 %v8458_v13, 16  ;;  %v3641_v59 = vrot.slane %v3640_v44, 4  ;;  %v3655_v38 = vrot.slane %v3653_v47, 5  ;;  %v8478_v13 = vrot.slane %v4719_v2, 5 }
 0x266   : > { %v4165_v55 = vrot.slane %v4163_v30, 4 }
 0x267   : > { %v2223_v7 = vpop.f32.mrf.mxu2  ;;  %5150 = vmatmul.bf16.gmra.mxu1 %v8446_v17  ;;  %v3649_v27 = vrot.slane %v3647_v22, 4  ;;  %v5324_v22 = vmul.f32 %v5111_v42, %v5111_v42  ;;  %v4726_v47 = vor.u32 %v4725_v0, %v8478_v13 }
 0x268   : > { %v8465_v15 = vpop.f32.mrf.mxu3  ;;  %v2257_v25 = vadd.f32 %v2223_v7, %v8980_v43  ;;  %v4715_v7 = vrot.slane %v4713_v41, 5  ;;  %v6309_v43 = vrot.slane %v4037_v32, 9  ;;  %v4887_v41 = vunpack.c.l.b16 %v4698_v28 }
 0x269   : > { %v3650_v52 = vor.u32 %v3649_v27, %v3645_v40  ;;  %v8505_v0 = vsel %vm7787_vm14, %v4165_v55, %v4166_v31 }
 0x26a   : > { %v2995_v18 = vpop.f32.mrf.mxu0  ;;  %v2571_v46 = vadd.f32 %v2537_v36, %v2257_v25  ;;  %v4888_v25 = vunpack.c.l.b16 %v4708_v11  ;;  %v4716_v44 = vor.u32 %v4715_v7, %v4712_v58  ;;  %v8496_v58 = vadd.f32 %v8397_v45, %v8460_v16 }
 0x26b   : > { %v3651_v20 = vrot.slane %v3650_v52, 4  ;;  %v3661_v7 = vshll.u32 %v3378_v9, 16 }
 0x26c   : > { %v3029_v12 = vadd.f32 %v2995_v18, %v2571_v46  ;;  %3954 = vmatmul.bf16.gmra.mxu2 %v3834_v4  ;;  %v4261_v18 = vpack.c.b16 %v4239_v1, %v4238_v60  ;;  %v8501_v60 = vsel %vm7787_vm14, %v6309_v43, %v4163_v30  ;;  %v8512_v11 = vpack.c.b16 %v4888_v25, %v4887_v41  ;;  %v8519_v46 = vld [vmem:[#allocation2 + $0xa0] sm:$0xf] }
 0x26d   : > { %v5113_v6 = vpop.f32.mrf.mxu1  ;;  %v3656_v33 = vsel %vm7367_vm11, %v3651_v20, %v3655_v38  ;;  %v4717_v45 = vrot.slane %v4716_v44, 4  ;;  %v4727_v30 = vrot.slane %v4726_v47, 4  ;;  %v3667_v20 = vshll.u32 %v8519_v46, 16 }
 0x26e   : > { %v6557_v21 = vpack.c.bf16 %v5113_v6, %v5111_v42  ;;  %v5325_v56 = vmul.f32 %v5113_v6, %v5113_v6  ;;  %v5287_v27 = vadd.f32 %v5113_v6, %v5111_v42  ;;  %v3646_v6 = vsel %vm7367_vm11, %v3641_v59, %v3645_v40  ;;  %v6894_v42 = vld [vmem:[#allocation2 + $0x8c] sm:$0x1]  ;;  %v4464_v59 = vld [vmem:[#allocation2 + $0x90] sm:$0xf] }
 0x26f   : > { %v3915_v2 = vpop.f32.mrf.mxu2  ;;  %v4729_v24 = vshll.u32 %v6894_v42, 16  ;;  %v8508_v1 = vadd.f32 %v8417_v35, %v3029_v12  ;;  %v3835_v40 = vpack.c.b16 %v8482_v62, %v8452_v53  ;;  %v8517_v16 = vunpack.c.l.b16 %v3656_v33 }
 0x270   : > { %v8480_v36 = vpop.f32.mrf.mxu3  ;;  %6558 = vst [vmem:[%s8486_s27] sm:$0xff] %v6557_v21   ;;  %v5356_v4 = vadd.f32 %v5325_v56, %v5324_v22  ;;  %v3995_v28 = vadd.f32 %v3915_v2, %v7952_v50  ;;  %v8515_v50 = vunpack.c.l.b16 %v3646_v6  ;;  %v4240_v12 = vunpack.c.l.b16 %v8501_v60 }
 0x271   : > { %v4731_v32 = vrot.slane %v4729_v24, 5  ;;  %v4241_v53 = vunpack.c.l.b16 %v8505_v0  ;;  %v3658_v22 = vshrl.u32 %v3378_v9, 16  ;;  %v4722_v21 = vsel %vm7367_vm11, %v4717_v45, %v8478_v13 }
 0x272   : > { %v5022_v52 = vpop.f32.mrf.mxu0  ;;  %v3663_v31 = vrot.slane %v3661_v7, 5  ;;  %v3671_v62 = vshrl.u32 %v8519_v46, 16  ;;  %v3669_v44 = vrot.slane %v3667_v20, 5  ;;  %v4734_v2 = vshrl.u32 %v4464_v59, 16 }
 0x273   : > { %v3660_v56 = vrot.slane %v3658_v22, 4  ;;  %v4889_v24 = vunpack.c.l.b16 %v4722_v21  ;;  %v4170_v60 = vrot.slane %v8519_v46, 5 }
 0x274   : > { %v3673_v33 = vrot.slane %v3671_v62, 4 }
 0x275   : > { %5061 = vmatmul.bf16.gmra.mxu0 %v8446_v17  ;;  %4385 = vmatmul.bf16.gmra.mxu3 %v4261_v18  ;;  %v5116_v35 = vpop.f32.mrf.mxu1  ;;  %v4421_v17 = vadd.f32 %v8465_v15, %v3995_v28  ;;  %v4732_v15 = vsel %vm7367_vm11, %v4727_v30, %v4731_v32  ;;  %v3664_v6 = vor.u32 %v3663_v31, %v3660_v56  ;;  %v4038_v28 = vld [vmem:[#allocation2 + $0x9c] sm:$0xe]  ;;  %v4736_v30 = vrot.slane %v4734_v2, 4 }
 0x276   : > { %v5288_v38 = vadd.f32 %v5287_v27, %v5116_v35  ;;  %v5326_v43 = vmul.f32 %v5116_v35, %v5116_v35  ;;  %v3380_v27 = vld [vmem:[#allocation2 + $0xa4] sm:$0x1]  ;;  %v4890_v45 = vunpack.c.l.b16 %v4732_v15  ;;  %v3674_v9 = vor.u32 %v3673_v33, %v3669_v44 }
 0x277   : > { %v3917_v41 = vpop.f32.mrf.mxu2  ;;  %5155 = vmatmul.bf16.gmra.mxu1 %v8512_v11  ;;  %v3677_v13 = vshll.u32 %v3380_v27, 16  ;;  %v5191_v42 = vadd.f32 %v5022_v52, %v4421_v17  ;;  %v3665_v32 = vrot.slane %v3664_v6, 4  ;;  %v6310_v7 = vrot.slane %v4038_v28, 9  ;;  %v6896_v28 = vld [vmem:[#allocation2 + $0x98] sm:$0x1] }
 0x278   : > { %v8525_v55 = vpop.f32.mrf.mxu3  ;;  %v5357_v25 = vadd.f32 %v5356_v4, %v5326_v43  ;;  %v3996_v47 = vadd.f32 %v3917_v41, %v7959_v51  ;;  %v4737_v4 = vshll.u32 %v4464_v59, 16  ;;  %v6895_v43 = vld [vmem:[#allocation2 + $0x94] sm:$0xf]  ;;  %v3675_v52 = vrot.slane %v3674_v9, 4 }
 0x279   : > { %v3679_v22 = vrot.slane %v3677_v13, 5  ;;  %v4743_v20 = vshll.u32 %v6895_v43, 16  ;;  %v4172_v17 = vrot.slane %v4170_v60, 4  ;;  %v4173_v21 = vrot.slane %v3380_v27, 5 }
 0x27a   : > { %v5024_v18 = vpop.f32.mrf.mxu0  ;;  %v4422_v0 = vadd.f32 %v8480_v36, %v3996_v47  ;;  %v4739_v36 = vrot.slane %v4737_v4, 5  ;;  %v5499_v62 = vmul.f32 %v5191_v42, %v5191_v42  ;;  %v4262_v33 = vpack.c.b16 %v4241_v53, %v4240_v12 }
 0x27b   : > { %v4745_v13 = vrot.slane %v4743_v20, 5  ;;  %v8556_v12 = vsel %vm7787_vm14, %v4172_v17, %v4173_v21  ;;  %v4753_v4 = vshll.u32 %v6896_v28, 16  ;;  %v8561_v9 = vpack.c.b16 %v4890_v45, %v4889_v24 }
 0x27c   : > { %v5192_v51 = vadd.f32 %v5024_v18, %v4422_v0  ;;  %3959 = vmatmul.bf16.gmra.mxu2 %v3835_v40  ;;  %v3670_v40 = vsel %vm7367_vm11, %v3665_v32, %v3669_v44  ;;  %v4740_v53 = vor.u32 %v4739_v36, %v4736_v30  ;;  %v4747_v44 = vshrl.u32 %v6895_v43, 16  ;;  %v3381_v43 = vld [vmem:[#allocation2 + $0xa8] sm:$0xf] }
 0x27d   : > { %v5118_v56 = vpop.f32.mrf.mxu1  ;;  %v8563_v32 = vunpack.c.l.b16 %v3670_v40  ;;  %v3685_v24 = vshll.u32 %v3381_v43, 16 }
 0x27e   : > { %v6562_v46 = vpack.c.bf16 %v5118_v56, %v5116_v35  ;;  %v5327_v59 = vmul.f32 %v5118_v56, %v5118_v56  ;;  %v5289_v31 = vadd.f32 %v5288_v38, %v5118_v56  ;;  %v6637_v41 = vpack.c.bf16 %v5192_v51, %v5191_v42 }
 0x27f   : > { %v5462_v15 = vadd.f32 %v5192_v51, %v5191_v42  ;;  %v5500_v2 = vmul.f32 %v5192_v51, %v5192_v51  ;;  %v3920_v6 = vpop.f32.mrf.mxu2  ;;  %v3680_v42 = vsel %vm7367_vm11, %v3675_v52, %v3679_v22  ;;  %v4741_v30 = vrot.slane %v4740_v53, 4 }
 0x280   : > { %v8537_v47 = vpop.f32.mrf.mxu3  ;;  %6714 = vst [vmem:[%s8486_s27 + $0x8] sm:$0xff] %v6562_v46   ;;  %v5358_v18 = vadd.f32 %v5357_v25, %v5327_v59  ;;  %v3997_v27 = vadd.f32 %v3920_v6, %v7968_v19  ;;  %v8552_v25 = vsel %vm7787_vm14, %v6310_v7, %v4170_v60  ;;  %v3836_v19 = vpack.c.b16 %v8517_v16, %v8515_v50  ;;  %v3382_v50 = vld [vmem:[#allocation2 + $0xac] sm:$0xf]  ;;  %v3383_v6 = vld [vmem:[#allocation2 + $0xb0] sm:$0x1] }
 0x281   : > { %6638 = vst [vmem:[%s8544_s8] sm:$0xff] %v6637_v41   ;;  %v5531_v35 = vadd.f32 %v5500_v2, %v5499_v62  ;;  %v8566_v60 = vunpack.c.l.b16 %v3680_v42  ;;  %v4242_v22 = vunpack.c.l.b16 %v8552_v25  ;;  %v4749_v7 = vrot.slane %v4747_v44, 4  ;;  %v4039_v44 = vld [vmem:[#allocation2 + $0xa8] sm:$0xe] }
 0x282   : > { %v5027_v38 = vpop.f32.mrf.mxu0  ;;  %v4423_v0 = vadd.f32 %v8525_v55, %v3997_v27  ;;  %v4243_v51 = vunpack.c.l.b16 %v8556_v12  ;;  %v3682_v16 = vshrl.u32 %v3381_v43, 16  ;;  %v4746_v59 = vsel %vm7367_vm11, %v4741_v30, %v4745_v13 }
 0x283   : > { %v4750_v52 = vor.u32 %v4749_v7, %v4745_v13  ;;  %v3695_v27 = vshrl.u32 %v3382_v50, 16  ;;  %v3701_v42 = vshll.u32 %v3383_v6, 16  ;;  %v4177_v28 = vrot.slane %v3382_v50, 5 }
 0x284   : > { %v8569_v20 = vadd.f32 %v5027_v38, %v4423_v0  ;;  %v3684_v36 = vrot.slane %v3682_v16, 4  ;;  %v4891_v0 = vunpack.c.l.b16 %v4746_v59  ;;  %v6311_v16 = vrot.slane %v4039_v44, 9 }
 0x285   : > { %5066 = vmatmul.bf16.gmra.mxu0 %v8512_v11  ;;  %4390 = vmatmul.bf16.gmra.mxu3 %v4262_v33  ;;  %v5121_v55 = vpop.f32.mrf.mxu1  ;;  %v4755_v11 = vrot.slane %v4753_v4, 5  ;;  %v4751_v2 = vrot.slane %v4750_v52, 4  ;;  %v3691_v33 = vshll.u32 %v3382_v50, 16  ;;  %v3697_v7 = vrot.slane %v3695_v27, 4 }
 0x286   : > { %v5290_v45 = vadd.f32 %v5289_v31, %v5121_v55  ;;  %v5328_v56 = vmul.f32 %v5121_v55, %v5121_v55  ;;  %v5463_v17 = vadd.f32 %v5462_v15, %v8569_v20  ;;  %v5501_v21 = vmul.f32 %v8569_v20, %v8569_v20 }
 0x287   : > { %v3922_v62 = vpop.f32.mrf.mxu2  ;;  %5160 = vmatmul.bf16.gmra.mxu1 %v8561_v9  ;;  %v3687_v31 = vrot.slane %v3685_v24, 5  ;;  %v4756_v12 = vsel %vm7367_vm11, %v4751_v2, %v4755_v11  ;;  %v3693_v13 = vrot.slane %v3691_v33, 5  ;;  %v4179_v24 = vrot.slane %v4177_v28, 4 }
 0x288   : > { %v4351_v46 = vpop.f32.mrf.mxu3  ;;  %v5359_v41 = vadd.f32 %v5358_v18, %v5328_v56  ;;  %v5532_v40 = vadd.f32 %v5531_v35, %v5501_v21  ;;  %v3998_v15 = vadd.f32 %v3922_v62, %v7976_v3  ;;  %v4465_v18 = vld [vmem:[#allocation2 + $0x9c] sm:$0xf]  ;;  %v4892_v30 = vunpack.c.l.b16 %v4756_v12 }
 0x289   : > { %v3688_v53 = vor.u32 %v3687_v31, %v3684_v36  ;;  %v3703_v35 = vrot.slane %v3701_v42, 5  ;;  %v3698_v52 = vor.u32 %v3697_v7, %v3693_v13  ;;  %v4180_v11 = vrot.slane %v3383_v6, 5 }
 0x28a   : > { %v5029_v38 = vpop.f32.mrf.mxu0  ;;  %v4424_v4 = vadd.f32 %v8537_v47, %v3998_v15  ;;  %v4758_v21 = vshrl.u32 %v4465_v18, 16  ;;  %v3837_v6 = vpack.c.b16 %v8566_v60, %v8563_v32  ;;  %v4761_v60 = vshll.u32 %v4465_v18, 16 }
 0x28b   : > { %v3689_v43 = vrot.slane %v3688_v53, 4  ;;  %v3699_v15 = vrot.slane %v3698_v52, 4  ;;  %v8598_v53 = vpack.c.b16 %v4892_v30, %v4891_v0  ;;  %v3384_v0 = vld [vmem:[#allocation2 + $0xb4] sm:$0xf] }
 0x28c   : > { %v5194_v3 = vadd.f32 %v5029_v38, %v4424_v4  ;;  %3964 = vmatmul.bf16.gmra.mxu2 %v3836_v19  ;;  %v4760_v25 = vrot.slane %v4758_v21, 4  ;;  %v3706_v21 = vshrl.u32 %v3384_v0, 16 }
 0x28d   : > { %v5123_v56 = vpop.f32.mrf.mxu1  ;;  %v3694_v47 = vsel %vm7367_vm11, %v3689_v43, %v3693_v13  ;;  %v3704_v12 = vsel %vm7367_vm11, %v3699_v15, %v3703_v35  ;;  %v4763_v35 = vrot.slane %v4761_v60, 5 }
 0x28e   : > { %v6567_v36 = vpack.c.bf16 %v5123_v56, %v5121_v55  ;;  %v5329_v50 = vmul.f32 %v5123_v56, %v5123_v56  ;;  %v5291_v62 = vadd.f32 %v5290_v45, %v5123_v56  ;;  %v6642_v59 = vpack.c.bf16 %v5194_v3, %v8569_v20  ;;  %v8981_v20 = vld [vmem:[#allocation24_spill] sm:$0xff] }
 0x28f   : > { %v5464_v2 = vadd.f32 %v5463_v17, %v5194_v3  ;;  %v5502_v31 = vmul.f32 %v5194_v3, %v5194_v3  ;;  %v3925_v38 = vpop.f32.mrf.mxu2  ;;  %v4263_v55 = vpack.c.b16 %v4243_v51, %v4242_v22  ;;  %v4178_v45 = vsel %vm7787_vm14, %v6311_v16, %v4177_v28  ;;  %v6897_v51 = vld [vmem:[#allocation2 + $0xa0] sm:$0xf] }
 0x290   : > { %v4353_v33 = vpop.f32.mrf.mxu3  ;;  %6715 = vst [vmem:[%s8486_s27 + $0x10] sm:$0xff] %v6567_v36   ;;  %v5360_v19 = vadd.f32 %v5359_v41, %v5329_v50  ;;  %v3999_v17 = vadd.f32 %v3925_v38, %v8981_v20  ;;  %v4181_v41 = vsel %vm7787_vm14, %v4179_v24, %v4180_v11  ;;  %v8600_v32 = vunpack.c.l.b16 %v3694_v47 }
 0x291   : > { %6729 = vst [vmem:[%s8544_s8 + $0x8] sm:$0xff] %v6642_v59   ;;  %v5533_v27 = vadd.f32 %v5532_v40, %v5502_v31  ;;  %v4767_v13 = vshll.u32 %v6897_v51, 16  ;;  %v4771_v44 = vshrl.u32 %v6897_v51, 16  ;;  %v6898_v40 = vld [vmem:[#allocation2 + $0xa4] sm:$0x1]  ;;  %v8603_v4 = vunpack.c.l.b16 %v3704_v12 }
 0x292   : > { %v5032_v42 = vpop.f32.mrf.mxu0  ;;  %v4425_v22 = vadd.f32 %v4351_v46, %v3999_v17  ;;  %v4777_v28 = vshll.u32 %v6898_v40, 16  ;;  %v4244_v7 = vunpack.c.l.b16 %v4178_v45  ;;  %v4245_v43 = vunpack.c.l.b16 %v4181_v41  ;;  %v8605_v46 = vld [vmem:[#allocation2 + $0xb8] sm:$0xf]  ;;  %v8982_v17 = vld [vmem:[#allocation25_spill] sm:$0xff]  ;;  %v8610_v41 = vld [vmem:[#allocation2 + $0xbc] sm:$0x1] }
 0x293   : > { %v4769_v24 = vrot.slane %v4767_v13, 5  ;;  %v4773_v3 = vrot.slane %v4771_v44, 4  ;;  %v4764_v11 = vor.u32 %v4763_v35, %v4760_v25  ;;  %v3709_v59 = vshll.u32 %v3384_v0, 16 }
 0x294   : > { %v5195_v30 = vadd.f32 %v5032_v42, %v4425_v22  ;;  %v4779_v18 = vrot.slane %v4777_v28, 5  ;;  %v3715_v45 = vshll.u32 %v8605_v46, 16  ;;  %v3719_v25 = vshrl.u32 %v8605_v46, 16  ;;  %v4040_v22 = vld [vmem:[#allocation2 + $0xb4] sm:$0xe] }
 0x295   : > { %5071 = vmatmul.bf16.gmra.mxu0 %v8561_v9  ;;  %4395 = vmatmul.bf16.gmra.mxu3 %v4263_v55  ;;  %v5126_v16 = vpop.f32.mrf.mxu1  ;;  %v4774_v47 = vor.u32 %v4773_v3, %v4769_v24  ;;  %v4765_v38 = vrot.slane %v4764_v11, 4  ;;  %v3708_v55 = vrot.slane %v3706_v21, 4  ;;  %v4264_v51 = vpack.c.b16 %v4245_v43, %v4244_v7 }
 0x296   : > { %v5292_v56 = vadd.f32 %v5291_v62, %v5126_v16  ;;  %v5330_v52 = vmul.f32 %v5126_v16, %v5126_v16  ;;  %v5465_v36 = vadd.f32 %v5464_v2, %v5195_v30  ;;  %v5503_v9 = vmul.f32 %v5195_v30, %v5195_v30 }
 0x297   : > { %v3927_v31 = vpop.f32.mrf.mxu2  ;;  %5165 = vmatmul.bf16.gmra.mxu1 %v8598_v53  ;;  %v4775_v12 = vrot.slane %v4774_v47, 4  ;;  %v3711_v2 = vrot.slane %v3709_v59, 5  ;;  %v4770_v13 = vsel %vm7367_vm11, %v4765_v38, %v4769_v24  ;;  %v8617_v44 = vrot.slane %v3715_v45, 5  ;;  %v4466_v59 = vld [vmem:[#allocation2 + $0xa8] sm:$0xf] }
 0x298   : > { %v4356_v50 = vpop.f32.mrf.mxu3  ;;  %v5361_v15 = vadd.f32 %v5360_v19, %v5330_v52  ;;  %v5534_v42 = vadd.f32 %v5533_v27, %v5503_v9  ;;  %v4000_v62 = vadd.f32 %v3927_v31, %v8982_v17  ;;  %v3838_v19 = vpack.c.b16 %v8603_v4, %v8600_v32 }
 0x299   : > { %v3725_v27 = vshll.u32 %v8610_v41, 16  ;;  %v4780_v35 = vsel %vm7367_vm11, %v4775_v12, %v4779_v18  ;;  %v3721_v0 = vrot.slane %v3719_v25, 4  ;;  %v6312_v43 = vrot.slane %v4040_v22, 9 }
 0x29a   : > { %v5034_v20 = vpop.f32.mrf.mxu0  ;;  %v4426_v60 = vadd.f32 %v4353_v33, %v4000_v62  ;;  %v3712_v33 = vor.u32 %v3711_v2, %v3708_v55  ;;  %v4184_v47 = vrot.slane %v8605_v46, 5  ;;  %v4893_v38 = vunpack.c.l.b16 %v4770_v13  ;;  %v6900_v13 = vld [vmem:[#allocation2 + $0xb0] sm:$0x1] }
 0x29b   : > { %v4894_v45 = vunpack.c.l.b16 %v4780_v35  ;;  %v8624_v18 = vrot.slane %v3725_v27, 5  ;;  %v4785_v17 = vshll.u32 %v4466_v59, 16  ;;  %v4187_v25 = vrot.slane %v8610_v41, 5 }
 0x29c   : > { %v5196_v40 = vadd.f32 %v5034_v20, %v4426_v60  ;;  %3969 = vmatmul.bf16.gmra.mxu2 %v3837_v6  ;;  %v8628_v20 = vrot.slane %v3712_v33, 4  ;;  %v8633_v46 = vsel %vm7787_vm14, %v6312_v43, %v4184_v47  ;;  %v4186_v2 = vrot.slane %v4184_v47, 4 }
 0x29d   : > { %v5128_v28 = vpop.f32.mrf.mxu1  ;;  %v4787_v22 = vrot.slane %v4785_v17, 5  ;;  %v4801_v27 = vshll.u32 %v6900_v13, 16  ;;  %v4246_v35 = vunpack.c.l.b16 %v8633_v46 }
 0x29e   : > { %v6572_v3 = vpack.c.bf16 %v5128_v28, %v5126_v16  ;;  %v5331_v52 = vmul.f32 %v5128_v28, %v5128_v28  ;;  %v5293_v7 = vadd.f32 %v5292_v56, %v5128_v28  ;;  %v6647_v11 = vpack.c.bf16 %v5196_v40, %v5195_v30 }
 0x29f   : > { %v5466_v24 = vadd.f32 %v5465_v36, %v5196_v40  ;;  %v5504_v21 = vmul.f32 %v5196_v40, %v5196_v40  ;;  %v3930_v6 = vpop.f32.mrf.mxu2  ;;  %v3722_v30 = vor.u32 %v3721_v0, %v8617_v44  ;;  %v4782_v36 = vshrl.u32 %v4466_v59, 16  ;;  %v8642_v59 = vld [vmem:[#allocation2 + $0xc4] sm:$0xf] }
 0x2a0   : > { %v4358_v9 = vpop.f32.mrf.mxu3  ;;  %6716 = vst [vmem:[%s8486_s27 + $0x18] sm:$0xff] %v6572_v3   ;;  %v5362_v31 = vadd.f32 %v5361_v15, %v5331_v52  ;;  %v4001_v56 = vadd.f32 %v3930_v6, %v8013_v54  ;;  %v6899_v15 = vld [vmem:[#allocation2 + $0xac] sm:$0xf]  ;;  %v8637_v54 = vpack.c.b16 %v4894_v45, %v4893_v38 }
 0x2a1   : > { %6730 = vst [vmem:[%s8544_s8 + $0x10] sm:$0xff] %v6647_v11   ;;  %v5535_v16 = vadd.f32 %v5534_v42, %v5504_v21  ;;  %v4791_v62 = vshll.u32 %v6899_v15, 16  ;;  %v4795_v42 = vshrl.u32 %v6899_v15, 16  ;;  %v4784_v60 = vrot.slane %v4782_v36, 4 }
 0x2a2   : > { %v5037_v55 = vpop.f32.mrf.mxu0  ;;  %v4427_v12 = vadd.f32 %v4356_v50, %v4001_v56  ;;  %v3387_v50 = vld [vmem:[#allocation2 + $0xc0] sm:$0xf]  ;;  %v3723_v41 = vrot.slane %v3722_v30, 4  ;;  %v4188_v21 = vsel %vm7787_vm14, %v4186_v2, %v4187_v25 }
 0x2a3   : > { %v4793_v33 = vrot.slane %v4791_v62, 5  ;;  %v4797_v0 = vrot.slane %v4795_v42, 4  ;;  %v4788_v43 = vor.u32 %v4787_v22, %v4784_v60  ;;  %v3730_v56 = vshrl.u32 %v3387_v50, 16 }
 0x2a4   : > { %v5197_v40 = vadd.f32 %v5037_v55, %v4427_v12  ;;  %v4803_v55 = vrot.slane %v4801_v27, 5  ;;  %v3733_v36 = vshll.u32 %v3387_v50, 16  ;;  %v3739_v62 = vshll.u32 %v8642_v59, 16 }
 0x2a5   : > { %5076 = vmatmul.bf16.gmra.mxu0 %v8598_v53  ;;  %4400 = vmatmul.bf16.gmra.mxu3 %v4264_v51  ;;  %v5131_v28 = vpop.f32.mrf.mxu1  ;;  %v4798_v47 = vor.u32 %v4797_v0, %v4793_v33  ;;  %v4789_v45 = vrot.slane %v4788_v43, 4  ;;  %v3732_v15 = vrot.slane %v3730_v56, 4  ;;  %v3743_v12 = vshrl.u32 %v8642_v59, 16  ;;  %v8664_v0 = vld [vmem:[#allocation2 + $0xc8] sm:$0x1] }
 0x2a6   : > { %v5294_v3 = vadd.f32 %v5293_v7, %v5131_v28  ;;  %v5332_v52 = vmul.f32 %v5131_v28, %v5131_v28  ;;  %v5467_v11 = vadd.f32 %v5466_v24, %v5197_v40  ;;  %v5505_v53 = vmul.f32 %v5197_v40, %v5197_v40 }
 0x2a7   : > { %v3932_v6 = vpop.f32.mrf.mxu2  ;;  %5170 = vmatmul.bf16.gmra.mxu1 %v8637_v54  ;;  %v4799_v24 = vrot.slane %v4798_v47, 4  ;;  %v4794_v17 = vsel %vm7367_vm11, %v4789_v45, %v4793_v33  ;;  %v4247_v2 = vunpack.c.l.b16 %v4188_v21  ;;  %v3735_v42 = vrot.slane %v3733_v36, 5 }
 0x2a8   : > { %v4361_v51 = vpop.f32.mrf.mxu3  ;;  %v5363_v38 = vadd.f32 %v5362_v31, %v5332_v52  ;;  %v5536_v7 = vadd.f32 %v5535_v16, %v5505_v53  ;;  %v4002_v30 = vadd.f32 %v3932_v6, %v8029_v8  ;;  %v3718_v8 = vsel %vm7367_vm11, %v8628_v20, %v8617_v44 }
 0x2a9   : > { %v4804_v25 = vsel %vm7367_vm11, %v4799_v24, %v4803_v55  ;;  %v8656_v16 = vrot.slane %v3739_v62, 5  ;;  %v3745_v60 = vrot.slane %v3743_v12, 4  ;;  %v4895_v27 = vunpack.c.l.b16 %v4794_v17  ;;  %v6901_v17 = vld [vmem:[#allocation2 + $0xb8] sm:$0xf] }
 0x2aa   : > { %v5039_v46 = vpop.f32.mrf.mxu0  ;;  %v4428_v31 = vadd.f32 %v4358_v9, %v4002_v30  ;;  %v3728_v9 = vsel %vm7367_vm11, %v3723_v41, %v8624_v18  ;;  %v4896_v33 = vunpack.c.l.b16 %v4804_v25  ;;  %v3736_v52 = vor.u32 %v3735_v42, %v3732_v15  ;;  %v6902_v42 = vld [vmem:[#allocation2 + $0xbc] sm:$0x1] }
 0x2ab   : > { %v4265_v4 = vpack.c.b16 %v4247_v2, %v4246_v35  ;;  %v3746_v18 = vor.u32 %v3745_v60, %v8656_v16  ;;  %v3749_v41 = vshll.u32 %v8664_v0, 16  ;;  %v4191_v45 = vrot.slane %v8642_v59, 5 }
 0x2ac   : > { %v5198_v22 = vadd.f32 %v5039_v46, %v4428_v31  ;;  %3974 = vmatmul.bf16.gmra.mxu2 %v3838_v19  ;;  %v4041_v19 = vld [vmem:[#allocation2 + $0xc0] sm:$0xe]  ;;  %v3821_v56 = vunpack.c.l.b16 %v3728_v9  ;;  %v8672_v46 = vpack.c.b16 %v4896_v33, %v4895_v27  ;;  %v3737_v35 = vrot.slane %v3736_v52, 4 }
 0x2ad   : > { %v5133_v13 = vpop.f32.mrf.mxu1  ;;  %v6313_v30 = vrot.slane %v4041_v19, 9  ;;  %v4815_v15 = vshll.u32 %v6901_v17, 16  ;;  %v3747_v59 = vrot.slane %v3746_v18, 4  ;;  %v3751_v62 = vrot.slane %v3749_v41, 5  ;;  %v3390_v18 = vld [vmem:[#allocation2 + $0xcc] sm:$0xf] }
 0x2ae   : > { %v6577_v50 = vpack.c.bf16 %v5133_v13, %v5131_v28  ;;  %v5295_v44 = vadd.f32 %v5294_v3, %v5133_v13  ;;  %v5333_v20 = vmul.f32 %v5133_v13, %v5133_v13  ;;  %v6652_v43 = vpack.c.bf16 %v5198_v22, %v5197_v40  ;;  %v4467_v28 = vld [vmem:[#allocation2 + $0xb4] sm:$0xf] }
 0x2af   : > { %v5468_v53 = vadd.f32 %v5467_v11, %v5198_v22  ;;  %v5506_v21 = vmul.f32 %v5198_v22, %v5198_v22  ;;  %v3935_v47 = vpop.f32.mrf.mxu2  ;;  %v3820_v11 = vunpack.c.l.b16 %v3718_v8  ;;  %v4809_v36 = vshll.u32 %v4467_v28, 16 }
 0x2b0   : > { %v4363_v32 = vpop.f32.mrf.mxu3  ;;  %6717 = vst [vmem:[%s8486_s27 + $0x20] sm:$0xff] %v6577_v50   ;;  %v5364_v6 = vadd.f32 %v5363_v38, %v5333_v20  ;;  %v4003_v40 = vadd.f32 %v3935_v47, %v8042_v34  ;;  %v4806_v38 = vshrl.u32 %v4467_v28, 16  ;;  %v4819_v12 = vshrl.u32 %v6901_v17, 16  ;;  %v8687_v28 = vld [vmem:[#allocation2 + $0xd0] sm:$0xf] }
 0x2b1   : > { %6731 = vst [vmem:[%s8544_s8 + $0x18] sm:$0xff] %v6652_v43   ;;  %v5537_v3 = vadd.f32 %v5536_v7, %v5506_v21  ;;  %v4193_v7 = vrot.slane %v4191_v45, 4  ;;  %v4194_v2 = vrot.slane %v8664_v0, 5  ;;  %v4825_v8 = vshll.u32 %v6902_v42, 16  ;;  %v4468_v42 = vld [vmem:[#allocation2 + $0xc0] sm:$0xf] }
 0x2b2   : > { %v5042_v55 = vpop.f32.mrf.mxu0  ;;  %v4429_v24 = vadd.f32 %v4361_v51, %v4003_v40  ;;  %v4808_v25 = vrot.slane %v4806_v38, 4  ;;  %v4811_v22 = vrot.slane %v4809_v36, 5  ;;  %v4817_v13 = vrot.slane %v4815_v15, 5 }
 0x2b3   : > { %v3839_v33 = vpack.c.b16 %v3821_v56, %v3820_v11  ;;  %v4192_v50 = vsel %vm7787_vm14, %v6313_v30, %v4191_v45  ;;  %v3742_v0 = vsel %vm7367_vm11, %v3737_v35, %v8656_v16  ;;  %v3752_v19 = vsel %vm7367_vm11, %v3747_v59, %v3751_v62 }
 0x2b4   : > { %v5199_v31 = vadd.f32 %v5042_v55, %v4429_v24  ;;  %v4812_v43 = vor.u32 %v4811_v22, %v4808_v25  ;;  %v4195_v47 = vsel %vm7787_vm14, %v4193_v7, %v4194_v2  ;;  %v4827_v45 = vrot.slane %v4825_v8, 5 }
 0x2b5   : > { %5081 = vmatmul.bf16.gmra.mxu0 %v8637_v54  ;;  %4405 = vmatmul.bf16.gmra.mxu3 %v4265_v4  ;;  %v5136_v34 = vpop.f32.mrf.mxu1  ;;  %v8689_v16 = vunpack.c.l.b16 %v3742_v0  ;;  %v4248_v40 = vunpack.c.l.b16 %v4192_v50  ;;  %v4249_v11 = vunpack.c.l.b16 %v4195_v47  ;;  %v3754_v56 = vshrl.u32 %v3390_v18, 16 }
 0x2b6   : > { %v5296_v60 = vadd.f32 %v5295_v44, %v5136_v34  ;;  %v5334_v51 = vmul.f32 %v5136_v34, %v5136_v34  ;;  %v5469_v9 = vadd.f32 %v5468_v53, %v5199_v31  ;;  %v5507_v27 = vmul.f32 %v5199_v31, %v5199_v31 }
 0x2b7   : > { %v3937_v20 = vpop.f32.mrf.mxu2  ;;  %5175 = vmatmul.bf16.gmra.mxu1 %v8672_v46  ;;  %v4821_v44 = vrot.slane %v4819_v12, 4  ;;  %v3757_v38 = vshll.u32 %v3390_v18, 16  ;;  %v3763_v36 = vshll.u32 %v8687_v28, 16  ;;  %v3767_v25 = vshrl.u32 %v8687_v28, 16 }
 0x2b8   : > { %v4366_v54 = vpop.f32.mrf.mxu3  ;;  %v5365_v52 = vadd.f32 %v5364_v6, %v5334_v51  ;;  %v5538_v21 = vadd.f32 %v5537_v3, %v5507_v27  ;;  %v4004_v53 = vadd.f32 %v3937_v20, %v8052_v23  ;;  %v4813_v6 = vrot.slane %v4812_v43, 4  ;;  %v3392_v20 = vld [vmem:[#allocation2 + $0xd4] sm:$0x1] }
 0x2b9   : > { %v4822_v41 = vor.u32 %v4821_v44, %v4817_v13  ;;  %v8691_v3 = vunpack.c.l.b16 %v3752_v19  ;;  %v4266_v22 = vpack.c.b16 %v4249_v11, %v4248_v40  ;;  %v3756_v0 = vrot.slane %v3754_v56, 4 }
 0x2ba   : > { %v5044_v4 = vpop.f32.mrf.mxu0  ;;  %v4430_v55 = vadd.f32 %v4363_v32, %v4004_v53  ;;  %v4818_v24 = vsel %vm7367_vm11, %v4813_v6, %v4817_v13  ;;  %v3759_v43 = vrot.slane %v3757_v38, 5  ;;  %v4830_v44 = vshrl.u32 %v4468_v42, 16 }
 0x2bb   : > { %v4823_v23 = vrot.slane %v4822_v41, 4  ;;  %v4897_v13 = vunpack.c.l.b16 %v4818_v24  ;;  %v3769_v53 = vrot.slane %v3767_v25, 4  ;;  %v4833_v18 = vshll.u32 %v4468_v42, 16 }
 0x2bc   : > { %v5200_v35 = vadd.f32 %v5044_v4, %v4430_v55  ;;  %3979 = vmatmul.bf16.gmra.mxu2 %v3839_v33  ;;  %v4832_v47 = vrot.slane %v4830_v44, 4  ;;  %v6903_v55 = vld [vmem:[#allocation2 + $0xc4] sm:$0xf] }
 0x2bd   : > { %v5138_v30 = vpop.f32.mrf.mxu1  ;;  %v4828_v59 = vsel %vm7367_vm11, %v4823_v23, %v4827_v45  ;;  %v4835_v11 = vrot.slane %v4833_v18, 5 }
 0x2be   : > { %v6582_v17 = vpack.c.bf16 %v5138_v30, %v5136_v34  ;;  %v5297_v32 = vadd.f32 %v5296_v60, %v5138_v30  ;;  %v5335_v15 = vmul.f32 %v5138_v30, %v5138_v30  ;;  %v6657_v62 = vpack.c.bf16 %v5200_v35, %v5199_v31  ;;  %v4042_v34 = vld [vmem:[#allocation2 + $0xcc] sm:$0xe] }
 0x2bf   : > { %v5470_v7 = vadd.f32 %v5469_v9, %v5200_v35  ;;  %v5508_v12 = vmul.f32 %v5200_v35, %v5200_v35  ;;  %v3940_v8 = vpop.f32.mrf.mxu2  ;;  %v4898_v27 = vunpack.c.l.b16 %v4828_v59  ;;  %v4198_v31 = vrot.slane %v8687_v28, 5 }
 0x2c0   : > { %v4368_v2 = vpop.f32.mrf.mxu3  ;;  %6718 = vst [vmem:[%s8486_s27 + $0x28] sm:$0xff] %v6582_v17   ;;  %v5366_v51 = vadd.f32 %v5365_v52, %v5335_v15  ;;  %v4005_v50 = vadd.f32 %v3940_v8, %v8069_v49  ;;  %v3840_v9 = vpack.c.b16 %v8691_v3, %v8689_v16  ;;  %v8705_v52 = vrot.slane %v3763_v36, 5 }
 0x2c1   : > { %6732 = vst [vmem:[%s8544_s8 + $0x20] sm:$0xff] %v6657_v62   ;;  %v5539_v60 = vadd.f32 %v5538_v21, %v5508_v12  ;;  %v6314_v19 = vrot.slane %v4042_v34, 9  ;;  %v8708_v21 = vpack.c.b16 %v4898_v27, %v4897_v13  ;;  %v3773_v49 = vshll.u32 %v3392_v20, 16  ;;  %v6904_v12 = vld [vmem:[#allocation2 + $0xc8] sm:$0x1] }
 0x2c2   : > { %v5047_v33 = vpop.f32.mrf.mxu0  ;;  %v4431_v4 = vadd.f32 %v4366_v54, %v4005_v50  ;;  %v4200_v45 = vrot.slane %v4198_v31, 4  ;;  %v4201_v28 = vrot.slane %v3392_v20, 5  ;;  %v4839_v16 = vshll.u32 %v6903_v55, 16 }
 0x2c3   : > { %v3760_v3 = vor.u32 %v3759_v43, %v3756_v0  ;;  %v4199_v30 = vsel %vm7787_vm14, %v6314_v19, %v4198_v31  ;;  %v4836_v36 = vor.u32 %v4835_v11, %v4832_v47  ;;  %v4843_v15 = vshrl.u32 %v6903_v55, 16 }
 0x2c4   : > { %v5201_v6 = vadd.f32 %v5047_v33, %v4431_v4  ;;  %v4841_v17 = vrot.slane %v4839_v16, 5  ;;  %v4849_v25 = vshll.u32 %v6904_v12, 16  ;;  %v3775_v13 = vrot.slane %v3773_v49, 5  ;;  %v8983_v16 = vld [vmem:[#allocation26_spill] sm:$0xff] }
 0x2c5   : > { %5086 = vmatmul.bf16.gmra.mxu0 %v8672_v46  ;;  %4410 = vmatmul.bf16.gmra.mxu3 %v4266_v22  ;;  %v5141_v41 = vpop.f32.mrf.mxu1  ;;  %v3770_v46 = vor.u32 %v3769_v53, %v8705_v52  ;;  %v4837_v42 = vrot.slane %v4836_v36, 4  ;;  %v4845_v8 = vrot.slane %v4843_v15, 4  ;;  %v4250_v27 = vunpack.c.l.b16 %v4199_v30 }
 0x2c6   : > { %v5298_v40 = vadd.f32 %v5297_v32, %v5141_v41  ;;  %v5336_v54 = vmul.f32 %v5141_v41, %v5141_v41  ;;  %v5471_v23 = vadd.f32 %v5470_v7, %v5201_v6  ;;  %v5509_v56 = vmul.f32 %v5201_v6, %v5201_v6 }
 0x2c7   : > { %v3942_v24 = vpop.f32.mrf.mxu2  ;;  %5180 = vmatmul.bf16.gmra.mxu1 %v8708_v21  ;;  %v4202_v7 = vsel %vm7787_vm14, %v4200_v45, %v4201_v28  ;;  %v4846_v34 = vor.u32 %v4845_v8, %v4841_v17  ;;  %v4851_v33 = vrot.slane %v4849_v25, 5  ;;  %v3761_v20 = vrot.slane %v3760_v3, 4 }
 0x2c8   : > { %v4371_v35 = vpop.f32.mrf.mxu3  ;;  %v5367_v38 = vadd.f32 %v5366_v51, %v5336_v54  ;;  %v5540_v59 = vadd.f32 %v5539_v60, %v5509_v56  ;;  %v4006_v62 = vadd.f32 %v3942_v24, %v8084_v5  ;;  %v4251_v51 = vunpack.c.l.b16 %v4202_v7 }
 0x2c9   : > { %v3771_v31 = vrot.slane %v3770_v46, 4  ;;  %v4842_v29 = vsel %vm7367_vm11, %v4837_v42, %v4841_v17  ;;  %v4847_v44 = vrot.slane %v4846_v34, 4 }
 0x2ca   : > { %v5049_v32 = vpop.f32.mrf.mxu0  ;;  %v4432_v22 = vadd.f32 %v4368_v2, %v4006_v62  ;;  %v4267_v18 = vpack.c.b16 %v4251_v51, %v4250_v27  ;;  %v4899_v45 = vunpack.c.l.b16 %v4842_v29 }
 0x2cb   : > { %v3776_v54 = vsel %vm7367_vm11, %v3771_v31, %v3775_v13 }
 0x2cc   : > { %v5202_v50 = vadd.f32 %v5049_v32, %v4432_v22  ;;  %3984 = vmatmul.bf16.gmra.mxu2 %v3840_v9  ;;  %v4852_v9 = vsel %vm7367_vm11, %v4847_v44, %v4851_v33  ;;  %v3825_v30 = vunpack.c.l.b16 %v3776_v54 }
 0x2cd   : > { %v5143_v60 = vpop.f32.mrf.mxu1 }
 0x2ce   : > { %v6587_v5 = vpack.c.bf16 %v5143_v60, %v5141_v41  ;;  %v5299_v0 = vadd.f32 %v5298_v40, %v5143_v60  ;;  %v5337_v43 = vmul.f32 %v5143_v60, %v5143_v60  ;;  %v6662_v2 = vpack.c.bf16 %v5202_v50, %v5201_v6 }
 0x2cf   : > { %v5472_v4 = vadd.f32 %v5471_v23, %v5202_v50  ;;  %v5510_v53 = vmul.f32 %v5202_v50, %v5202_v50  ;;  %v3945_v49 = vpop.f32.mrf.mxu2  ;;  %v4900_v40 = vunpack.c.l.b16 %v4852_v9  ;;  %v3766_v6 = vsel %vm7367_vm11, %v3761_v20, %v8705_v52 }
 0x2d0   : > { %v4373_v19 = vpop.f32.mrf.mxu3  ;;  %6719 = vst [vmem:[%s8486_s27 + $0x30] sm:$0xff] %v6587_v5   ;;  %v5368_v47 = vadd.f32 %v5367_v38, %v5337_v43  ;;  %v4007_v41 = vadd.f32 %v3945_v49, %v8983_v16  ;;  %v3824_v46 = vunpack.c.l.b16 %v3766_v6 }
 0x2d1   : > { %6733 = vst [vmem:[%s8544_s8 + $0x28] sm:$0xff] %v6662_v2   ;;  %v5541_v28 = vadd.f32 %v5540_v59, %v5510_v53  ;;  %v4916_v11 = vpack.c.b16 %v4900_v40, %v4899_v45 }
 0x2d2   : > { %v5052_v55 = vpop.f32.mrf.mxu0  ;;  %v4433_v3 = vadd.f32 %v4371_v35, %v4007_v41  ;;  %v8984_v35 = vld [vmem:[#allocation27_spill] sm:$0xff] }
 0x2d4   : > { %v5203_v23 = vadd.f32 %v5052_v55, %v4433_v3 }
 0x2d5   : > { %5091 = vmatmul.bf16.gmra.mxu0 %v8708_v21  ;;  %4415 = vmatmul.bf16.gmra.mxu3 %v4267_v18  ;;  %v5146_v56 = vpop.f32.mrf.mxu1  ;;  %v3841_v21 = vpack.c.b16 %v3825_v30, %v3824_v46 }
 0x2d6   : > { %v5300_v24 = vadd.f32 %v5299_v0, %v5146_v56  ;;  %v5338_v38 = vmul.f32 %v5146_v56, %v5146_v56  ;;  %v5473_v36 = vadd.f32 %v5472_v4, %v5203_v23  ;;  %v5511_v17 = vmul.f32 %v5203_v23, %v5203_v23 }
 0x2d7   : > { %v3947_v59 = vpop.f32.mrf.mxu2  ;;  %5185 = vmatmul.bf16.gmra.mxu1 %v4916_v11 }
 0x2d8   : > { %v4376_v15 = vpop.f32.mrf.mxu3  ;;  %v5369_v32 = vadd.f32 %v5368_v47, %v5338_v38  ;;  %v5542_v52 = vadd.f32 %v5541_v28, %v5511_v17  ;;  %v4008_v62 = vadd.f32 %v3947_v59, %v8984_v35 }
 0x2da   : > { %v5054_v10 = vpop.f32.mrf.mxu0  ;;  %v4434_v7 = vadd.f32 %v4373_v19, %v4008_v62 }
 0x2dc   : > { %v5204_v12 = vadd.f32 %v5054_v10, %v4434_v7  ;;  %3989 = vmatmul.bf16.gmra.mxu2 %v3841_v21 }
 0x2dd   : > { %v5148_v25 = vpop.f32.mrf.mxu1 }
 0x2de   : > { %v6592_v42 = vpack.c.bf16 %v5148_v25, %v5146_v56  ;;  %v5301_v8 = vadd.f32 %v5300_v24, %v5148_v25  ;;  %v5339_v22 = vmul.f32 %v5148_v25, %v5148_v25  ;;  %v6667_v13 = vpack.c.bf16 %v5204_v12, %v5203_v23 }
 0x2df   : > { %v5474_v27 = vadd.f32 %v5473_v36, %v5204_v12  ;;  %v5512_v51 = vmul.f32 %v5204_v12, %v5204_v12  ;;  %v3950_v33 = vpop.f32.mrf.mxu2 }
 0x2e0   : > { %v4378_v34 = vpop.f32.mrf.mxu3  ;;  %6720 = vst [vmem:[%s8486_s27 + $0x38] sm:$0xff] %v6592_v42   ;;  %v5370_v50 = vadd.f32 %v5369_v32, %v5339_v22  ;;  %v4009_v31 = vadd.f32 %v3950_v33, %v8129_v48 }
 0x2e1   : > { %6734 = vst [vmem:[%s8544_s8 + $0x30] sm:$0xff] %v6667_v13   ;;  %v5543_v60 = vadd.f32 %v5542_v52, %v5512_v51 }
 0x2e2   : > { %v5057_v20 = vpop.f32.mrf.mxu0  ;;  %v4435_v29 = vadd.f32 %v4376_v15, %v4009_v31 }
 0x2e4   : > { %v5205_v5 = vadd.f32 %v5057_v20, %v4435_v29 }
 0x2e5   : > { %5096 = vmatmul.bf16.gmra.mxu0 %v4916_v11  ;;  %v5151_v0 = vpop.f32.mrf.mxu1 }
 0x2e6   : > { %v5302_v43 = vadd.f32 %v5301_v8, %v5151_v0  ;;  %v5340_v44 = vmul.f32 %v5151_v0, %v5151_v0  ;;  %v5475_v2 = vadd.f32 %v5474_v27, %v5205_v5  ;;  %v5513_v4 = vmul.f32 %v5205_v5, %v5205_v5 }
 0x2e7   : > { %v3952_v19 = vpop.f32.mrf.mxu2 }
 0x2e8   : > { %v4381_v53 = vpop.f32.mrf.mxu3  ;;  %v5371_v49 = vadd.f32 %v5370_v50, %v5340_v44  ;;  %v5544_v47 = vadd.f32 %v5543_v60, %v5513_v4  ;;  %v4010_v9 = vadd.f32 %v3952_v19, %v8143_v26 }
 0x2ea   : > { %v5059_v18 = vpop.f32.mrf.mxu0  ;;  %v4436_v45 = vadd.f32 %v4378_v34, %v4010_v9 }
 0x2ec   : > { %v5206_v28 = vadd.f32 %v5059_v18, %v4436_v45 }
 0x2ed   : > { %v5153_v48 = vpop.f32.mrf.mxu1 }
 0x2ee   : > { %v6597_v55 = vpack.c.bf16 %v5153_v48, %v5151_v0  ;;  %v5303_v16 = vadd.f32 %v5302_v43, %v5153_v48  ;;  %v5341_v41 = vmul.f32 %v5153_v48, %v5153_v48  ;;  %v6672_v40 = vpack.c.bf16 %v5206_v28, %v5205_v5 }
 0x2ef   : > { %v5476_v6 = vadd.f32 %v5475_v2, %v5206_v28  ;;  %v5514_v54 = vmul.f32 %v5206_v28, %v5206_v28  ;;  %v3955_v11 = vpop.f32.mrf.mxu2 }
 0x2f0   : > { %v4383_v3 = vpop.f32.mrf.mxu3  ;;  %6721 = vst [vmem:[%s8486_s27 + $0x40] sm:$0xff] %v6597_v55   ;;  %v5372_v23 = vadd.f32 %v5371_v49, %v5341_v41  ;;  %v4011_v30 = vadd.f32 %v3955_v11, %v8169_v61 }
 0x2f1   : > { %6735 = vst [vmem:[%s8544_s8 + $0x38] sm:$0xff] %v6672_v40   ;;  %v5545_v56 = vadd.f32 %v5544_v47, %v5514_v54 }
 0x2f2   : > { %v5062_v46 = vpop.f32.mrf.mxu0  ;;  %v4437_v24 = vadd.f32 %v4381_v53, %v4011_v30 }
 0x2f4   : > { %v5207_v26 = vadd.f32 %v5062_v46, %v4437_v24 }
 0x2f5   : > { %v5156_v38 = vpop.f32.mrf.mxu1 }
 0x2f6   : > { %v5304_v36 = vadd.f32 %v5303_v16, %v5156_v38  ;;  %v5342_v17 = vmul.f32 %v5156_v38, %v5156_v38  ;;  %v5477_v15 = vadd.f32 %v5476_v6, %v5207_v26  ;;  %v5515_v59 = vmul.f32 %v5207_v26, %v5207_v26 }
 0x2f7   : > { %v3957_v52 = vpop.f32.mrf.mxu2 }
 0x2f8   : > { %v4386_v32 = vpop.f32.mrf.mxu3  ;;  %v5373_v10 = vadd.f32 %v5372_v23, %v5342_v17  ;;  %v5546_v35 = vadd.f32 %v5545_v56, %v5515_v59  ;;  %v4012_v21 = vadd.f32 %v3957_v52, %v8176_v37 }
 0x2fa   : > { %v5064_v62 = vpop.f32.mrf.mxu0  ;;  %v4438_v7 = vadd.f32 %v4383_v3, %v4012_v21 }
 0x2fc   : > { %v5208_v12 = vadd.f32 %v5064_v62, %v4438_v7  ;;  %v8985_v7 = vld [vmem:[#allocation28_spill] sm:$0xff] }
 0x2fd   : > { %v5158_v25 = vpop.f32.mrf.mxu1 }
 0x2fe   : > { %v6602_v61 = vpack.c.bf16 %v5158_v25, %v5156_v38  ;;  %v5305_v42 = vadd.f32 %v5304_v36, %v5158_v25  ;;  %v5343_v8 = vmul.f32 %v5158_v25, %v5158_v25  ;;  %v6677_v22 = vpack.c.bf16 %v5208_v12, %v5207_v26 }
 0x2ff   : > { %v5478_v13 = vadd.f32 %v5477_v15, %v5208_v12  ;;  %v5516_v27 = vmul.f32 %v5208_v12, %v5208_v12  ;;  %v3960_v34 = vpop.f32.mrf.mxu2 }
 0x300   : > { %v4388_v51 = vpop.f32.mrf.mxu3  ;;  %6722 = vst [vmem:[%s8486_s27 + $0x48] sm:$0xff] %v6602_v61   ;;  %v5374_v33 = vadd.f32 %v5373_v10, %v5343_v8  ;;  %v4013_v20 = vadd.f32 %v3960_v34, %v8212_v57  ;;  %v8986_v34 = vld [vmem:[#allocation29_spill] sm:$0xff] }
 0x301   : > { %6736 = vst [vmem:[%s8544_s8 + $0x40] sm:$0xff] %v6677_v22   ;;  %v5547_v50 = vadd.f32 %v5546_v35, %v5516_v27 }
 0x302   : > { %v5067_v60 = vpop.f32.mrf.mxu0  ;;  %v4439_v31 = vadd.f32 %v4386_v32, %v4013_v20 }
 0x304   : > { %v5209_v37 = vadd.f32 %v5067_v60, %v4439_v31 }
 0x305   : > { %v5161_v29 = vpop.f32.mrf.mxu1 }
 0x306   : > { %v8742_v5 = vadd.f32 %v5305_v42, %v5161_v29  ;;  %v5344_v0 = vmul.f32 %v5161_v29, %v5161_v29  ;;  %v5479_v43 = vadd.f32 %v5478_v13, %v5209_v37  ;;  %v5517_v44 = vmul.f32 %v5209_v37, %v5209_v37 }
 0x307   : > { %v3962_v4 = vpop.f32.mrf.mxu2 }
 0x308   : > { %v4391_v2 = vpop.f32.mrf.mxu3  ;;  %v8744_v53 = vadd.f32 %v5374_v33, %v5344_v0  ;;  %v5548_v19 = vadd.f32 %v5547_v50, %v5517_v44  ;;  %v4014_v47 = vadd.f32 %v3962_v4, %v8215_v14 }
 0x30a   : > { %v5069_v49 = vpop.f32.mrf.mxu0  ;;  %v4440_v18 = vadd.f32 %v4388_v51, %v4014_v47 }
 0x30c   : > { %v5210_v57 = vadd.f32 %v5069_v49, %v4440_v18 }
 0x30d   : > { %v8747_v9 = vpop.f32.mrf.mxu1 }
 0x30e   : > { %v6607_v45 = vpack.c.bf16 %v8747_v9, %v5161_v29  ;;  %v6682_v28 = vpack.c.bf16 %v5210_v57, %v5209_v37  ;;  %v5480_v48 = vadd.f32 %v5479_v43, %v5210_v57  ;;  %v5518_v55 = vmul.f32 %v5210_v57, %v5210_v57 }
 0x30f   : > { %v3965_v41 = vpop.f32.mrf.mxu2 }
 0x310   : > { %v4393_v16 = vpop.f32.mrf.mxu3  ;;  %6723 = vst [vmem:[%s8486_s27 + $0x50] sm:$0xff] %v6607_v45   ;;  %v5549_v40 = vadd.f32 %v5548_v19, %v5518_v55  ;;  %v4015_v54 = vadd.f32 %v3965_v41, %v8248_v39  ;;  %v8987_v19 = vld [vmem:[#allocation30_spill] sm:$0xff] }
 0x311   : > { %6737 = vst [vmem:[%s8544_s8 + $0x48] sm:$0xff] %v6682_v28  }
 0x312   : > { %v5072_v6 = vpop.f32.mrf.mxu0  ;;  %v4441_v3 = vadd.f32 %v4391_v2, %v4015_v54 }
 0x314   : > { %v5211_v11 = vadd.f32 %v5072_v6, %v4441_v3 }
 0x315   : > { %v8753_v14 = vpop.f32.mrf.mxu1 }
 0x316   : > { %v5481_v23 = vadd.f32 %v5480_v48, %v5211_v11  ;;  %v5519_v56 = vmul.f32 %v5211_v11, %v5211_v11 }
 0x317   : > { %v3967_v30 = vpop.f32.mrf.mxu2 }
 0x318   : > { %v4396_v46 = vpop.f32.mrf.mxu3  ;;  %v5550_v24 = vadd.f32 %v5549_v40, %v5519_v56  ;;  %v4016_v38 = vadd.f32 %v3967_v30, %v8251_v63  ;;  %v8988_v40 = vld [vmem:[#allocation31_spill] sm:$0xff] }
 0x31a   : > { %v5074_v26 = vpop.f32.mrf.mxu0  ;;  %v4442_v36 = vadd.f32 %v4393_v16, %v4016_v38 }
 0x31c   : > { %v5212_v17 = vadd.f32 %v5074_v26, %v4442_v36  ;;  %v8989_v36 = vld [vmem:[#allocation32_spill] sm:$0xff] }
 0x31d   : > { %v8756_v15 = vpop.f32.mrf.mxu1 }
 0x31e   : > { %v6612_v39 = vpack.c.bf16 %v8756_v15, %v8753_v14  ;;  %v6687_v59 = vpack.c.bf16 %v5212_v17, %v5211_v11  ;;  %v5482_v32 = vadd.f32 %v5481_v23, %v5212_v17  ;;  %v5520_v52 = vmul.f32 %v5212_v17, %v5212_v17 }
 0x31f   : > { %v3970_v35 = vpop.f32.mrf.mxu2 }
 0x320   : > { %v4398_v10 = vpop.f32.mrf.mxu3  ;;  %6724 = vst [vmem:[%s8486_s27 + $0x58] sm:$0xff] %v6612_v39   ;;  %v5551_v62 = vadd.f32 %v5550_v24, %v5520_v52  ;;  %v4017_v12 = vadd.f32 %v3970_v35, %v8985_v7 }
 0x321   : > { %6738 = vst [vmem:[%s8544_s8 + $0x50] sm:$0xff] %v6687_v59  }
 0x322   : > { %v5077_v21 = vpop.f32.mrf.mxu0  ;;  %v4443_v25 = vadd.f32 %v4396_v46, %v4017_v12 }
 0x324   : > { %v5213_v63 = vadd.f32 %v5077_v21, %v4443_v25  ;;  %v8990_v25 = vld [vmem:[#allocation33_spill] sm:$0xff] }
 0x325   : > { %v8763_v61 = vpop.f32.mrf.mxu1 }
 0x326   : > { %v5483_v42 = vadd.f32 %v5482_v32, %v5213_v63  ;;  %v5521_v8 = vmul.f32 %v5213_v63, %v5213_v63 }
 0x327   : > { %v3972_v13 = vpop.f32.mrf.mxu2 }
 0x328   : > { %v4401_v22 = vpop.f32.mrf.mxu3  ;;  %v5552_v27 = vadd.f32 %v5551_v62, %v5521_v8  ;;  %v4018_v33 = vadd.f32 %v3972_v13, %v8986_v34  ;;  %v5345_v62 = vmul.f32 %v8747_v9, %v8747_v9  ;;  %v5346_v8 = vmul.f32 %v8753_v14, %v8753_v14 }
 0x32a   : > { %v5079_v51 = vpop.f32.mrf.mxu0  ;;  %v4444_v50 = vadd.f32 %v4398_v10, %v4018_v33  ;;  %v5376_v13 = vadd.f32 %v8744_v53, %v5345_v62 }
 0x32c   : > { %v5214_v60 = vadd.f32 %v5079_v51, %v4444_v50  ;;  %v5347_v51 = vmul.f32 %v8756_v15, %v8756_v15 }
 0x32d   : > { %v8766_v20 = vpop.f32.mrf.mxu1 }
 0x32e   : > { %v6617_v31 = vpack.c.bf16 %v8766_v20, %v8763_v61  ;;  %v6692_v37 = vpack.c.bf16 %v5214_v60, %v5213_v63  ;;  %v5484_v29 = vadd.f32 %v5483_v42, %v5214_v60  ;;  %v5522_v0 = vmul.f32 %v5214_v60, %v5214_v60 }
 0x32f   : > { %v3975_v44 = vpop.f32.mrf.mxu2  ;;  %v5307_v42 = vadd.f32 %v8742_v5, %v8747_v9  ;;  %v5377_v60 = vadd.f32 %v5376_v13, %v5346_v8  ;;  %v5348_v5 = vmul.f32 %v8763_v61, %v8763_v61 }
 0x330   : > { %v4403_v43 = vpop.f32.mrf.mxu3  ;;  %6725 = vst [vmem:[%s8486_s27 + $0x60] sm:$0xff] %v6617_v31   ;;  %v5553_v2 = vadd.f32 %v5552_v27, %v5522_v0  ;;  %v4019_v49 = vadd.f32 %v3975_v44, %v8987_v19 }
 0x331   : > { %6739 = vst [vmem:[%s8544_s8 + $0x58] sm:$0xff] %v6692_v37   ;;  %v5308_v27 = vadd.f32 %v5307_v42, %v8753_v14  ;;  %v5378_v0 = vadd.f32 %v5377_v60, %v5347_v51 }
 0x332   : > { %v5082_v4 = vpop.f32.mrf.mxu0  ;;  %v4445_v47 = vadd.f32 %v4401_v22, %v4019_v49 }
 0x333   : > { %v5309_v31 = vadd.f32 %v5308_v27, %v8756_v15  ;;  %v8991_v15 = vld [vmem:[#allocation20_spill] sm:$0xff]  ;;  %v5379_v49 = vadd.f32 %v5378_v0, %v5348_v5 }
 0x334   : > { %v5215_v18 = vadd.f32 %v5082_v4, %v4445_v47 }
 0x335   : > { %v5176_v57 = vpop.f32.mrf.mxu1  ;;  %v5310_v14 = vadd.f32 %v5309_v31, %v8763_v61 }
 0x336   : > { %v5485_v45 = vadd.f32 %v5484_v29, %v5215_v18  ;;  %v5523_v28 = vmul.f32 %v5215_v18, %v5215_v18 }
 0x337   : > { %v3977_v48 = vpop.f32.mrf.mxu2  ;;  %v5311_v47 = vadd.f32 %v5310_v14, %v8766_v20 }
 0x338   : > { %v4406_v55 = vpop.f32.mrf.mxu3  ;;  %v5554_v16 = vadd.f32 %v5553_v2, %v5523_v28  ;;  %v4020_v6 = vadd.f32 %v3977_v48, %v8988_v40 }
 0x339   : > { %v5312_v48 = vadd.f32 %v5311_v47, %v5176_v57 }
 0x33a   : > { %v5084_v41 = vpop.f32.mrf.mxu0  ;;  %v4446_v54 = vadd.f32 %v4403_v43, %v4020_v6  ;;  %v5349_v43 = vmul.f32 %v8766_v20, %v8766_v20 }
 0x33c   : > { %v5216_v3 = vadd.f32 %v5084_v41, %v4446_v54  ;;  %v5380_v28 = vadd.f32 %v5379_v49, %v5349_v43 }
 0x33d   : > { %v5178_v11 = vpop.f32.mrf.mxu1 }
 0x33e   : > { %v6622_v23 = vpack.c.bf16 %v5178_v11, %v5176_v57  ;;  %v6697_v56 = vpack.c.bf16 %v5216_v3, %v5215_v18  ;;  %v5486_v46 = vadd.f32 %v5485_v45, %v5216_v3  ;;  %v5524_v30 = vmul.f32 %v5216_v3, %v5216_v3 }
 0x33f   : > { %v3980_v24 = vpop.f32.mrf.mxu2  ;;  %v5350_v18 = vmul.f32 %v5176_v57, %v5176_v57  ;;  %v5313_v40 = vadd.f32 %v5312_v48, %v5178_v11  ;;  %v8992_v57 = vld [vmem:[#allocation21_spill] sm:$0xff] }
 0x340   : > { %6726 = vst [vmem:[%s8486_s27 + $0x68] sm:$0xff] %v6622_v23   ;;  %v5555_v26 = vadd.f32 %v5554_v16, %v5524_v30  ;;  %v4021_v17 = vadd.f32 %v3980_v24, %v8989_v36  ;;  %v4408_v39 = vpop.f32.mrf.mxu3 }
 0x341   : > { %6740 = vst [vmem:[%s8544_s8 + $0x60] sm:$0xff] %v6697_v56   ;;  %v5381_v41 = vadd.f32 %v5380_v28, %v5350_v18 }
 0x342   : > { %v5087_v38 = vpop.f32.mrf.mxu0  ;;  %v4447_v59 = vadd.f32 %v4406_v55, %v4021_v17  ;;  %v5351_v55 = vmul.f32 %v5178_v11, %v5178_v11 }
 0x344   : > { %v5217_v32 = vadd.f32 %v5087_v38, %v4447_v59  ;;  %v5382_v56 = vadd.f32 %v5381_v41, %v5351_v55 }
 0x345   : > { %v5181_v52 = vpop.f32.mrf.mxu1 }
 0x346   : > { %v5487_v10 = vadd.f32 %v5486_v46, %v5217_v32  ;;  %v5525_v35 = vmul.f32 %v5217_v32, %v5217_v32  ;;  %v5352_v6 = vmul.f32 %v5181_v52, %v5181_v52  ;;  %v5314_v46 = vadd.f32 %v5313_v40, %v5181_v52 }
 0x347   : > { %v3982_v21 = vpop.f32.mrf.mxu2 }
 0x348   : > { %v5556_v7 = vadd.f32 %v5555_v26, %v5525_v35  ;;  %v4022_v63 = vadd.f32 %v3982_v21, %v8990_v25  ;;  %v4411_v34 = vpop.f32.mrf.mxu3  ;;  %v5383_v11 = vadd.f32 %v5382_v56, %v5352_v6 }
 0x34a   : > { %v5089_v12 = vpop.f32.mrf.mxu0  ;;  %v4448_v22 = vadd.f32 %v4408_v39, %v4022_v63 }
 0x34c   : > { %v5218_v33 = vadd.f32 %v5089_v12, %v4448_v22 }
 0x34d   : > { %v5183_v50 = vpop.f32.mrf.mxu1 }
 0x34e   : > { %v6627_v9 = vpack.c.bf16 %v5183_v50, %v5181_v52  ;;  %v6702_v37 = vpack.c.bf16 %v5218_v33, %v5217_v32  ;;  %v5488_v29 = vadd.f32 %v5487_v10, %v5218_v33  ;;  %v5526_v53 = vmul.f32 %v5218_v33, %v5218_v33 }
 0x34f   : > { %v3985_v44 = vpop.f32.mrf.mxu2  ;;  %v5353_v20 = vmul.f32 %v5183_v50, %v5183_v50  ;;  %v5315_v36 = vadd.f32 %v5314_v46, %v5183_v50 }
 0x350   : > { %6727 = vst [vmem:[%s8486_s27 + $0x70] sm:$0xff] %v6627_v9   ;;  %v5557_v2 = vadd.f32 %v5556_v7, %v5526_v53  ;;  %v4023_v19 = vadd.f32 %v3985_v44, %v8991_v15  ;;  %v4413_v54 = vpop.f32.mrf.mxu3 }
 0x351   : > { %6741 = vst [vmem:[%s8544_s8 + $0x68] sm:$0xff] %v6702_v37   ;;  %v5384_v59 = vadd.f32 %v5383_v11, %v5353_v20 }
 0x352   : > { %v5092_v4 = vpop.f32.mrf.mxu0  ;;  %v4449_v45 = vadd.f32 %v4411_v34, %v4023_v19 }
 0x354   : > { %v5219_v61 = vadd.f32 %v5092_v4, %v4449_v45 }
 0x355   : > { %v5186_v16 = vpop.f32.mrf.mxu1 }
 0x356   : > { %v5489_v3 = vadd.f32 %v5488_v29, %v5219_v61  ;;  %v5527_v23 = vmul.f32 %v5219_v61, %v5219_v61  ;;  %v5354_v17 = vmul.f32 %v5186_v16, %v5186_v16  ;;  %v5316_v32 = vadd.f32 %v5315_v36, %v5186_v16 }
 0x357   : > { %v3987_v30 = vpop.f32.mrf.mxu2 }
 0x358   : > { %v5558_v24 = vadd.f32 %v5557_v2, %v5527_v23  ;;  %v4024_v38 = vadd.f32 %v3987_v30, %v8992_v57  ;;  %v5385_v35 = vadd.f32 %v5384_v59, %v5354_v17  ;;  %v4416_v8 = vpop.f32.mrf.mxu3 }
 0x35a   : > { %v5094_v26 = vpop.f32.mrf.mxu0  ;;  %v4450_v39 = vadd.f32 %v4413_v54, %v4024_v38 }
 0x35c   : > { %v5220_v52 = vadd.f32 %v5094_v26, %v4450_v39 }
 0x35d   : > { %v5188_v10 = vpop.f32.mrf.mxu1 }
 0x35e   : > { %v6632_v62 = vpack.c.bf16 %v5188_v10, %v5186_v16  ;;  %v5317_v21 = vadd.f32 %v5316_v32, %v5188_v10  ;;  %v5355_v7 = vmul.f32 %v5188_v10, %v5188_v10  ;;  %v6707_v12 = vpack.c.bf16 %v5220_v52, %v5219_v61 }
 0x35f   : > { %v5490_v25 = vadd.f32 %v5489_v3, %v5220_v52  ;;  %v5528_v63 = vmul.f32 %v5220_v52, %v5220_v52  ;;  %v3990_v42 = vpop.f32.mrf.mxu2 }
 0x360   : > { %6728 = vst [vmem:[%s8486_s27 + $0x78] sm:$0xff] %v6632_v62   ;;  %v5318_v22 = vrot.slane %v5317_v21, 4  ;;  %v5386_v13 = vadd.f32 %v5385_v35, %v5355_v7  ;;  %v4025_v51 = vadd.f32 %v3990_v42, %v8496_v58  ;;  %s7015_s27 = scalar_lea.hbm %s8928_s4, 256 }
 0x361   : > { %6742 = vst [vmem:[%s8544_s8 + $0x70] sm:$0xff] %v6707_v12   ;;  %v5559_v27 = vadd.f32 %v5558_v24, %v5528_v63  ;;  %p7017_p9 = scmp.lt.s32.totalorder %s7015_s27, %s7011_s19 }
 0x362   : > { %v5097_v34 = vpop.f32.mrf.mxu0  ;;  %v5319_v33 = vadd.f32 %v5318_v22, %v5317_v21  ;;  %v5387_v50 = vrot.slane %v5386_v13, 4 }
 0x363   : > { %p7018_p2 = por %p7017_p9, %p7016_p11 }
 0x365   : > { %p7019_p10 = pnand %p7018_p2, %p7014_p8 }
 0x367   : > { %7022 = shalt.err (!%p7019_p10)
}
 0x368   : > { %s8934_s13 = smov 64   ;;  %s8935_s14 = smov 4   ;;  %v4451_v58 = vadd.f32 %v4416_v8, %v4025_v51  ;;  %v5320_v60 = vrot.slane %v5319_v33, 2  ;;  %v5388_v31 = vadd.f32 %v5387_v50, %v5386_v13  ;;  %v3992_v43 = vpop.f32.mrf.mxu2  ;;  %v4418_v15 = vpop.f32.mrf.mxu3  ;;  %vm5395_vm15 = vcmask 1041408  }
 0x369   : > { %6771 = dma.vmem_to_hbm [thread:$0]  (%p7277_p5), %s8807_s15, 2048, %s8809_s10, %s8814_s16, %s8934_s13, %s8934_s13, %s8935_s14   ;;  %v4026_v2 = vadd.f32 %v3992_v43, %v8508_v1 }
 0x36a   : > { %v5221_v5 = vadd.f32 %v5097_v34, %v4451_v58  ;;  %s8937_s18 = sshll.u32 %s7224_s25, 3  ;;  %v5321_v9 = vadd.f32 %v5320_v60, %v5319_v33  ;;  %v5389_v37 = vrot.slane %v5388_v31, 2  ;;  %s8936_s19 = sshll.u32 %s7307_s12, 3  ;;  %v5099_v18 = vpop.f32.mrf.mxu0 }
 0x36b   : > { %s5645_s15 = scalar_lea.hbm %s8930_s6, %s8937_s18  ;;  %s5598_s29 = scalar_lea.hbm %s8927_s3, %s6552_s17  ;;  %v4452_v19 = vadd.f32 %v4418_v15, %v4026_v2 }
 0x36c   : > { %v5491_v29 = vadd.f32 %v5490_v25, %v5221_v5  ;;  %v5529_v53 = vmul.f32 %v5221_v5, %v5221_v5  ;;  %v5322_v0 = vrot.slane %v5321_v9, 1  ;;  %v5390_v14 = vadd.f32 %v5389_v37, %v5388_v31  ;;  %s332_s30 = scalar_lea.vmem [#allocation13], %s8936_s19  ;;  %s5649_s14 = sshll.u32 %s5645_s15, 4  ;;  %s5650_s14 = int_to_ptr.hbm [resolvable:$true] %s5649_s14 }
 0x36d   : > { %s5647_s13 = sshll.u32 %s332_s30, 4  ;;  %s5599_s11 = sshll.u32 %s8544_s8, 4  ;;  %v5222_v1 = vadd.f32 %v5099_v18, %v4452_v19  ;;  %s5648_s13 = int_to_ptr.vmem [resolvable:$true] %s5647_s13  ;;  %s8850_s11 = int_to_ptr.vmem [resolvable:$true] %s5599_s11 }
 0x36e   : > { %v5560_v44 = vadd.f32 %v5559_v27, %v5529_v53  ;;  %v5391_v4 = vrot.slane %v5390_v14, 1  ;;  %v5323_v49 = vadd.f32 %v5322_v0, %v5321_v9  ;;  %s5601_s26 = sshll.u32 %s5598_s29, 4  ;;  %s5587_s17 = scalar_lea.sflag [#allocation14], %s7307_s12  ;;  %s8852_s26 = int_to_ptr.hbm [resolvable:$true] %s5601_s26 }
 0x36f   : > { %v6712_v28 = vpack.c.bf16 %v5222_v1, %v5221_v5  ;;  %v5492_v48 = vadd.f32 %v5491_v29, %v5222_v1  ;;  %v5530_v55 = vmul.f32 %v5222_v1, %v5222_v1  ;;  %s7037_s15 = sshra.s32 %s5650_s14, 4  ;;  %s7043_s19 = scalar_lea.hbm %s8930_s6, 16  ;;  %s7038_s15 = int_to_ptr.hbm [resolvable:$true] %s7037_s15 }
 0x370   : > { %v5392_v47 = vadd.f32 %v5391_v4, %v5390_v14  ;;  %s7039_s10 = scalar_lea.hbm %s7038_s15, 8  ;;  %p7044_p3 = scmp.lt.s32.totalorder %s7038_s15, %s8930_s6 }
 0x371   : > { %6743 = vst [vmem:[%s8544_s8 + $0x78] sm:$0xff] %v6712_v28   ;;  %v5493_v16 = vrot.slane %v5492_v48, 4  ;;  %v5561_v41 = vadd.f32 %v5560_v44, %v5530_v55  ;;  %p7040_p12 = scmp.ne.s32.totalorder %s7038_s15, %s7039_s10  ;;  %p7045_p7 = scmp.lt.s32.totalorder %s7043_s19, %s7039_s10 }
 0x372   : > { %v5394_v45 = vsel %vm406_vm0, %v5323_v49, %v5392_v47 }
 0x373   : > { %v5396_v61 = vsel %vm5395_vm15, %v5394_v45, 0.0  ;;  %p7041_p13 = pnand %p7040_p12, %p7277_p5  ;;  %p7046_p1 = por %p7045_p7, %p7044_p3 }
 0x374   : > { %5397 = vst [vmem:[%s332_s30] sm:$0xff] %v5396_v61 }
 0x375   : > { %p7042_p0 = pneg %p7041_p13 }
 0x377   : > { %p7047_p4 = pnand %p7046_p1, %p7042_p0 }
 0x379   : > { %7050 = shalt.err (!%p7047_p4)
}
 0x37a   : > { %6773 = dma.vmem_to_hbm [thread:$0]  (%p7277_p5), %s5648_s13, 128, %s5650_s14, %s5587_s17  }
 0x37b   : > { %s5572_s8 = scalar_lea.sflag [#allocation5], %s7307_s12  ;;  %s7065_s30 = sshra.s32 %s8852_s26, 4  ;;  %s7066_s30 = int_to_ptr.hbm [resolvable:$true] %s7065_s30 }
 0x37c   : > { %s7067_s1 = scalar_lea.hbm %s7066_s30, 128  ;;  %s7071_s19 = scalar_lea.hbm %s8927_s3, 256 }
 0x37d   : > { %p7068_p8 = scmp.ne.s32.totalorder %s7066_s30, %s7067_s1  ;;  %p7072_p2 = scmp.lt.s32.totalorder %s7066_s30, %s8927_s3 }
 0x37e   : > { %p7073_p10 = scmp.lt.s32.totalorder %s7071_s19, %s7067_s1 }
 0x37f   : > { %p7069_p11 = pnand %p7068_p8, %p7277_p5 }
 0x380   : > { %p7074_p12 = por %p7073_p10, %p7072_p2 }
 0x381   : > { %p7070_p9 = pneg %p7069_p11 }
 0x383   : > { %p7075_p13 = pnand %p7074_p12, %p7070_p9 }
 0x385   : > { %7078 = shalt.err (!%p7075_p13)
}
 0x386   : > { %s8993_s13 = smov 4   ;;  %s8994_s14 = smov 64   ;;  %v5494_v40 = vadd.f32 %v5493_v16, %v5492_v48  ;;  %v5562_v6 = vrot.slane %v5561_v41, 4 }
 0x387   : > { %6770 = dma.vmem_to_hbm [thread:$0]  (%p7277_p5), %s8850_s11, 2048, %s8852_s26, %s5572_s8, %s8994_s14, %s8994_s14, %s8993_s13  }
 0x388   : > { %v5495_v54 = vrot.slane %v5494_v40, 2  ;;  %v5563_v3 = vadd.f32 %v5562_v6, %v5561_v41  ;;  %s8995_s1 = sshll.u32 %s7224_s25, 3  ;;  %s8996_s30 = sshll.u32 %s7307_s12, 3 }
 0x389   : > { %s5631_s29 = scalar_lea.hbm %s8929_s5, %s8995_s1  ;;  %s325_s0 = scalar_lea.vmem [#allocation12], %s8996_s30 }
 0x38a   : > { %v5496_v23 = vadd.f32 %v5495_v54, %v5494_v40  ;;  %v5564_v56 = vrot.slane %v5563_v3, 2  ;;  %s5633_s18 = sshll.u32 %s325_s0, 4  ;;  %s5635_s19 = sshll.u32 %s5631_s29, 4  ;;  %s5634_s18 = int_to_ptr.vmem [resolvable:$true] %s5633_s18  ;;  %s5636_s19 = int_to_ptr.hbm [resolvable:$true] %s5635_s19 }
 0x38b   : > { %s7093_s25 = sshra.s32 %s5636_s19, 4  ;;  %s7099_s8 = scalar_lea.hbm %s8929_s5, 16  ;;  %s7094_s25 = int_to_ptr.hbm [resolvable:$true] %s7093_s25 }
 0x38c   : > { %v5497_v46 = vrot.slane %v5496_v23, 1  ;;  %v5565_v20 = vadd.f32 %v5564_v56, %v5563_v3  ;;  %s7095_s11 = scalar_lea.hbm %s7094_s25, 8  ;;  %p7100_p1 = scmp.lt.s32.totalorder %s7094_s25, %s8929_s5 }
 0x38d   : > { %p7096_p0 = scmp.ne.s32.totalorder %s7094_s25, %s7095_s11  ;;  %p7101_p4 = scmp.lt.s32.totalorder %s7099_s8, %s7095_s11 }
 0x38e   : > { %v5566_v30 = vrot.slane %v5565_v20, 1  ;;  %v5498_v24 = vadd.f32 %v5497_v46, %v5496_v23 }
 0x38f   : > { %p7097_p3 = pnand %p7096_p0, %p7277_p5  ;;  %p7102_p8 = por %p7101_p4, %p7100_p1 }
 0x390   : > { %v5567_v26 = vadd.f32 %v5566_v30, %v5565_v20 }
 0x391   : > { %p7098_p7 = pneg %p7097_p3 }
 0x392   : > { %v5568_v57 = vsel %vm406_vm0, %v5498_v24, %v5567_v26 }
 0x393   : > { %v5569_v38 = vsel %vm5395_vm15, %v5568_v57, 0.0  ;;  %p7103_p11 = pnand %p7102_p8, %p7098_p7 }
 0x394   : > { %5570 = vst [vmem:[%s325_s0] sm:$0xff] %v5569_v38 }
 0x395   : > { %7106 = shalt.err (!%p7103_p11)
}
 0x396   : > { %6772 = dma.vmem_to_hbm [thread:$0]  (%p7277_p5), %s5634_s18, 128, %s5636_s19, %s8814_s16  }
 0x397 PF: > { %s5661_s13 = sand.u32 1, %s7145_s21   ;;  %p8997_p9 = scmp.ge.s32.totalorder %s7157_s24, 2 }
 0x398   : > { %s5662_s14 = scalar_lea.sflag [#allocation5], %s5661_s13 }
 0x399   : > { %p6790_p2 = pnand %p8997_p9, %p7240_p6 }
 0x39b   : > { %p6791_p10 = pneg %p6790_p2 }
 0x39d   : > { %7132 = dma.done.wait (%p6791_p10), %s5662_s14, 2048  }
 0x39e   : > { %7134 = vsyncadd (%p6791_p10), %s5662_s14, 4294965248  ;;  %s8998_s1 = sadd.s32 4294967294, %s7157_s24  }
 0x39f   : > { %s5671_s17 = sand.u32 1, %s8998_s1  }
 0x3a0   : > { %s5672_s27 = scalar_lea.sflag [#allocation11], %s5671_s17 }
 0x3a1   : > { %7136 = dma.done.wait (%p6791_p10), %s5672_s27, 2176  }
 0x3a2   : > { %7138 = vsyncadd (%p6791_p10), %s5672_s27, 4294965120  ;;  %s5692_s9 = scalar_lea.sflag [#allocation14], %s5661_s13 }
 0x3a3   : > { %7140 = dma.done.wait (%p6791_p10), %s5692_s9, 128  }
 0x3a4   : > { %7142 = vsyncadd (%p6791_p10), %s5692_s9, 4294967168  ;;  %p27_p5 = scmp.ge.s32.totalorder %s7264_s20, 4   ;;  %s8999_s21 = smov %s7149_s22 }
 0x3a5   : > { %s9000_s22 = smov %s7153_s23  ;;  %s9001_s23 = smov %s7273_s7 }
 0x3a6   : > { %s9002_s24 = smov %s7264_s20  ;;  %29 = sbr.rel (!%p27_p5) target bundleno = 13 (0xd), region = 144 }
 0x3ab   :  { %5698 = vsyncpa [#allocation4], 1 }
 0x3ac   :  { %5700 = vsyncpa [#allocation4 + $0x1], 1 }
 0x3ad   :  { %5701 = vsyncpa [#allocation7], 1 }
 0x3ae   :  { %5702 = vsyncpa [#allocation5], 1 }
 0x3af   :  { %5704 = vsyncpa [#allocation5 + $0x1], 1 }
 0x3b0   :  { %5705 = vsyncpa [#allocation11], 1 }
 0x3b1   :  { %5707 = vsyncpa [#allocation11 + $0x1], 1 }
 0x3b2   :  { %5708 = vsyncpa [#allocation14], 1 }
 0x3b3   :  { %5710 = vsyncpa [#allocation14 + $0x1], 1 }

</bundles_post_ra>
